<compile_context>
chip_gen: v7x
topology: tpu7x:2x2x1
jax: 0.10.0
libtpu: 0.0.40
codegen_flags: <defaults>
</compile_context>

<pallas_src>
import functools

import jax
import jax.numpy as jnp
import numpy as np
from jax import lax
from jax.experimental import pallas as pl
from jax.experimental.pallas import tpu as pltpu

_LANE = 128  # TPU lane width; channel dims padded to this for dense MXU/vreg use.


def _round_up(x, m):
    return (x + m - 1) // m * m


def _basic_block_kernel(x_ref, w1_ref, b1_ref, w2_ref, b2_ref, valid_ref,
                        o_ref, col_ref, yp_ref, acc_ref, *, W, CP, Q, S, Wp):
    """Fused BasicBlock forward for one image (one grid step).

    x_ref:     (PR, CP)  f32   flat row-major padded input (halo + pad lanes zero)
    w*_ref:    (3, 3*CP, CP) bf16  conv weights, BN scale folded, (dh, dw*CP+ci, co)
    b*_ref:    (1, CP)   f32   folded BN bias
    valid_ref: (Q, 1)    f32   1.0 on real output columns, 0.0 on garbage columns
    o_ref:     (Q, CP)   f32   lane-dense output (garbage cols/pad lanes dropped in wrapper)
    col_ref:   (Q, 3*CP) bf16  dw-direction im2col scratch
    yp_ref:    (PR2, CP) bf16  padded conv1 output (conv2 input); y1 stored at row S
    acc_ref:   (Q, CP)   f32   accumulator
    """

    def conv3x3(src_ref, base, w_ref):
        # 3x3 conv (pad=1, stride=1): per dh build a (Q, 3*CP) im2col slab from
        # three contiguous leading-dim slices (no (H,W)->(H*W) relayout), then
        # one K = 3*CP MXU matmul.  3 matmuls / 3 accumulator writes per conv.
        for dh in range(3):
            for dw in range(3):
                col_ref[:, dw * CP:(dw + 1) * CP] = (
                    src_ref[pl.ds(base + dh * Wp + dw, Q), :].astype(col_ref.dtype))
            part = jnp.dot(col_ref[...], w_ref[dh],
                           preferred_element_type=jnp.float32)
            if dh == 0:
                acc_ref[...] = part
            else:
                acc_ref[...] += part

    # ---- conv1 (BN1 scale pre-folded into w1) + bias + ReLU -----------------
    conv3x3(x_ref, 0, w1_ref)
    y1 = jnp.maximum(acc_ref[...] + b1_ref[...], 0.0)
    # Zero the 2 garbage columns per row so they act as conv2's left/right halo.
    y1 = y1 * valid_ref[...]

    # ---- re-pad intermediate in VMEM: halo-only zeroing + aligned dense store
    PR2 = yp_ref.shape[0]
    yp_ref[pl.ds(0, S), :] = jnp.zeros((S, CP), yp_ref.dtype)
    yp_ref[pl.ds(S + Q, PR2 - S - Q), :] = jnp.zeros((PR2 - S - Q, CP), yp_ref.dtype)
    yp_ref[pl.ds(S, Q), :] = y1.astype(yp_ref.dtype)

    # ---- conv2 (BN2 folded) + bias + ReLU, + identity, final ReLU -----------
    conv3x3(yp_ref, S - (W + 3), w2_ref)
    y2 = jnp.maximum(acc_ref[...] + b2_ref[...], 0.0)
    identity = x_ref[pl.ds(W + 3, Q), :]        # f32, CP-wide; garbage cols read halo zeros
    o_ref[...] = jnp.maximum(y2 + identity, 0.0).astype(o_ref.dtype)


def _fold_bn_into_conv(w, scale, bias, CP):
    """Fold eval-mode BN scale into HWIO conv weights; emit the kernel's
    dw-fused (3, 3*CP, CP) bf16 weight layout and a (1, CP) f32 bias."""
    cin, cout = w.shape[2], w.shape[3]
    wf = w * scale.reshape(1, 1, 1, cout)
    wp = jnp.zeros((3, 3, CP, CP), jnp.float32).at[:, :, :cin, :cout].set(wf)
    wp = wp.reshape(3, 3 * CP, CP).astype(jnp.bfloat16)    # (dh, dw*CP + ci, co)
    bp = jnp.zeros((1, CP), jnp.float32).at[0, :cout].set(bias.reshape(-1))
    return wp, bp


def basic_block_forward(x, params):
    """Pallas BasicBlock: relu(bn2(conv2(relu(bn1(conv1(x))))) + x).

    x: (B, H, W, C) NHWC float32. Returns (B, H, W, C) float32.
    """
    w1, s1, b1, w2, s2, b2 = params
    B, H, W, C = x.shape
    assert (w1.shape[2] == C and w1.shape[3] == C and
            w2.shape[2] == C and w2.shape[3] == C), (
        "identity shortcut requires Cin == Cout (stride=1, downsample=None)")

    CP = _round_up(max(C, _LANE), _LANE)    # channels padded to lane width
    Wp = W + 2                              # padded width == row stride of flat layout
    Q = H * Wp                              # flat output rows (incl. 2 garbage cols/row)
    PR = _round_up((H + 2) * Wp + 2, 8)     # flat padded-input rows (+2 tap overrun)
    S = _round_up(W + 3, 16)                # aligned start row of y1 in conv2 scratch
    PR2 = _round_up((S - (W + 3)) + 2 * Wp + 2 + Q, 16)   # conv2 scratch rows

    # --- weight-side prep (tiny; precomputed offline in deployment) ----------
    w1p, b1p = _fold_bn_into_conv(w1, s1, b1, CP)
    w2p, b2p = _fold_bn_into_conv(w2, s2, b2, CP)

    # --- layout plumbing: flat padded, lane-dense input; garbage-col mask ----
    xp = jnp.pad(x, ((0, 0), (1, 1), (1, 1), (0, CP - C)))      # (B, H+2, W+2, CP)
    xp = xp.reshape(B, (H + 2) * Wp, CP)
    xp = jnp.pad(xp, ((0, 0), (0, PR - (H + 2) * Wp), (0, 0)))  # (B, PR, CP)
    valid = (jnp.arange(Q) % Wp < W).astype(x.dtype).reshape(Q, 1)

    kernel = functools.partial(_basic_block_kernel, W=W, CP=CP, Q=Q, S=S, Wp=Wp)

    out = pl.pallas_call(
        kernel,
        out_shape=jax.ShapeDtypeStruct((B, Q, CP), x.dtype),
        grid_spec=pltpu.PrefetchScalarGridSpec(
            num_scalar_prefetch=0,
            grid=(B,),
            in_specs=[
                pl.BlockSpec((None, PR, CP), lambda b: (b, 0, 0)),      # padded x (f32)
                pl.BlockSpec((3, 3 * CP, CP), lambda b: (0, 0, 0)),     # w1 (bf16, dw-fused)
                pl.BlockSpec((1, CP), lambda b: (0, 0)),                # bias1
                pl.BlockSpec((3, 3 * CP, CP), lambda b: (0, 0, 0)),     # w2 (bf16, dw-fused)
                pl.BlockSpec((1, CP), lambda b: (0, 0)),                # bias2
                pl.BlockSpec((Q, 1), lambda b: (0, 0)),                 # garbage-col mask
            ],
            out_specs=pl.BlockSpec((None, Q, CP), lambda b: (b, 0, 0)),  # lane-dense out
            scratch_shapes=[
                pltpu.VMEM((Q, 3 * CP), jnp.bfloat16),   # dw-fused im2col slab
                pltpu.VMEM((PR2, CP), jnp.bfloat16),     # padded conv1 output
                pltpu.VMEM((Q, CP), jnp.float32),        # f32 accumulator
            ],
        ),
        compiler_params=pltpu.CompilerParams(
            dimension_semantics=("parallel",),     # batch shards across v7x's 2 TCs
            vmem_limit_bytes=32 * 1024 * 1024,     # actual use ~2.5 MiB; <= physical on all gens
        ),
    )(xp, w1p, b1p, w2p, b2p, valid)

    # Drop the 2 garbage columns per row and the pad lanes (layout plumbing only).
    return out.reshape(B, H, Wp, CP)[:, :, :W, :C]


def basic_block_reference(x, params):
    """Plain-JAX reference mirroring kernel numerics (folded BN, bf16 operands, f32 acc)."""
    w1, s1, b1, w2, s2, b2 = params
    dn = ("NHWC", "HWIO", "NHWC")
    w1f = (w1 * s1.reshape(1, 1, 1, -1)).astype(jnp.bfloat16)
    w2f = (w2 * s2.reshape(1, 1, 1, -1)).astype(jnp.bfloat16)
    c1 = lax.conv_general_dilated(x.astype(jnp.bfloat16), w1f, (1, 1), "SAME",
                                  dimension_numbers=dn,
                                  preferred_element_type=jnp.float32)
    y1 = jnp.maximum(c1 + b1, 0.0)
    c2 = lax.conv_general_dilated(y1.astype(jnp.bfloat16), w2f, (1, 1), "SAME",
                                  dimension_numbers=dn,
                                  preferred_element_type=jnp.float32)
    y2 = jnp.maximum(c2 + b2, 0.0)
    return jnp.maximum(y2 + x, 0.0)


def make_params(key, cin, cout, eps=1e-5):
    """Deterministic conv weights + folded eval-mode BatchNorm scale/bias."""
    ks = jax.random.split(key, 10)
    w1 = jax.random.normal(ks[0], (3, 3, cin, cout), jnp.float32) * 0.1
    w2 = jax.random.normal(ks[1], (3, 3, cout, cout), jnp.float32) * 0.1
    g1 = 1.0 + 0.1 * jax.random.normal(ks[2], (cout,), jnp.float32)
    b1 = 0.1 * jax.random.normal(ks[3], (cout,), jnp.float32)
    m1 = 0.1 * jax.random.normal(ks[4], (cout,), jnp.float32)
    v1 = jnp.abs(jax.random.normal(ks[5], (cout,), jnp.float32)) + 0.5
    g2 = 1.0 + 0.1 * jax.random.normal(ks[6], (cout,), jnp.float32)
    b2 = 0.1 * jax.random.normal(ks[7], (cout,), jnp.float32)
    m2 = 0.1 * jax.random.normal(ks[8], (cout,), jnp.float32)
    v2 = jnp.abs(jax.random.normal(ks[9], (cout,), jnp.float32)) + 0.5
    s1 = g1 / jnp.sqrt(v1 + eps)
    bias1 = b1 - m1 * s1
    s2 = g2 / jnp.sqrt(v2 + eps)
    bias2 = b2 - m2 * s2
    return (w1, s1.reshape(1, cout), bias1.reshape(1, cout),
            w2, s2.reshape(1, cout), bias2.reshape(1, cout))


if __name__ == "__main__":
    B, C, H, W = 2, 4, 16, 16  # in_channels == out_channels, stride=1, downsample=None
    key = jax.random.PRNGKey(0)
    kx, kp = jax.random.split(key)
    # NHWC activations (== PyTorch NCHW input of shape (2, 4, 16, 16), channels-last).
    x = jax.random.normal(kx, (B, H, W, C), jnp.float32)
    params = make_params(kp, C, C)

    fwd = jax.jit(basic_block_forward)
    out = jax.block_until_ready(fwd(x, params))
    ref = jax.block_until_ready(basic_block_reference(x, params))

    assert out.shape == (B, H, W, C)
    np.testing.assert_allclose(np.asarray(out), np.asarray(ref), rtol=5e-3, atol=5e-3)
    print("KERNEL_OK")
</pallas_src>

<mosaic_0001>
module attributes {stable_mosaic.version = 11 : i64} {
  func.func @_basic_block_kernel(%arg0: i32, %arg1: memref<1x328x128xf32, #tpu.memory_space<vmem>>, %arg2: memref<3x384x128xbf16, #tpu.memory_space<vmem>>, %arg3: memref<1x128xf32, #tpu.memory_space<vmem>>, %arg4: memref<3x384x128xbf16, #tpu.memory_space<vmem>>, %arg5: memref<1x128xf32, #tpu.memory_space<vmem>>, %arg6: memref<288x1xf32, #tpu.memory_space<vmem>>, %arg7: memref<1x288x128xf32, #tpu.memory_space<vmem>>, %arg8: memref<288x384xbf16, #tpu.memory_space<vmem>>, %arg9: memref<352x128xbf16, #tpu.memory_space<vmem>>, %arg10: memref<288x128xf32, #tpu.memory_space<vmem>>) attributes {dimension_semantics = [#tpu.dimension_semantics<parallel>], iteration_bounds = array<i64: 2>, scalar_prefetch = 0 : i64, scratch_operands = 3 : i64, tpu.core_type = #tpu.core_type<tc>, window_params = [{transform_indices = @transform_0, window_bounds = array<i64: 1, 328, 128>}, {pipeline_mode = #tpu.pipeline_mode<synchronous>, transform_indices = @transform_1, window_bounds = array<i64: 3, 384, 128>}, {pipeline_mode = #tpu.pipeline_mode<synchronous>, transform_indices = @transform_2, window_bounds = array<i64: 1, 128>}, {pipeline_mode = #tpu.pipeline_mode<synchronous>, transform_indices = @transform_3, window_bounds = array<i64: 3, 384, 128>}, {pipeline_mode = #tpu.pipeline_mode<synchronous>, transform_indices = @transform_4, window_bounds = array<i64: 1, 128>}, {pipeline_mode = #tpu.pipeline_mode<synchronous>, transform_indices = @transform_5, window_bounds = array<i64: 288, 1>}, {transform_indices = @transform_6, window_bounds = array<i64: 1, 288, 128>}]} {
    %c0 = arith.constant 0 : index
    %c0_0 = arith.constant 0 : index
    %c0_1 = arith.constant 0 : index
    %0 = vector.load %arg1[%c0, %c0_0, %c0_1] : memref<1x328x128xf32, #tpu.memory_space<vmem>>, vector<1x288x128xf32>
    %1 = vector.shape_cast %0 : vector<1x288x128xf32> to vector<288x128xf32>
    %2 = arith.truncf %1 : vector<288x128xf32> to vector<288x128xbf16>
    %c0_2 = arith.constant 0 : index
    %c0_3 = arith.constant 0 : index
    %3 = vector.load %arg8[%c0_2, %c0_3] : memref<288x384xbf16, #tpu.memory_space<vmem>>, vector<288x128xbf16>
    tpu.vector_store %arg8[%c0_2, %c0_3], %2 {strides = array<i32>} : memref<288x384xbf16, #tpu.memory_space<vmem>>, vector<288x128xbf16>,
    %c0_4 = arith.constant 0 : index
    %c1 = arith.constant 1 : index
    %c0_5 = arith.constant 0 : index
    %4 = vector.load %arg1[%c0_4, %c1, %c0_5] : memref<1x328x128xf32, #tpu.memory_space<vmem>>, vector<1x288x128xf32>
    %5 = vector.shape_cast %4 : vector<1x288x128xf32> to vector<288x128xf32>
    %6 = arith.truncf %5 : vector<288x128xf32> to vector<288x128xbf16>
    %c0_6 = arith.constant 0 : index
    %c128 = arith.constant 128 : index
    %7 = vector.load %arg8[%c0_6, %c128] : memref<288x384xbf16, #tpu.memory_space<vmem>>, vector<288x128xbf16>
    tpu.vector_store %arg8[%c0_6, %c128], %6 {strides = array<i32>} : memref<288x384xbf16, #tpu.memory_space<vmem>>, vector<288x128xbf16>,
    %c0_7 = arith.constant 0 : index
    %c2 = arith.constant 2 : index
    %c0_8 = arith.constant 0 : index
    %8 = vector.load %arg1[%c0_7, %c2, %c0_8] : memref<1x328x128xf32, #tpu.memory_space<vmem>>, vector<1x288x128xf32>
    %9 = vector.shape_cast %8 : vector<1x288x128xf32> to vector<288x128xf32>
    %10 = arith.truncf %9 : vector<288x128xf32> to vector<288x128xbf16>
    %c0_9 = arith.constant 0 : index
    %c256 = arith.constant 256 : index
    %11 = vector.load %arg8[%c0_9, %c256] : memref<288x384xbf16, #tpu.memory_space<vmem>>, vector<288x128xbf16>
    tpu.vector_store %arg8[%c0_9, %c256], %10 {strides = array<i32>} : memref<288x384xbf16, #tpu.memory_space<vmem>>, vector<288x128xbf16>,
    %c0_10 = arith.constant 0 : index
    %c0_11 = arith.constant 0 : index
    %12 = vector.load %arg8[%c0_10, %c0_11] : memref<288x384xbf16, #tpu.memory_space<vmem>>, vector<288x384xbf16>
    %c0_12 = arith.constant 0 : index
    %c0_13 = arith.constant 0 : index
    %c0_14 = arith.constant 0 : index
    %13 = vector.load %arg2[%c0_12, %c0_13, %c0_14] : memref<3x384x128xbf16, #tpu.memory_space<vmem>>, vector<1x384x128xbf16>
    %14 = vector.shape_cast %13 : vector<1x384x128xbf16> to vector<384x128xbf16>
    %cst = arith.constant dense<0.000000e+00> : vector<288x128xf32>
    %15 = tpu.matmul %12, %14, %cst {dimension_numbers = #tpu.dot_dimension_numbers<[1], [0], [0], [1], [0, 0, 1, 1], [], []>} : vector<288x384xbf16>, vector<384x128xbf16>, vector<288x128xf32> -> vector<288x128xf32>
    %c0_15 = arith.constant 0 : index
    %c0_16 = arith.constant 0 : index
    %16 = vector.load %arg10[%c0_15, %c0_16] : memref<288x128xf32, #tpu.memory_space<vmem>>, vector<288x128xf32>
    tpu.vector_store %arg10[%c0_15, %c0_16], %15 {strides = array<i32>} : memref<288x128xf32, #tpu.memory_space<vmem>>, vector<288x128xf32>,
    %c0_17 = arith.constant 0 : index
    %c18 = arith.constant 18 : index
    %c0_18 = arith.constant 0 : index
    %17 = vector.load %arg1[%c0_17, %c18, %c0_18] : memref<1x328x128xf32, #tpu.memory_space<vmem>>, vector<1x288x128xf32>
    %18 = vector.shape_cast %17 : vector<1x288x128xf32> to vector<288x128xf32>
    %19 = arith.truncf %18 : vector<288x128xf32> to vector<288x128xbf16>
    %c0_19 = arith.constant 0 : index
    %c0_20 = arith.constant 0 : index
    %20 = vector.load %arg8[%c0_19, %c0_20] : memref<288x384xbf16, #tpu.memory_space<vmem>>, vector<288x128xbf16>
    tpu.vector_store %arg8[%c0_19, %c0_20], %19 {strides = array<i32>} : memref<288x384xbf16, #tpu.memory_space<vmem>>, vector<288x128xbf16>,
    %c0_21 = arith.constant 0 : index
    %c19 = arith.constant 19 : index
    %c0_22 = arith.constant 0 : index
    %21 = vector.load %arg1[%c0_21, %c19, %c0_22] : memref<1x328x128xf32, #tpu.memory_space<vmem>>, vector<1x288x128xf32>
    %22 = vector.shape_cast %21 : vector<1x288x128xf32> to vector<288x128xf32>
    %23 = arith.truncf %22 : vector<288x128xf32> to vector<288x128xbf16>
    %c0_23 = arith.constant 0 : index
    %c128_24 = arith.constant 128 : index
    %24 = vector.load %arg8[%c0_23, %c128_24] : memref<288x384xbf16, #tpu.memory_space<vmem>>, vector<288x128xbf16>
    tpu.vector_store %arg8[%c0_23, %c128_24], %23 {strides = array<i32>} : memref<288x384xbf16, #tpu.memory_space<vmem>>, vector<288x128xbf16>,
    %c0_25 = arith.constant 0 : index
    %c20 = arith.constant 20 : index
    %c0_26 = arith.constant 0 : index
    %25 = vector.load %arg1[%c0_25, %c20, %c0_26] : memref<1x328x128xf32, #tpu.memory_space<vmem>>, vector<1x288x128xf32>
    %26 = vector.shape_cast %25 : vector<1x288x128xf32> to vector<288x128xf32>
    %27 = arith.truncf %26 : vector<288x128xf32> to vector<288x128xbf16>
    %c0_27 = arith.constant 0 : index
    %c256_28 = arith.constant 256 : index
    %28 = vector.load %arg8[%c0_27, %c256_28] : memref<288x384xbf16, #tpu.memory_space<vmem>>, vector<288x128xbf16>
    tpu.vector_store %arg8[%c0_27, %c256_28], %27 {strides = array<i32>} : memref<288x384xbf16, #tpu.memory_space<vmem>>, vector<288x128xbf16>,
    %c0_29 = arith.constant 0 : index
    %c0_30 = arith.constant 0 : index
    %29 = vector.load %arg8[%c0_29, %c0_30] : memref<288x384xbf16, #tpu.memory_space<vmem>>, vector<288x384xbf16>
    %c1_31 = arith.constant 1 : index
    %c0_32 = arith.constant 0 : index
    %c0_33 = arith.constant 0 : index
    %30 = vector.load %arg2[%c1_31, %c0_32, %c0_33] : memref<3x384x128xbf16, #tpu.memory_space<vmem>>, vector<1x384x128xbf16>
    %31 = vector.shape_cast %30 : vector<1x384x128xbf16> to vector<384x128xbf16>
    %cst_34 = arith.constant dense<0.000000e+00> : vector<288x128xf32>
    %32 = tpu.matmul %29, %31, %cst_34 {dimension_numbers = #tpu.dot_dimension_numbers<[1], [0], [0], [1], [0, 0, 1, 1], [], []>} : vector<288x384xbf16>, vector<384x128xbf16>, vector<288x128xf32> -> vector<288x128xf32>
    %c0_35 = arith.constant 0 : index
    %c0_36 = arith.constant 0 : index
    %33 = vector.load %arg10[%c0_35, %c0_36] : memref<288x128xf32, #tpu.memory_space<vmem>>, vector<288x128xf32>
    %34 = arith.addf %33, %32 : vector<288x128xf32>
    %c0_37 = arith.constant 0 : index
    %c0_38 = arith.constant 0 : index
    %35 = vector.load %arg10[%c0_37, %c0_38] : memref<288x128xf32, #tpu.memory_space<vmem>>, vector<288x128xf32>
    tpu.vector_store %arg10[%c0_37, %c0_38], %34 {strides = array<i32>} : memref<288x128xf32, #tpu.memory_space<vmem>>, vector<288x128xf32>,
    %c0_39 = arith.constant 0 : index
    %c36 = arith.constant 36 : index
    %c0_40 = arith.constant 0 : index
    %36 = vector.load %arg1[%c0_39, %c36, %c0_40] : memref<1x328x128xf32, #tpu.memory_space<vmem>>, vector<1x288x128xf32>
    %37 = vector.shape_cast %36 : vector<1x288x128xf32> to vector<288x128xf32>
    %38 = arith.truncf %37 : vector<288x128xf32> to vector<288x128xbf16>
    %c0_41 = arith.constant 0 : index
    %c0_42 = arith.constant 0 : index
    %39 = vector.load %arg8[%c0_41, %c0_42] : memref<288x384xbf16, #tpu.memory_space<vmem>>, vector<288x128xbf16>
    tpu.vector_store %arg8[%c0_41, %c0_42], %38 {strides = array<i32>} : memref<288x384xbf16, #tpu.memory_space<vmem>>, vector<288x128xbf16>,
    %c0_43 = arith.constant 0 : index
    %c37 = arith.constant 37 : index
    %c0_44 = arith.constant 0 : index
    %40 = vector.load %arg1[%c0_43, %c37, %c0_44] : memref<1x328x128xf32, #tpu.memory_space<vmem>>, vector<1x288x128xf32>
    %41 = vector.shape_cast %40 : vector<1x288x128xf32> to vector<288x128xf32>
    %42 = arith.truncf %41 : vector<288x128xf32> to vector<288x128xbf16>
    %c0_45 = arith.constant 0 : index
    %c128_46 = arith.constant 128 : index
    %43 = vector.load %arg8[%c0_45, %c128_46] : memref<288x384xbf16, #tpu.memory_space<vmem>>, vector<288x128xbf16>
    tpu.vector_store %arg8[%c0_45, %c128_46], %42 {strides = array<i32>} : memref<288x384xbf16, #tpu.memory_space<vmem>>, vector<288x128xbf16>,
    %c0_47 = arith.constant 0 : index
    %c38 = arith.constant 38 : index
    %c0_48 = arith.constant 0 : index
    %44 = vector.load %arg1[%c0_47, %c38, %c0_48] : memref<1x328x128xf32, #tpu.memory_space<vmem>>, vector<1x288x128xf32>
    %45 = vector.shape_cast %44 : vector<1x288x128xf32> to vector<288x128xf32>
    %46 = arith.truncf %45 : vector<288x128xf32> to vector<288x128xbf16>
    %c0_49 = arith.constant 0 : index
    %c256_50 = arith.constant 256 : index
    %47 = vector.load %arg8[%c0_49, %c256_50] : memref<288x384xbf16, #tpu.memory_space<vmem>>, vector<288x128xbf16>
    tpu.vector_store %arg8[%c0_49, %c256_50], %46 {strides = array<i32>} : memref<288x384xbf16, #tpu.memory_space<vmem>>, vector<288x128xbf16>,
    %c0_51 = arith.constant 0 : index
    %c0_52 = arith.constant 0 : index
    %48 = vector.load %arg8[%c0_51, %c0_52] : memref<288x384xbf16, #tpu.memory_space<vmem>>, vector<288x384xbf16>
    %c2_53 = arith.constant 2 : index
    %c0_54 = arith.constant 0 : index
    %c0_55 = arith.constant 0 : index
    %49 = vector.load %arg2[%c2_53, %c0_54, %c0_55] : memref<3x384x128xbf16, #tpu.memory_space<vmem>>, vector<1x384x128xbf16>
    %50 = vector.shape_cast %49 : vector<1x384x128xbf16> to vector<384x128xbf16>
    %cst_56 = arith.constant dense<0.000000e+00> : vector<288x128xf32>
    %51 = tpu.matmul %48, %50, %cst_56 {dimension_numbers = #tpu.dot_dimension_numbers<[1], [0], [0], [1], [0, 0, 1, 1], [], []>} : vector<288x384xbf16>, vector<384x128xbf16>, vector<288x128xf32> -> vector<288x128xf32>
    %c0_57 = arith.constant 0 : index
    %c0_58 = arith.constant 0 : index
    %52 = vector.load %arg10[%c0_57, %c0_58] : memref<288x128xf32, #tpu.memory_space<vmem>>, vector<288x128xf32>
    %53 = arith.addf %52, %51 : vector<288x128xf32>
    %c0_59 = arith.constant 0 : index
    %c0_60 = arith.constant 0 : index
    %54 = vector.load %arg10[%c0_59, %c0_60] : memref<288x128xf32, #tpu.memory_space<vmem>>, vector<288x128xf32>
    tpu.vector_store %arg10[%c0_59, %c0_60], %53 {strides = array<i32>} : memref<288x128xf32, #tpu.memory_space<vmem>>, vector<288x128xf32>,
    %c0_61 = arith.constant 0 : index
    %c0_62 = arith.constant 0 : index
    %55 = vector.load %arg10[%c0_61, %c0_62] : memref<288x128xf32, #tpu.memory_space<vmem>>, vector<288x128xf32>
    %c0_63 = arith.constant 0 : index
    %c0_64 = arith.constant 0 : index
    %56 = vector.load %arg3[%c0_63, %c0_64] : memref<1x128xf32, #tpu.memory_space<vmem>>, vector<1x128xf32>
    %57 = vector.broadcast %56 : vector<1x128xf32> to vector<288x128xf32>
    %58 = arith.addf %55, %57 : vector<288x128xf32>
    %cst_65 = arith.constant 0.000000e+00 : f32
    %59 = vector.broadcast %cst_65 : f32 to vector<288x128xf32>
    %60 = arith.maximumf %58, %59 : vector<288x128xf32>
    %c0_66 = arith.constant 0 : index
    %c0_67 = arith.constant 0 : index
    %61 = vector.load %arg6[%c0_66, %c0_67] : memref<288x1xf32, #tpu.memory_space<vmem>>, vector<288x1xf32>
    %62 = vector.broadcast %61 : vector<288x1xf32> to vector<288x128xf32>
    %63 = arith.mulf %60, %62 : vector<288x128xf32>
    %cst_68 = arith.constant 0.000000e+00 : bf16
    %64 = vector.broadcast %cst_68 : bf16 to vector<32x128xbf16>
    %c0_69 = arith.constant 0 : index
    %c0_70 = arith.constant 0 : index
    %65 = vector.load %arg9[%c0_69, %c0_70] : memref<352x128xbf16, #tpu.memory_space<vmem>>, vector<32x128xbf16>
    tpu.vector_store %arg9[%c0_69, %c0_70], %64 {strides = array<i32>} : memref<352x128xbf16, #tpu.memory_space<vmem>>, vector<32x128xbf16>,
    %cst_71 = arith.constant 0.000000e+00 : bf16
    %66 = vector.broadcast %cst_71 : bf16 to vector<32x128xbf16>
    %c320 = arith.constant 320 : index
    %c0_72 = arith.constant 0 : index
    %67 = vector.load %arg9[%c320, %c0_72] : memref<352x128xbf16, #tpu.memory_space<vmem>>, vector<32x128xbf16>
    tpu.vector_store %arg9[%c320, %c0_72], %66 {strides = array<i32>} : memref<352x128xbf16, #tpu.memory_space<vmem>>, vector<32x128xbf16>,
    %68 = arith.truncf %63 : vector<288x128xf32> to vector<288x128xbf16>
    %c32 = arith.constant 32 : index
    %c0_73 = arith.constant 0 : index
    %69 = vector.load %arg9[%c32, %c0_73] : memref<352x128xbf16, #tpu.memory_space<vmem>>, vector<288x128xbf16>
    tpu.vector_store %arg9[%c32, %c0_73], %68 {strides = array<i32>} : memref<352x128xbf16, #tpu.memory_space<vmem>>, vector<288x128xbf16>,
    %c13 = arith.constant 13 : index
    %c0_74 = arith.constant 0 : index
    %70 = vector.load %arg9[%c13, %c0_74] : memref<352x128xbf16, #tpu.memory_space<vmem>>, vector<288x128xbf16>
    %c0_75 = arith.constant 0 : index
    %c0_76 = arith.constant 0 : index
    %71 = vector.load %arg8[%c0_75, %c0_76] : memref<288x384xbf16, #tpu.memory_space<vmem>>, vector<288x128xbf16>
    tpu.vector_store %arg8[%c0_75, %c0_76], %70 {strides = array<i32>} : memref<288x384xbf16, #tpu.memory_space<vmem>>, vector<288x128xbf16>,
    %c14 = arith.constant 14 : index
    %c0_77 = arith.constant 0 : index
    %72 = vector.load %arg9[%c14, %c0_77] : memref<352x128xbf16, #tpu.memory_space<vmem>>, vector<288x128xbf16>
    %c0_78 = arith.constant 0 : index
    %c128_79 = arith.constant 128 : index
    %73 = vector.load %arg8[%c0_78, %c128_79] : memref<288x384xbf16, #tpu.memory_space<vmem>>, vector<288x128xbf16>
    tpu.vector_store %arg8[%c0_78, %c128_79], %72 {strides = array<i32>} : memref<288x384xbf16, #tpu.memory_space<vmem>>, vector<288x128xbf16>,
    %c15 = arith.constant 15 : index
    %c0_80 = arith.constant 0 : index
    %74 = vector.load %arg9[%c15, %c0_80] : memref<352x128xbf16, #tpu.memory_space<vmem>>, vector<288x128xbf16>
    %c0_81 = arith.constant 0 : index
    %c256_82 = arith.constant 256 : index
    %75 = vector.load %arg8[%c0_81, %c256_82] : memref<288x384xbf16, #tpu.memory_space<vmem>>, vector<288x128xbf16>
    tpu.vector_store %arg8[%c0_81, %c256_82], %74 {strides = array<i32>} : memref<288x384xbf16, #tpu.memory_space<vmem>>, vector<288x128xbf16>,
    %c0_83 = arith.constant 0 : index
    %c0_84 = arith.constant 0 : index
    %76 = vector.load %arg8[%c0_83, %c0_84] : memref<288x384xbf16, #tpu.memory_space<vmem>>, vector<288x384xbf16>
    %c0_85 = arith.constant 0 : index
    %c0_86 = arith.constant 0 : index
    %c0_87 = arith.constant 0 : index
    %77 = vector.load %arg4[%c0_85, %c0_86, %c0_87] : memref<3x384x128xbf16, #tpu.memory_space<vmem>>, vector<1x384x128xbf16>
    %78 = vector.shape_cast %77 : vector<1x384x128xbf16> to vector<384x128xbf16>
    %cst_88 = arith.constant dense<0.000000e+00> : vector<288x128xf32>
    %79 = tpu.matmul %76, %78, %cst_88 {dimension_numbers = #tpu.dot_dimension_numbers<[1], [0], [0], [1], [0, 0, 1, 1], [], []>} : vector<288x384xbf16>, vector<384x128xbf16>, vector<288x128xf32> -> vector<288x128xf32>
    %c0_89 = arith.constant 0 : index
    %c0_90 = arith.constant 0 : index
    %80 = vector.load %arg10[%c0_89, %c0_90] : memref<288x128xf32, #tpu.memory_space<vmem>>, vector<288x128xf32>
    tpu.vector_store %arg10[%c0_89, %c0_90], %79 {strides = array<i32>} : memref<288x128xf32, #tpu.memory_space<vmem>>, vector<288x128xf32>,
    %c31 = arith.constant 31 : index
    %c0_91 = arith.constant 0 : index
    %81 = vector.load %arg9[%c31, %c0_91] : memref<352x128xbf16, #tpu.memory_space<vmem>>, vector<288x128xbf16>
    %c0_92 = arith.constant 0 : index
    %c0_93 = arith.constant 0 : index
    %82 = vector.load %arg8[%c0_92, %c0_93] : memref<288x384xbf16, #tpu.memory_space<vmem>>, vector<288x128xbf16>
    tpu.vector_store %arg8[%c0_92, %c0_93], %81 {strides = array<i32>} : memref<288x384xbf16, #tpu.memory_space<vmem>>, vector<288x128xbf16>,
    %c32_94 = arith.constant 32 : index
    %c0_95 = arith.constant 0 : index
    %83 = vector.load %arg9[%c32_94, %c0_95] : memref<352x128xbf16, #tpu.memory_space<vmem>>, vector<288x128xbf16>
    %c0_96 = arith.constant 0 : index
    %c128_97 = arith.constant 128 : index
    %84 = vector.load %arg8[%c0_96, %c128_97] : memref<288x384xbf16, #tpu.memory_space<vmem>>, vector<288x128xbf16>
    tpu.vector_store %arg8[%c0_96, %c128_97], %83 {strides = array<i32>} : memref<288x384xbf16, #tpu.memory_space<vmem>>, vector<288x128xbf16>,
    %c33 = arith.constant 33 : index
    %c0_98 = arith.constant 0 : index
    %85 = vector.load %arg9[%c33, %c0_98] : memref<352x128xbf16, #tpu.memory_space<vmem>>, vector<288x128xbf16>
    %c0_99 = arith.constant 0 : index
    %c256_100 = arith.constant 256 : index
    %86 = vector.load %arg8[%c0_99, %c256_100] : memref<288x384xbf16, #tpu.memory_space<vmem>>, vector<288x128xbf16>
    tpu.vector_store %arg8[%c0_99, %c256_100], %85 {strides = array<i32>} : memref<288x384xbf16, #tpu.memory_space<vmem>>, vector<288x128xbf16>,
    %c0_101 = arith.constant 0 : index
    %c0_102 = arith.constant 0 : index
    %87 = vector.load %arg8[%c0_101, %c0_102] : memref<288x384xbf16, #tpu.memory_space<vmem>>, vector<288x384xbf16>
    %c1_103 = arith.constant 1 : index
    %c0_104 = arith.constant 0 : index
    %c0_105 = arith.constant 0 : index
    %88 = vector.load %arg4[%c1_103, %c0_104, %c0_105] : memref<3x384x128xbf16, #tpu.memory_space<vmem>>, vector<1x384x128xbf16>
    %89 = vector.shape_cast %88 : vector<1x384x128xbf16> to vector<384x128xbf16>
    %cst_106 = arith.constant dense<0.000000e+00> : vector<288x128xf32>
    %90 = tpu.matmul %87, %89, %cst_106 {dimension_numbers = #tpu.dot_dimension_numbers<[1], [0], [0], [1], [0, 0, 1, 1], [], []>} : vector<288x384xbf16>, vector<384x128xbf16>, vector<288x128xf32> -> vector<288x128xf32>
    %c0_107 = arith.constant 0 : index
    %c0_108 = arith.constant 0 : index
    %91 = vector.load %arg10[%c0_107, %c0_108] : memref<288x128xf32, #tpu.memory_space<vmem>>, vector<288x128xf32>
    %92 = arith.addf %91, %90 : vector<288x128xf32>
    %c0_109 = arith.constant 0 : index
    %c0_110 = arith.constant 0 : index
    %93 = vector.load %arg10[%c0_109, %c0_110] : memref<288x128xf32, #tpu.memory_space<vmem>>, vector<288x128xf32>
    tpu.vector_store %arg10[%c0_109, %c0_110], %92 {strides = array<i32>} : memref<288x128xf32, #tpu.memory_space<vmem>>, vector<288x128xf32>,
    %c49 = arith.constant 49 : index
    %c0_111 = arith.constant 0 : index
    %94 = vector.load %arg9[%c49, %c0_111] : memref<352x128xbf16, #tpu.memory_space<vmem>>, vector<288x128xbf16>
    %c0_112 = arith.constant 0 : index
    %c0_113 = arith.constant 0 : index
    %95 = vector.load %arg8[%c0_112, %c0_113] : memref<288x384xbf16, #tpu.memory_space<vmem>>, vector<288x128xbf16>
    tpu.vector_store %arg8[%c0_112, %c0_113], %94 {strides = array<i32>} : memref<288x384xbf16, #tpu.memory_space<vmem>>, vector<288x128xbf16>,
    %c50 = arith.constant 50 : index
    %c0_114 = arith.constant 0 : index
    %96 = vector.load %arg9[%c50, %c0_114] : memref<352x128xbf16, #tpu.memory_space<vmem>>, vector<288x128xbf16>
    %c0_115 = arith.constant 0 : index
    %c128_116 = arith.constant 128 : index
    %97 = vector.load %arg8[%c0_115, %c128_116] : memref<288x384xbf16, #tpu.memory_space<vmem>>, vector<288x128xbf16>
    tpu.vector_store %arg8[%c0_115, %c128_116], %96 {strides = array<i32>} : memref<288x384xbf16, #tpu.memory_space<vmem>>, vector<288x128xbf16>,
    %c51 = arith.constant 51 : index
    %c0_117 = arith.constant 0 : index
    %98 = vector.load %arg9[%c51, %c0_117] : memref<352x128xbf16, #tpu.memory_space<vmem>>, vector<288x128xbf16>
    %c0_118 = arith.constant 0 : index
    %c256_119 = arith.constant 256 : index
    %99 = vector.load %arg8[%c0_118, %c256_119] : memref<288x384xbf16, #tpu.memory_space<vmem>>, vector<288x128xbf16>
    tpu.vector_store %arg8[%c0_118, %c256_119], %98 {strides = array<i32>} : memref<288x384xbf16, #tpu.memory_space<vmem>>, vector<288x128xbf16>,
    %c0_120 = arith.constant 0 : index
    %c0_121 = arith.constant 0 : index
    %100 = vector.load %arg8[%c0_120, %c0_121] : memref<288x384xbf16, #tpu.memory_space<vmem>>, vector<288x384xbf16>
    %c2_122 = arith.constant 2 : index
    %c0_123 = arith.constant 0 : index
    %c0_124 = arith.constant 0 : index
    %101 = vector.load %arg4[%c2_122, %c0_123, %c0_124] : memref<3x384x128xbf16, #tpu.memory_space<vmem>>, vector<1x384x128xbf16>
    %102 = vector.shape_cast %101 : vector<1x384x128xbf16> to vector<384x128xbf16>
    %cst_125 = arith.constant dense<0.000000e+00> : vector<288x128xf32>
    %103 = tpu.matmul %100, %102, %cst_125 {dimension_numbers = #tpu.dot_dimension_numbers<[1], [0], [0], [1], [0, 0, 1, 1], [], []>} : vector<288x384xbf16>, vector<384x128xbf16>, vector<288x128xf32> -> vector<288x128xf32>
    %c0_126 = arith.constant 0 : index
    %c0_127 = arith.constant 0 : index
    %104 = vector.load %arg10[%c0_126, %c0_127] : memref<288x128xf32, #tpu.memory_space<vmem>>, vector<288x128xf32>
    %105 = arith.addf %104, %103 : vector<288x128xf32>
    %c0_128 = arith.constant 0 : index
    %c0_129 = arith.constant 0 : index
    %106 = vector.load %arg10[%c0_128, %c0_129] : memref<288x128xf32, #tpu.memory_space<vmem>>, vector<288x128xf32>
    tpu.vector_store %arg10[%c0_128, %c0_129], %105 {strides = array<i32>} : memref<288x128xf32, #tpu.memory_space<vmem>>, vector<288x128xf32>,
    %c0_130 = arith.constant 0 : index
    %c0_131 = arith.constant 0 : index
    %107 = vector.load %arg10[%c0_130, %c0_131] : memref<288x128xf32, #tpu.memory_space<vmem>>, vector<288x128xf32>
    %c0_132 = arith.constant 0 : index
    %c0_133 = arith.constant 0 : index
    %108 = vector.load %arg5[%c0_132, %c0_133] : memref<1x128xf32, #tpu.memory_space<vmem>>, vector<1x128xf32>
    %109 = vector.broadcast %108 : vector<1x128xf32> to vector<288x128xf32>
    %110 = arith.addf %107, %109 : vector<288x128xf32>
    %cst_134 = arith.constant 0.000000e+00 : f32
    %111 = vector.broadcast %cst_134 : f32 to vector<288x128xf32>
    %112 = arith.maximumf %110, %111 : vector<288x128xf32>
    %c0_135 = arith.constant 0 : index
    %c19_136 = arith.constant 19 : index
    %c0_137 = arith.constant 0 : index
    %113 = vector.load %arg1[%c0_135, %c19_136, %c0_137] : memref<1x328x128xf32, #tpu.memory_space<vmem>>, vector<1x288x128xf32>
    %114 = vector.shape_cast %113 : vector<1x288x128xf32> to vector<288x128xf32>
    %115 = arith.addf %112, %114 : vector<288x128xf32>
    %cst_138 = arith.constant 0.000000e+00 : f32
    %116 = vector.broadcast %cst_138 : f32 to vector<288x128xf32>
    %117 = arith.maximumf %115, %116 : vector<288x128xf32>
    %c0_139 = arith.constant 0 : index
    %c0_140 = arith.constant 0 : index
    %c0_141 = arith.constant 0 : index
    %118 = vector.load %arg7[%c0_139, %c0_140, %c0_141] : memref<1x288x128xf32, #tpu.memory_space<vmem>>, vector<1x288x128xf32>
    %119 = vector.shape_cast %118 : vector<1x288x128xf32> to vector<288x128xf32>
    %120 = vector.shape_cast %117 : vector<288x128xf32> to vector<1x288x128xf32>
    tpu.vector_store %arg7[%c0_139, %c0_140, %c0_141], %120 {strides = array<i32>} : memref<1x288x128xf32, #tpu.memory_space<vmem>>, vector<1x288x128xf32>,
    return
  }
  func.func @transform_0(%arg0: i32) -> (i32, i32, i32) {
    %c0_i32 = arith.constant 0 : i32
    %c0_i32_0 = arith.constant 0 : i32
    %c0_i32_1 = arith.constant 0 : i32
    return %arg0, %c0_i32, %c0_i32_0 : i32, i32, i32
  }
  func.func @transform_1(%arg0: i32) -> (i32, i32, i32) {
    %c0_i32 = arith.constant 0 : i32
    %c0_i32_0 = arith.constant 0 : i32
    %c0_i32_1 = arith.constant 0 : i32
    %c0_i32_2 = arith.constant 0 : i32
    return %c0_i32, %c0_i32_0, %c0_i32_1 : i32, i32, i32
  }
  func.func @transform_2(%arg0: i32) -> (i32, i32) {
    %c0_i32 = arith.constant 0 : i32
    %c0_i32_0 = arith.constant 0 : i32
    %c0_i32_1 = arith.constant 0 : i32
    return %c0_i32, %c0_i32_0 : i32, i32
  }
  func.func @transform_3(%arg0: i32) -> (i32, i32, i32) {
    %c0_i32 = arith.constant 0 : i32
    %c0_i32_0 = arith.constant 0 : i32
    %c0_i32_1 = arith.constant 0 : i32
    %c0_i32_2 = arith.constant 0 : i32
    return %c0_i32, %c0_i32_0, %c0_i32_1 : i32, i32, i32
  }
  func.func @transform_4(%arg0: i32) -> (i32, i32) {
    %c0_i32 = arith.constant 0 : i32
    %c0_i32_0 = arith.constant 0 : i32
    %c0_i32_1 = arith.constant 0 : i32
    return %c0_i32, %c0_i32_0 : i32, i32
  }
  func.func @transform_5(%arg0: i32) -> (i32, i32) {
    %c0_i32 = arith.constant 0 : i32
    %c0_i32_0 = arith.constant 0 : i32
    %c0_i32_1 = arith.constant 0 : i32
    return %c0_i32, %c0_i32_0 : i32, i32
  }
  func.func @transform_6(%arg0: i32) -> (i32, i32, i32) {
    %c0_i32 = arith.constant 0 : i32
    %c0_i32_0 = arith.constant 0 : i32
    %c0_i32_1 = arith.constant 0 : i32
    return %arg0, %c0_i32, %c0_i32_0 : i32, i32, i32
  }
}

</mosaic_0001>

<bundles_post_ra>
// kernel: basic_block_forward.1
= control target key start
LH: loop header
LB: loop body
LE: loop exit
PB: predicated region body
PF: predicated region fallthrough
CT: control target
= control target key end

     0   :  { %s8277_s21 = smov 0   ;;  %s11116_s0 = inlined_call_operand.vmem [shape: f32[2,328,128], index: 0, kind: input, shape index: {}]   ;;  %s11117_s1 = inlined_call_operand.vmem [shape: bf16[3,384,128], index: 1, kind: input, shape index: {}]   ;;  %s11118_s2 = inlined_call_operand.vmem [shape: f32[1,128], index: 2, kind: input, shape index: {}]   ;;  %s11119_s3 = inlined_call_operand.vmem [shape: bf16[3,384,128], index: 3, kind: input, shape index: {}]   ;;  %s11120_s4 = inlined_call_operand.vmem [shape: f32[1,128], index: 4, kind: input, shape index: {}]   ;;  %s11121_s5 = inlined_call_operand.vmem [shape: f32[288,1], index: 5, kind: input, shape index: {}]   ;;  %s11122_s6 = inlined_call_operand.vmem [shape: f32[2,288,128], index: 6, kind: output, shape index: {}]  }
   0x1 LB: > { %s7256_s22 = sadd.s32 4294967295, %s8239_s21   ;;  %p7260_p0 = scmp.ge.s32.totalorder %s8239_s21, 1  ;;  %s8239_s21 = sphi %s8277_s21, %s16_s21  }
   0x2   : > { %p212_p1 = scmp.lt.s32.totalorder %s8239_s21, 3 }
   0x4   : > { %p213_p2 = pnand %p7260_p0, %p212_p1 }
   0x6   : > { %216 = sbr.rel (%p213_p2) target bundleno = 1102 (0x44e), region = 44 }
   0xd   : > { %v8084_v0 = vld [vmem:[%s11117_s1] sm:$0xff]   ;;  %v8241_v1 = vmov 0   ;;  %p242_p3 = scmp.lt.s32.totalorder %s7256_s22, 1  ;;  %v8086_v3 = vld [vmem:[%s11117_s1 + $0x8] sm:$0xff]   ;;  %v8089_v5 = vld [vmem:[%s11117_s1 + $0x90] sm:$0xff]   ;;  %vm3626_vm0 = vcmask 1040384  }
   0xe   : > { %715 = vmatprep.subr.bf16.mxu0 %v8241_v1  ;;  %3322 = vst [vmem:[#allocation3] sm:$0xff] %v8241_v1  ;;  %3323 = vst [vmem:[#allocation3 + $0x8] sm:$0xff] %v8241_v1  ;;  %v8085_v2 = vld [vmem:[%s11117_s1 + $0x80] sm:$0xff]   ;;  %8082 = vset.pattern.permute.xlu0 %v8241_v1  ;;  %v8087_v4 = vld [vmem:[%s11117_s1 + $0x88] sm:$0xff]   ;;  %vm3381_vm1 = vsmask.f32 1280 }
   0xf   : > { %3324 = vst [vmem:[#allocation3 + $0xa0] sm:$0xff] %v8241_v1  ;;  %3325 = vst [vmem:[#allocation3 + $0xa8] sm:$0xff] %v8241_v1  ;;  %716 = vmatpush1.bf16.msra.mxu0 %v8084_v0  ;;  %8083 = vset.pattern.permute.xlu1 %v8241_v1  ;;  %s11229_s22 = smov (!%p242_p3, %s7256_s22), 1  ;;  %v8088_v6 = vld [vmem:[%s11117_s1 + $0x10] sm:$0xff]   ;;  %v8091_v7 = vld [vmem:[%s11117_s1 + $0x98] sm:$0xff]   ;;  %vm5933_vm5 = vcmask 1046528  }
  0x10   : > { %7759 = vmatprep.subr.bf16.mxu1 %v8085_v2  ;;  %717 = vmatprep.subr.bf16.mxu0 %v8241_v1  ;;  %s8071_s13 = smul.u32 328, %s11229_s22  ;;  %v8090_v8 = vld [vmem:[%s11117_s1 + $0x18] sm:$0xff]   ;;  %v8093_v9 = vld [vmem:[%s11117_s1 + $0xa0] sm:$0xff]   ;;  %v8095_v13 = vld [vmem:[%s11117_s1 + $0xa8] sm:$0xff]   ;;  %vm3719_vm2 = vsmask.f32 256 }
  0x11   : > { %7760 = vmatpush3.bf16.msra.mxu1 %v8085_v2  ;;  %v8092_v10 = vld [vmem:[%s11117_s1 + $0x20] sm:$0xff]   ;;  %v8094_v15 = vld [vmem:[%s11117_s1 + $0x28] sm:$0xff]   ;;  %v8097_v16 = vld [vmem:[%s11117_s1 + $0xb0] sm:$0xff]   ;;  %vm4798_vm3 = vsmask.f32 7424  ;;  %s8072_s11 = smul.u32 288, %s11229_s22 }
  0x12   : > { %7761 = vmatprep.subr.bf16.mxu1 %v8087_v4  ;;  %s8328_s20 = scalar_lea.vmem %s11116_s0, %s8071_s13  ;;  %v8096_v17 = vld [vmem:[%s11117_s1 + $0x30] sm:$0xff]   ;;  %v8099_v18 = vld [vmem:[%s11117_s1 + $0xb8] sm:$0xff]   ;;  %v8100_v24 = vld [vmem:[%s11117_s1 + $0x40] sm:$0xff]   ;;  %vm6026_vm4 = vsmask.f32 6400 }
  0x13   : > { %718 = vmatpush1.bf16.msra.mxu0 %v8086_v3  ;;  %v397_v11 = vld [vmem:[%s8328_s20 + $0x2] sm:$0xff]  ;;  %v398_v12 = vld [vmem:[%s8328_s20 + $0xa] sm:$0xff]  ;;  %v8098_v19 = vld [vmem:[%s11117_s1 + $0x38] sm:$0xff]   ;;  %s10951_s13 = scalar_lea.vmem %s11122_s6, %s8072_s11 }
  0x14   : > { %719 = vmatprep.subr.bf16.mxu0 %v8241_v1  ;;  %v433_v14 = vpack.c.bf16 %v398_v12, %v397_v11  ;;  %v399_v20 = vld [vmem:[%s8328_s20 + $0x12] sm:$0xff]  ;;  %v400_v21 = vld [vmem:[%s8328_s20 + $0x1a] sm:$0xff]  ;;  %v401_v22 = vld [vmem:[%s8328_s20 + $0x22] sm:$0xff] }
  0x15   : > { %7762 = vmatpush3.bf16.msra.mxu1 %v8087_v4  ;;  %v402_v23 = vld [vmem:[%s8328_s20 + $0x2a] sm:$0xff]  ;;  %v8365_v25 = vpack.c.bf16 %v400_v21, %v399_v20  ;;  %v8103_v27 = vld [vmem:[%s11117_s1 + $0xc0] sm:$0xff]   ;;  %v403_v29 = vld [vmem:[%s8328_s20 + $0x32] sm:$0xff] }
  0x16   : > { %7763 = vmatprep.subr.bf16.mxu1 %v8089_v5  ;;  %7775 = vmatprep.mubr.bf16.mxu1 %v433_v14  ;;  %v8367_v26 = vpack.c.bf16 %v402_v23, %v401_v22  ;;  %v8101_v28 = vld [vmem:[%s11117_s1 + $0x48] sm:$0xff]   ;;  %v404_v32 = vld [vmem:[%s8328_s20 + $0x3a] sm:$0xff]  ;;  %v8102_v37 = vld [vmem:[%s11117_s1 + $0x50] sm:$0xff]  }
  0x17   : > { %720 = vmatpush1.bf16.msra.mxu0 %v8088_v6  ;;  %v325_v30 = vld [vmem:[%s8328_s20 + $0x1] sm:$0xff]  ;;  %v326_v31 = vld [vmem:[%s8328_s20 + $0x9] sm:$0xff]  ;;  %v8393_v38 = vpack.c.bf16 %v404_v32, %v403_v29  ;;  %v8104_v41 = vld [vmem:[%s11117_s1 + $0x58] sm:$0xff]  }
  0x18   : > { %721 = vmatprep.subr.bf16.mxu0 %v8241_v1  ;;  %v8105_v33 = vld [vmem:[%s11117_s1 + $0xc8] sm:$0xff]   ;;  %v361_v35 = vpack.c.bf16 %v326_v31, %v325_v30  ;;  %v8107_v40 = vld [vmem:[%s11117_s1 + $0xd0] sm:$0xff]   ;;  %v408_v43 = vld [vmem:[%s8328_s20 + $0x5a] sm:$0xff] }
  0x19   : > { %7764 = vmatpush3.bf16.msra.mxu1 %v8089_v5  ;;  %v405_v34 = vld [vmem:[%s8328_s20 + $0x42] sm:$0xff]  ;;  %v406_v36 = vld [vmem:[%s8328_s20 + $0x4a] sm:$0xff]  ;;  %v407_v42 = vld [vmem:[%s8328_s20 + $0x52] sm:$0xff] }
  0x1a   : > { %7765 = vmatprep.subr.bf16.mxu1 %v8091_v7  ;;  %747 = vmatprep.mubr.bf16.mxu0 %v361_v35  ;;  %v8395_v39 = vpack.c.bf16 %v406_v36, %v405_v34  ;;  %v8109_v44 = vld [vmem:[%s11117_s1 + $0xd8] sm:$0xff]   ;;  %v409_v45 = vld [vmem:[%s8328_s20 + $0x62] sm:$0xff]  ;;  %v410_v46 = vld [vmem:[%s8328_s20 + $0x6a] sm:$0xff]  ;;  %v8419_v48 = vpack.c.bf16 %v408_v43, %v407_v42 }
  0x1b   : > { %722 = vmatpush1.bf16.msra.mxu0 %v8090_v8  ;;  %v8106_v47 = vld [vmem:[%s11117_s1 + $0x60] sm:$0xff]   ;;  %v8421_v49 = vpack.c.bf16 %v410_v46, %v409_v45  ;;  %v8108_v51 = vld [vmem:[%s11117_s1 + $0x68] sm:$0xff]   ;;  %v411_v52 = vld [vmem:[%s8328_s20 + $0x72] sm:$0xff] }
  0x1c   : > { %723 = vmatprep.subr.bf16.mxu0 %v8241_v1  ;;  %v8111_v50 = vld [vmem:[%s11117_s1 + $0xe0] sm:$0xff]   ;;  %v8113_v54 = vld [vmem:[%s11117_s1 + $0xe8] sm:$0xff]   ;;  %v8110_v57 = vld [vmem:[%s11117_s1 + $0x70] sm:$0xff]  }
  0x1d   : > { %7766 = vmatpush3.bf16.msra.mxu1 %v8091_v7  ;;  %v412_v53 = vld [vmem:[%s8328_s20 + $0x7a] sm:$0xff]  ;;  %v413_v55 = vld [vmem:[%s8328_s20 + $0x82] sm:$0xff]  ;;  %v414_v56 = vld [vmem:[%s8328_s20 + $0x8a] sm:$0xff] }
  0x1e   : > { %7767 = vmatprep.subr.bf16.mxu1 %v8093_v9  ;;  %v8445_v58 = vpack.c.bf16 %v412_v53, %v411_v52  ;;  %v8112_v59 = vld [vmem:[%s11117_s1 + $0x78] sm:$0xff]   ;;  %v8450_v60 = vpack.c.bf16 %v414_v56, %v413_v55  ;;  %v8115_v61 = vld [vmem:[%s11117_s1 + $0xf0] sm:$0xff]   ;;  %v253_v62 = vld [vmem:[%s8328_s20] sm:$0xff] }
  0x1f   : > { %724 = vmatpush1.bf16.msra.mxu0 %v8092_v10  ;;  %v254_v63 = vld [vmem:[%s8328_s20 + $0x8] sm:$0xff]  ;;  %v8114_v0 = vld [vmem:[%s11117_s1 + $0x140] sm:$0xff]   ;;  %v415_v2 = vld [vmem:[%s8328_s20 + $0x92] sm:$0xff] }
  0x20   : > { %725 = vmatprep.subr.bf16.mxu0 %v8241_v1  ;;  %v416_v3 = vld [vmem:[%s8328_s20 + $0x9a] sm:$0xff]  ;;  %v327_v4 = vld [vmem:[%s8328_s20 + $0x11] sm:$0xff]  ;;  %v289_v7 = vpack.c.bf16 %v254_v63, %v253_v62  ;;  %v417_v8 = vld [vmem:[%s8328_s20 + $0xa2] sm:$0xff] }
  0x21   : > { %7768 = vmatpush3.bf16.msra.mxu1 %v8093_v9  ;;  %v328_v5 = vld [vmem:[%s8328_s20 + $0x19] sm:$0xff]  ;;  %v418_v9 = vld [vmem:[%s8328_s20 + $0xaa] sm:$0xff]  ;;  %v8474_v11 = vpack.c.bf16 %v416_v3, %v415_v2  ;;  %v333_v56 = vld [vmem:[%s8328_s20 + $0x41] sm:$0xff] }
  0x22   : > { %7769 = vmatprep.subr.bf16.mxu1 %v8095_v13  ;;  %v8116_v6 = vld [vmem:[%s11117_s1 + $0xf8] sm:$0xff]   ;;  %v362_v10 = vpack.c.bf16 %v328_v5, %v327_v4  ;;  %v8120_v12 = vld [vmem:[%s11117_s1 + $0x148] sm:$0xff]   ;;  %v8117_v14 = vld [vmem:[%s11117_s1 + $0x100] sm:$0xff]  }
  0x23   : > { %726 = vmatpush1.bf16.msra.mxu0 %v8094_v15  ;;  %v255_v15 = vld [vmem:[%s8328_s20 + $0x10] sm:$0xff]  ;;  %v420_v21 = vld [vmem:[%s8328_s20 + $0xba] sm:$0xff]  ;;  %v8118_v22 = vld [vmem:[%s11117_s1 + $0x108] sm:$0xff]  }
  0x24   : > { %727 = vmatprep.subr.bf16.mxu0 %v8241_v1  ;;  %v419_v20 = vld [vmem:[%s8328_s20 + $0xb2] sm:$0xff]  ;;  %v258_v34 = vld [vmem:[%s8328_s20 + $0x28] sm:$0xff] }
  0x25   : > { %7770 = vmatpush3.bf16.msra.mxu1 %v8095_v13  ;;  %v8479_v13 = vpack.c.bf16 %v418_v9, %v417_v8  ;;  %v8502_v29 = vpack.c.bf16 %v420_v21, %v419_v20  ;;  %v8127_v30 = vld [vmem:[%s11117_s1 + $0x158] sm:$0xff]   ;;  %v8119_v32 = vld [vmem:[%s11117_s1 + $0x110] sm:$0xff]   ;;  %v8131_v52 = vld [vmem:[%s11117_s1 + $0x168] sm:$0xff]  }
  0x26   : > { %7771 = vmatprep.subr.bf16.mxu1 %v8097_v16  ;;  %v423_v35 = vld [vmem:[%s8328_s20 + $0xd2] sm:$0xff]  ;;  %v426_v45 = vld [vmem:[%s8328_s20 + $0xea] sm:$0xff]  ;;  %v429_v63 = vld [vmem:[%s8328_s20 + $0x102] sm:$0xff] }
  0x27   : > { %728 = vmatpush1.bf16.msra.mxu0 %v8096_v17  ;;  %v329_v17 = vld [vmem:[%s8328_s20 + $0x21] sm:$0xff]  ;;  %v331_v36 = vld [vmem:[%s8328_s20 + $0x31] sm:$0xff] }
  0x28   : > { %729 = vmatprep.subr.bf16.mxu0 %v8241_v1  ;;  %v8121_v42 = vld [vmem:[%s11117_s1 + $0x118] sm:$0xff]   ;;  %v259_v53 = vld [vmem:[%s8328_s20 + $0x30] sm:$0xff]  ;;  %v262_v8 = vld [vmem:[%s8328_s20 + $0x48] sm:$0xff] }
  0x29   : > { %7772 = vmatpush3.bf16.msra.mxu1 %v8097_v16  ;;  %v256_v16 = vld [vmem:[%s8328_s20 + $0x18] sm:$0xff]  ;;  %v8134_v4 = vld [vmem:[%s11117_s1 + $0x170] sm:$0xff]  }
  0x2a   : > { %7773 = vmatprep.subr.bf16.mxu1 %v8099_v18  ;;  %v290_v23 = vpack.c.bf16 %v256_v16, %v255_v15  ;;  %v427_v55 = vld [vmem:[%s8328_s20 + $0xf2] sm:$0xff] }
  0x2b   : > { %730 = vmatpush1.bf16.msra.mxu0 %v8098_v19  ;;  %v8125_v19 = vld [vmem:[%s11117_s1 + $0x150] sm:$0xff]   ;;  %v8126_v15 = vld [vmem:[%s11117_s1 + $0x138] sm:$0xff]  }
  0x2c   : > { %731 = vmatprep.subr.bf16.mxu0 %v8241_v1  ;;  %v335_v9 = vld [vmem:[%s8328_s20 + $0x51] sm:$0xff] }
  0x2d   : > { %7774 = vmatpush3.bf16.msra.mxu1 %v8099_v18  ;;  %v330_v18 = vld [vmem:[%s8328_s20 + $0x29] sm:$0xff]  ;;  %v8137_v20 = vld [vmem:[%s11117_s1 + $0x178] sm:$0xff]  }
  0x2e   : > { %1568 = vmatprep.subr.bf16.mxu1 %v8241_v1 }
  0x2f   : > { %732 = vmatpush1.bf16.msra.mxu0 %v8100_v24  ;;  %v421_v24 = vld [vmem:[%s8328_s20 + $0xc2] sm:$0xff] }
  0x30   : > { %7776 = vmatmul.mubr.bf16.vlgmr.msra.gmra.mrb[0].mxu1 %v8365_v25  ;;  %733 = vmatprep.subr.bf16.mxu0 %v8241_v1 }
  0x31   : > { %7779 = vmatprep.mubr.bf16.mxu1 %v8367_v26  ;;  %1569 = vmatpush1.bf16.msra.mxu1 %v8103_v27  ;;  %v422_v27 = vld [vmem:[%s8328_s20 + $0xca] sm:$0xff] }
  0x32   : > { %1570 = vmatprep.subr.bf16.mxu1 %v8241_v1  ;;  %v8507_v31 = vpack.c.bf16 %v422_v27, %v421_v24  ;;  %v264_v24 = vld [vmem:[%s8328_s20 + $0x58] sm:$0xff]  ;;  %v337_v27 = vld [vmem:[%s8328_s20 + $0x61] sm:$0xff] }
  0x33   : > { %734 = vmatpush1.bf16.msra.mxu0 %v8101_v28  ;;  %v363_v28 = vpack.c.bf16 %v330_v18, %v329_v17  ;;  %v1177_v17 = vld [vmem:[%s8328_s20 + $0x13] sm:$0xff]  ;;  %v1178_v18 = vld [vmem:[%s8328_s20 + $0x1b] sm:$0xff] }
  0x34   : > { %735 = vmatprep.subr.bf16.mxu0 %v8241_v1 }
  0x35   : > { %1571 = vmatpush1.bf16.msra.mxu1 %v8105_v33  ;;  %v257_v33 = vld [vmem:[%s8328_s20 + $0x20] sm:$0xff] }
  0x36   : > { %1572 = vmatprep.subr.bf16.mxu1 %v8241_v1  ;;  %v291_v43 = vpack.c.bf16 %v258_v34, %v257_v33  ;;  %v1180_v33 = vld [vmem:[%s8328_s20 + $0x2b] sm:$0xff] }
  0x37   : > { %736 = vmatpush1.bf16.msra.mxu0 %v8102_v37  ;;  %v332_v37 = vld [vmem:[%s8328_s20 + $0x39] sm:$0xff] }
  0x38   : > { %7780 = vmatmul.mubr.bf16.gmra.mrb[4].mxu1 %v8393_v38  ;;  %737 = vmatprep.subr.bf16.mxu0 %v8241_v1  ;;  %v364_v46 = vpack.c.bf16 %v332_v37, %v331_v36  ;;  %v8129_v37 = vld [vmem:[%s11117_s1 + $0x180] sm:$0xff]  }
  0x39   : > { %7783 = vmatprep.mubr.bf16.mxu1 %v8395_v39  ;;  %1573 = vmatpush1.bf16.msra.mxu1 %v8107_v40  ;;  %v8128_v40 = vld [vmem:[%s11117_s1 + $0x160] sm:$0xff]  }
  0x3a   : > { %1574 = vmatprep.subr.bf16.mxu1 %v8241_v1 }
  0x3b   : > { %738 = vmatpush1.bf16.msra.mxu0 %v8104_v41  ;;  %v424_v41 = vld [vmem:[%s8328_s20 + $0xda] sm:$0xff] }
  0x3c   : > { %739 = vmatprep.subr.bf16.mxu0 %v8241_v1 }
  0x3d   : > { %1575 = vmatpush1.bf16.msra.mxu1 %v8109_v44  ;;  %v425_v44 = vld [vmem:[%s8328_s20 + $0xe2] sm:$0xff] }
  0x3e   : > { %1576 = vmatprep.subr.bf16.mxu1 %v8241_v1 }
  0x3f   : > { %740 = vmatpush1.bf16.msra.mxu0 %v8106_v47  ;;  %v8530_v47 = vpack.c.bf16 %v424_v41, %v423_v35  ;;  %v8596_v35 = vld [vmem:[%s11117_s1 + $0x200] sm:$0xff]   ;;  %v266_v41 = vld [vmem:[%s8328_s20 + $0x68] sm:$0xff] }
  0x40   : > { %7784 = vmatmul.mubr.bf16.gmra.mrb[8].mxu1 %v8419_v48  ;;  %741 = vmatprep.subr.bf16.mxu0 %v8241_v1 }
  0x41   : > { %7787 = vmatprep.mubr.bf16.mxu1 %v8421_v49  ;;  %1577 = vmatpush1.bf16.msra.mxu1 %v8111_v50  ;;  %v8122_v50 = vld [vmem:[%s11117_s1 + $0x120] sm:$0xff]  }
  0x42   : > { %1578 = vmatprep.subr.bf16.mxu1 %v8241_v1 }
  0x43   : > { %742 = vmatpush1.bf16.msra.mxu0 %v8108_v51  ;;  %v8535_v51 = vpack.c.bf16 %v426_v45, %v425_v44  ;;  %v8130_v44 = vld [vmem:[%s11117_s1 + $0x188] sm:$0xff]  }
  0x44   : > { %743 = vmatprep.subr.bf16.mxu0 %v8241_v1 }
  0x45   : > { %1579 = vmatpush1.bf16.msra.mxu1 %v8113_v54  ;;  %v260_v54 = vld [vmem:[%s8328_s20 + $0x38] sm:$0xff] }
  0x46   : > { %1580 = vmatprep.subr.bf16.mxu1 %v8241_v1  ;;  %v292_v62 = vpack.c.bf16 %v260_v54, %v259_v53  ;;  %v267_v54 = vld [vmem:[%s8328_s20 + $0x70] sm:$0xff] }
  0x47   : > { %744 = vmatpush1.bf16.msra.mxu0 %v8110_v57  ;;  %v334_v57 = vld [vmem:[%s8328_s20 + $0x49] sm:$0xff] }
  0x48   : > { %7788 = vmatmul.mubr.bf16.gmra.mrb[12].mxu1 %v8445_v58  ;;  %745 = vmatprep.subr.bf16.mxu0 %v8241_v1  ;;  %v365_v2 = vpack.c.bf16 %v334_v57, %v333_v56  ;;  %v341_v56 = vld [vmem:[%s8328_s20 + $0x81] sm:$0xff]  ;;  %v342_v57 = vld [vmem:[%s8328_s20 + $0x89] sm:$0xff] }
  0x49   : > { %7791 = vmatprep.mubr.bf16.mxu1 %v8450_v60  ;;  %1581 = vmatpush1.bf16.msra.mxu1 %v8115_v61  ;;  %v8123_v61 = vld [vmem:[%s11117_s1 + $0x128] sm:$0xff]  }
  0x4a   : > { %1582 = vmatprep.subr.bf16.mxu1 %v8241_v1 }
  0x4b   : > { %746 = vmatpush1.bf16.msra.mxu0 %v8112_v59  ;;  %v428_v59 = vld [vmem:[%s8328_s20 + $0xfa] sm:$0xff] }
  0x4c   : > { %7811 = vmatprep.subr.bf16.mxu0 %v8114_v0  ;;  %v8555_v3 = vpack.c.bf16 %v428_v59, %v427_v55  ;;  %v268_v55 = vld [vmem:[%s8328_s20 + $0x78] sm:$0xff]  ;;  %v1183_v59 = vld [vmem:[%s8328_s20 + $0x43] sm:$0xff] }
  0x4d   : > { %1583 = vmatpush1.bf16.msra.mxu1 %v8116_v6  ;;  %v8124_v6 = vld [vmem:[%s11117_s1 + $0x130] sm:$0xff]  }
  0x4e   : > { %748 = vmatmul.mubr.bf16.vlgmr.msra.gmra.mrb[0].mxu0 %v289_v7  ;;  %1584 = vmatprep.subr.bf16.mxu1 %v8241_v1  ;;  %v261_v7 = vld [vmem:[%s8328_s20 + $0x40] sm:$0xff] }
  0x4f   : > { %7812 = vmatpush3.bf16.msra.mxu0 %v8114_v0  ;;  %755 = vmatprep.mubr.bf16.mxu0 %v362_v10  ;;  %v430_v0 = vld [vmem:[%s8328_s20 + $0x10a] sm:$0xff]  ;;  %v336_v10 = vld [vmem:[%s8328_s20 + $0x59] sm:$0xff]  ;;  %v293_v16 = vpack.c.bf16 %v262_v8, %v261_v7 }
  0x50   : > { %7792 = vmatmul.mubr.bf16.gmra.mrb[16].mxu1 %v8474_v11  ;;  %7813 = vmatprep.subr.bf16.mxu0 %v8120_v12  ;;  %v8560_v5 = vpack.c.bf16 %v430_v0, %v429_v63  ;;  %v1184_v63 = vld [vmem:[%s8328_s20 + $0x4b] sm:$0xff]  ;;  %v369_v0 = vpack.c.bf16 %v342_v57, %v341_v56  ;;  %v344_v8 = vld [vmem:[%s8328_s20 + $0x99] sm:$0xff] }
  0x51   : > { %7795 = vmatprep.mubr.bf16.mxu1 %v8479_v13  ;;  %1585 = vmatpush1.bf16.msra.mxu1 %v8117_v14  ;;  %v432_v14 = vld [vmem:[%s8328_s20 + $0x11a] sm:$0xff]  ;;  %v343_v7 = vld [vmem:[%s8328_s20 + $0x91] sm:$0xff] }
  0x52   : > { %1586 = vmatprep.subr.bf16.mxu1 %v8241_v1  ;;  %v277_v57 = vld [vmem:[%s8328_s20 + $0xc0] sm:$0xff] }
  0x53   : > { %7814 = vmatpush3.bf16.msra.mxu0 %v8120_v12  ;;  %v431_v12 = vld [vmem:[%s8328_s20 + $0x112] sm:$0xff] }
  0x54   : > { %7815 = vmatprep.subr.bf16.mxu0 %v8125_v19  ;;  %v8583_v21 = vpack.c.bf16 %v432_v14, %v431_v12  ;;  %v1185_v12 = vld [vmem:[%s8328_s20 + $0x53] sm:$0xff]  ;;  %v1186_v14 = vld [vmem:[%s8328_s20 + $0x5b] sm:$0xff] }
  0x55   : > { %1587 = vmatpush1.bf16.msra.mxu1 %v8118_v22  ;;  %v1213_v22 = vpack.c.bf16 %v1178_v18, %v1177_v17  ;;  %v1217_v17 = vpack.c.bf16 %v1186_v14, %v1185_v12  ;;  %v272_v18 = vld [vmem:[%s8328_s20 + $0x98] sm:$0xff]  ;;  %v354_v12 = vld [vmem:[%s8328_s20 + $0xe9] sm:$0xff] }
  0x56   : > { %756 = vmatmul.mubr.bf16.gmra.mrb[4].mxu0 %v290_v23  ;;  %1588 = vmatprep.subr.bf16.mxu1 %v8241_v1  ;;  %v263_v23 = vld [vmem:[%s8328_s20 + $0x50] sm:$0xff]  ;;  %v8152_v14 = vld [vmem:[%s11117_s1 + $0x1f8] sm:$0xff]  }
  0x57   : > { %763 = vmatprep.mubr.bf16.mxu0 %v363_v28  ;;  %7816 = vmatpush3.bf16.msra.mxu0 %v8125_v19  ;;  %v366_v19 = vpack.c.bf16 %v336_v10, %v335_v9  ;;  %v338_v28 = vld [vmem:[%s8328_s20 + $0x69] sm:$0xff] }
  0x58   : > { %7796 = vmatmul.mubr.bf16.gmra.mrb[20].mxu1 %v8502_v29  ;;  %7817 = vmatprep.subr.bf16.mxu0 %v8127_v30  ;;  %v367_v34 = vpack.c.bf16 %v338_v28, %v337_v27  ;;  %v8136_v9 = vld [vmem:[%s11117_s1 + $0x1a8] sm:$0xff]  }
  0x59   : > { %7799 = vmatprep.mubr.bf16.mxu1 %v8507_v31  ;;  %1589 = vmatpush1.bf16.msra.mxu1 %v8119_v32  ;;  %v1179_v32 = vld [vmem:[%s8328_s20 + $0x23] sm:$0xff] }
  0x5a   : > { %1590 = vmatprep.subr.bf16.mxu1 %v8241_v1  ;;  %v1214_v36 = vpack.c.bf16 %v1180_v33, %v1179_v32  ;;  %v274_v32 = vld [vmem:[%s8328_s20 + $0xa8] sm:$0xff] }
  0x5b   : > { %7818 = vmatpush3.bf16.msra.mxu0 %v8127_v30  ;;  %v294_v30 = vpack.c.bf16 %v264_v24, %v263_v23  ;;  %v1188_v23 = vld [vmem:[%s8328_s20 + $0x6b] sm:$0xff]  ;;  %v8139_v24 = vld [vmem:[%s11117_s1 + $0x1b8] sm:$0xff]  }
  0x5c   : > { %7819 = vmatprep.subr.bf16.mxu0 %v8128_v40 }
  0x5d   : > { %1591 = vmatpush1.bf16.msra.mxu1 %v8121_v42  ;;  %v339_v42 = vld [vmem:[%s8328_s20 + $0x71] sm:$0xff] }
  0x5e   : > { %764 = vmatmul.mubr.bf16.gmra.mrb[8].mxu0 %v291_v43  ;;  %1592 = vmatprep.subr.bf16.mxu1 %v8241_v1  ;;  %v340_v43 = vld [vmem:[%s8328_s20 + $0x79] sm:$0xff] }
  0x5f   : > { %771 = vmatprep.mubr.bf16.mxu0 %v364_v46  ;;  %7820 = vmatpush3.bf16.msra.mxu0 %v8128_v40  ;;  %v265_v40 = vld [vmem:[%s8328_s20 + $0x60] sm:$0xff]  ;;  %v1181_v46 = vld [vmem:[%s8328_s20 + $0x33] sm:$0xff] }
  0x60   : > { %7800 = vmatmul.mubr.bf16.gmra.mrb[24].mxu1 %v8530_v47  ;;  %7821 = vmatprep.subr.bf16.mxu0 %v8131_v52  ;;  %v295_v45 = vpack.c.bf16 %v266_v41, %v265_v40  ;;  %v1190_v40 = vld [vmem:[%s8328_s20 + $0x7b] sm:$0xff]  ;;  %v8143_v41 = vld [vmem:[%s11117_s1 + $0x1c8] sm:$0xff]  }
  0x61   : > { %7803 = vmatprep.mubr.bf16.mxu1 %v8535_v51  ;;  %1593 = vmatpush1.bf16.msra.mxu1 %v8122_v50  ;;  %v1182_v50 = vld [vmem:[%s8328_s20 + $0x3b] sm:$0xff] }
  0x62   : > { %1594 = vmatprep.subr.bf16.mxu1 %v8241_v1  ;;  %v1215_v53 = vpack.c.bf16 %v1182_v50, %v1181_v46  ;;  %v349_v50 = vld [vmem:[%s8328_s20 + $0xc1] sm:$0xff] }
  0x63   : > { %7822 = vmatpush3.bf16.msra.mxu0 %v8131_v52  ;;  %v368_v52 = vpack.c.bf16 %v340_v43, %v339_v42 }
  0x64   : > { %7823 = vmatprep.subr.bf16.mxu0 %v8134_v4 }
  0x65   : > { %1595 = vmatpush1.bf16.msra.mxu1 %v8123_v61  ;;  %v8133_v61 = vld [vmem:[%s11117_s1 + $0x198] sm:$0xff]  }
  0x66   : > { %772 = vmatmul.mubr.bf16.gmra.mrb[12].mxu0 %v292_v62  ;;  %1596 = vmatprep.subr.bf16.mxu1 %v8241_v1  ;;  %v296_v62 = vpack.c.bf16 %v268_v55, %v267_v54  ;;  %v1192_v54 = vld [vmem:[%s8328_s20 + $0x8b] sm:$0xff] }
  0x67   : > { %779 = vmatprep.mubr.bf16.mxu0 %v365_v2  ;;  %7824 = vmatpush3.bf16.msra.mxu0 %v8134_v4  ;;  %v269_v2 = vld [vmem:[%s8328_s20 + $0x80] sm:$0xff]  ;;  %v1216_v4 = vpack.c.bf16 %v1184_v63, %v1183_v59  ;;  %v278_v59 = vld [vmem:[%s8328_s20 + $0xc8] sm:$0xff] }
  0x68   : > { %7804 = vmatmul.mubr.bf16.gmra.mrb[28].mxu1 %v8555_v3  ;;  %7825 = vmatprep.subr.bf16.mxu0 %v8137_v20  ;;  %v352_v63 = vld [vmem:[%s8328_s20 + $0xd9] sm:$0xff] }
  0x69   : > { %7807 = vmatprep.mubr.bf16.mxu1 %v8560_v5  ;;  %1597 = vmatpush1.bf16.msra.mxu1 %v8124_v6  ;;  %v270_v6 = vld [vmem:[%s8328_s20 + $0x88] sm:$0xff] }
  0x6a   : > { %1598 = vmatprep.subr.bf16.mxu1 %v8241_v1  ;;  %v297_v10 = vpack.c.bf16 %v270_v6, %v269_v2  ;;  %v1193_v2 = vld [vmem:[%s8328_s20 + $0x93] sm:$0xff] }
  0x6b   : > { %7826 = vmatpush3.bf16.msra.mxu0 %v8137_v20  ;;  %v346_v20 = vld [vmem:[%s8328_s20 + $0xa9] sm:$0xff] }
  0x6c   : > { %7863 = vmatprep.subr.bf16.mxu0 %v8596_v35 }
  0x6d   : > { %1599 = vmatpush1.bf16.msra.mxu1 %v8126_v15  ;;  %v370_v15 = vpack.c.bf16 %v344_v8, %v343_v7  ;;  %v279_v7 = vld [vmem:[%s8328_s20 + $0xd0] sm:$0xff]  ;;  %v280_v8 = vld [vmem:[%s8328_s20 + $0xd8] sm:$0xff] }
  0x6e   : > { %780 = vmatmul.mubr.bf16.gmra.mrb[16].mxu0 %v293_v16  ;;  %2493 = vmatprep.subr.bf16.mxu1 %v8241_v1  ;;  %v271_v16 = vld [vmem:[%s8328_s20 + $0x90] sm:$0xff] }
  0x6f   : > { %787 = vmatprep.mubr.bf16.mxu0 %v366_v19  ;;  %v345_v19 = vld [vmem:[%s8328_s20 + $0xa1] sm:$0xff]  ;;  %v298_v27 = vpack.c.bf16 %v272_v18, %v271_v16  ;;  %v1196_v16 = vld [vmem:[%s8328_s20 + $0xab] sm:$0xff] }
  0x70   : > { %7808 = vmatmul.mubr.bf16.gmra.mrb[32].mxu1 %v8583_v21  ;;  %v371_v28 = vpack.c.bf16 %v346_v20, %v345_v19  ;;  %v281_v18 = vld [vmem:[%s8328_s20 + $0xe0] sm:$0xff]  ;;  %v282_v19 = vld [vmem:[%s8328_s20 + $0xe8] sm:$0xff] }
  0x71   : > { %1600 = vmatprep.mubr.bf16.mxu1 %v1213_v22  ;;  %v1187_v22 = vld [vmem:[%s8328_s20 + $0x63] sm:$0xff] }
  0x72   : > { %v1218_v33 = vpack.c.bf16 %v1188_v23, %v1187_v22  ;;  %v355_v22 = vld [vmem:[%s8328_s20 + $0xf1] sm:$0xff] }
  0x73   : > { %v1197_v23 = vld [vmem:[%s8328_s20 + $0xb3] sm:$0xff] }
  0x76   : > { %788 = vmatmul.mubr.bf16.gmra.mrb[20].mxu0 %v294_v30  ;;  %v273_v30 = vld [vmem:[%s8328_s20 + $0xa0] sm:$0xff] }
  0x77   : > { %795 = vmatprep.mubr.bf16.mxu0 %v367_v34  ;;  %v8663_v34 = vld [vmem:[#allocation3] sm:$0xff]  ;;  %v299_v42 = vpack.c.bf16 %v274_v32, %v273_v30  ;;  %v283_v30 = vld [vmem:[%s8328_s20 + $0xf0] sm:$0xff]  ;;  %v284_v32 = vld [vmem:[%s8328_s20 + $0xf8] sm:$0xff] }
  0x78   : > { %1601 = vmatmul.mubr.bf16.vlgmr.msra.gmra.mrb[36].mxu1 %v8365_v25  ;;  %v8132_v25 = vld [vmem:[%s11117_s1 + $0x190] sm:$0xff]  }
  0x79   : > { %1608 = vmatprep.mubr.bf16.mxu1 %v1214_v36  ;;  %2494 = vmatpush1.bf16.msra.mxu1 %v8129_v37  ;;  %v348_v36 = vld [vmem:[%s8328_s20 + $0xb9] sm:$0xff] }
  0x7a   : > { %2495 = vmatprep.subr.bf16.mxu1 %v8241_v1  ;;  %v1189_v37 = vld [vmem:[%s8328_s20 + $0x73] sm:$0xff] }
  0x7b   : > { %v1219_v46 = vpack.c.bf16 %v1190_v40, %v1189_v37  ;;  %v1200_v37 = vld [vmem:[%s8328_s20 + $0xcb] sm:$0xff] }
  0x7c   : > { %v3071_v40 = vld [vmem:[%s11121_s5 + $0x8] sm:$0xff] }
  0x7d   : > { %2496 = vmatpush1.bf16.msra.mxu1 %v8130_v44  ;;  %v275_v44 = vld [vmem:[%s8328_s20 + $0xb0] sm:$0xff] }
  0x7e   : > { %796 = vmatmul.mubr.bf16.gmra.mrb[24].mxu0 %v295_v45  ;;  %2497 = vmatprep.subr.bf16.mxu1 %v8241_v1  ;;  %v276_v45 = vld [vmem:[%s8328_s20 + $0xb8] sm:$0xff] }
  0x7f   : > { %803 = vmatprep.mubr.bf16.mxu0 %v368_v52  ;;  %v350_v52 = vld [vmem:[%s8328_s20 + $0xc9] sm:$0xff]  ;;  %v300_v55 = vpack.c.bf16 %v276_v45, %v275_v44 }
  0x80   : > { %1609 = vmatmul.mubr.bf16.gmra.mrb[40].mxu1 %v8367_v26  ;;  %v8135_v26 = vld [vmem:[%s11117_s1 + $0x1a0] sm:$0xff]   ;;  %v373_v56 = vpack.c.bf16 %v350_v52, %v349_v50  ;;  %v286_v44 = vld [vmem:[%s8328_s20 + $0x108] sm:$0xff]  ;;  %v1201_v52 = vld [vmem:[%s8328_s20 + $0xd3] sm:$0xff] }
  0x81   : > { %1616 = vmatprep.mubr.bf16.mxu1 %v1215_v53  ;;  %2498 = vmatpush1.bf16.msra.mxu1 %v8132_v25  ;;  %v8146_v53 = vld [vmem:[%s11117_s1 + $0x1d8] sm:$0xff]   ;;  %v1191_v25 = vld [vmem:[%s8328_s20 + $0x83] sm:$0xff] }
  0x82   : > { %2499 = vmatprep.subr.bf16.mxu1 %v8241_v1  ;;  %v360_v50 = vld [vmem:[%s8328_s20 + $0x119] sm:$0xff] }
  0x85   : > { %2500 = vmatpush1.bf16.msra.mxu1 %v8133_v61  ;;  %v1220_v61 = vpack.c.bf16 %v1192_v54, %v1191_v25  ;;  %v3073_v25 = vld [vmem:[%s11121_s5 + $0x18] sm:$0xff]  ;;  %v3076_v54 = vld [vmem:[%s11121_s5 + $0x30] sm:$0xff] }
  0x86   : > { %804 = vmatmul.mubr.bf16.gmra.mrb[28].mxu0 %v296_v62  ;;  %2501 = vmatprep.subr.bf16.mxu1 %v8241_v1  ;;  %v8147_v62 = vld [vmem:[%s11117_s1 + $0x1e0] sm:$0xff]  }
  0x87   : > { %811 = vmatprep.mubr.bf16.mxu0 %v369_v0  ;;  %v8149_v0 = vld [vmem:[%s11117_s1 + $0x1e8] sm:$0xff]  }
  0x88   : > { %1617 = vmatmul.mubr.bf16.gmra.mrb[44].mxu1 %v8393_v38  ;;  %v8138_v38 = vld [vmem:[%s11117_s1 + $0x1b0] sm:$0xff]  }
  0x89   : > { %1624 = vmatprep.mubr.bf16.mxu1 %v1216_v4  ;;  %2502 = vmatpush1.bf16.msra.mxu1 %v8135_v26  ;;  %v1194_v4 = vld [vmem:[%s8328_s20 + $0x9b] sm:$0xff]  ;;  %v301_v26 = vpack.c.bf16 %v278_v59, %v277_v57  ;;  %v287_v59 = vld [vmem:[%s8328_s20 + $0x110] sm:$0xff] }
  0x8a   : > { %2503 = vmatprep.subr.bf16.mxu1 %v8241_v1  ;;  %v3078_v57 = vld [vmem:[%s11121_s5 + $0x40] sm:$0xff] }
  0x8d   : > { %2504 = vmatpush1.bf16.msra.mxu1 %v8136_v9  ;;  %v1221_v9 = vpack.c.bf16 %v1194_v4, %v1193_v2  ;;  %v3080_v2 = vld [vmem:[%s11121_s5 + $0x50] sm:$0xff] }
  0x8e   : > { %812 = vmatmul.mubr.bf16.gmra.mrb[32].mxu0 %v297_v10  ;;  %2505 = vmatprep.subr.bf16.mxu1 %v8241_v1  ;;  %v8150_v10 = vld [vmem:[%s11117_s1 + $0x1f0] sm:$0xff]  }
  0x8f   : > { %819 = vmatprep.mubr.bf16.mxu0 %v370_v15  ;;  %v1195_v15 = vld [vmem:[%s8328_s20 + $0xa3] sm:$0xff] }
  0x90   : > { %1625 = vmatmul.mubr.bf16.gmra.mrb[48].mxu1 %v8395_v39  ;;  %v8141_v39 = vld [vmem:[%s11117_s1 + $0x1c0] sm:$0xff]   ;;  %v1222_v20 = vpack.c.bf16 %v1196_v16, %v1195_v15  ;;  %v3081_v15 = vld [vmem:[%s11121_s5 + $0x58] sm:$0xff]  ;;  %v3084_v16 = vld [vmem:[%s11121_s5 + $0x70] sm:$0xff] }
  0x91   : > { %1632 = vmatprep.mubr.bf16.mxu1 %v1217_v17  ;;  %2506 = vmatpush1.bf16.msra.mxu1 %v8138_v38  ;;  %v302_v17 = vpack.c.bf16 %v280_v8, %v279_v7  ;;  %v3082_v8 = vld [vmem:[%s11121_s5 + $0x60] sm:$0xff] }
  0x92   : > { %2507 = vmatprep.subr.bf16.mxu1 %v8241_v1  ;;  %v347_v1 = vld [vmem:[%s8328_s20 + $0xb1] sm:$0xff] }
  0x93   : > { %v372_v43 = vpack.c.bf16 %v348_v36, %v347_v1  ;;  %v357_v1 = vld [vmem:[%s8328_s20 + $0x101] sm:$0xff] }
  0x94   : > { %v1199_v36 = vld [vmem:[%s8328_s20 + $0xc3] sm:$0xff] }
  0x95   : > { %2508 = vmatpush1.bf16.msra.mxu1 %v8139_v24  ;;  %v1198_v24 = vld [vmem:[%s8328_s20 + $0xbb] sm:$0xff]  ;;  %v1224_v45 = vpack.c.bf16 %v1200_v37, %v1199_v36  ;;  %v3087_v36 = vld [vmem:[%s11121_s5 + $0x88] sm:$0xff] }
  0x96   : > { %820 = vmatmul.mubr.bf16.gmra.mrb[36].mxu0 %v298_v27  ;;  %2509 = vmatprep.subr.bf16.mxu1 %v8663_v34  ;;  %v303_v27 = vpack.c.bf16 %v282_v19, %v281_v18  ;;  %v1206_v18 = vld [vmem:[%s8328_s20 + $0xfb] sm:$0xff]  ;;  %v8142_v19 = vld [vmem:[%s11117_s1 + $0x208] sm:$0xff]  }
  0x97   : > { %827 = vmatprep.mubr.bf16.mxu0 %v371_v28 }
  0x98   : > { %1633 = vmatmul.mubr.bf16.gmra.mrb[52].mxu1 %v8419_v48  ;;  %v8144_v48 = vld [vmem:[%s11117_s1 + $0x1d0] sm:$0xff]  }
  0x99   : > { %1640 = vmatprep.mubr.bf16.mxu1 %v1218_v33  ;;  %2510 = vmatpush1.bf16.msra.mxu1 %v8141_v39  ;;  %v3070_v39 = vld [vmem:[%s11121_s5] sm:$0xff]  ;;  %v1223_v33 = vpack.c.bf16 %v1198_v24, %v1197_v23  ;;  %v1256_v24 = vld [vmem:[%s8328_s20 + $0x4c] sm:$0xff] }
  0x9a   : > { %2511 = vmatprep.subr.bf16.mxu1 %v8663_v34  ;;  %3108 = vperm.xlu0 %8082, %v3070_v39   ;;  %v1255_v23 = vld [vmem:[%s8328_s20 + $0x44] sm:$0xff]  ;;  %v8145_v39 = vld [vmem:[%s11117_s1 + $0x210] sm:$0xff]  }
  0x9d   : > { %2512 = vmatpush1.bf16.msra.mxu1 %v8143_v41  ;;  %v304_v41 = vpack.c.bf16 %v284_v32, %v283_v30  ;;  %v3085_v30 = vld [vmem:[%s11121_s5 + $0x78] sm:$0xff]  ;;  %v1207_v32 = vld [vmem:[%s8328_s20 + $0x103] sm:$0xff] }
  0x9e   : > { %828 = vmatmul.mubr.bf16.gmra.mrb[40].mxu0 %v299_v42  ;;  %2513 = vmatprep.subr.bf16.mxu1 %v8663_v34 }
  0x9f   : > { %835 = vmatprep.mubr.bf16.mxu0 %v372_v43  ;;  %3113 = vperm.xlu0 %8082, %v3071_v40   ;;  %v3072_v43 = vld [vmem:[%s11121_s5 + $0x10] sm:$0xff]  ;;  %v3090_v40 = vld [vmem:[%s11121_s5 + $0xa0] sm:$0xff] }
  0xa0   : > { %1641 = vmatmul.mubr.bf16.gmra.mrb[56].mxu1 %v8421_v49  ;;  %v351_v49 = vld [vmem:[%s8328_s20 + $0xd1] sm:$0xff]  ;;  %3118 = vperm.xlu1 %8083, %v3072_v43  }
  0xa1   : > { %1648 = vmatprep.mubr.bf16.mxu1 %v1219_v46  ;;  %2514 = vmatpush1.bf16.msra.mxu1 %v8144_v48  ;;  %v374_v6 = vpack.c.bf16 %v352_v63, %v351_v49  ;;  %v285_v48 = vld [vmem:[%s8328_s20 + $0x100] sm:$0xff]  ;;  %v359_v46 = vld [vmem:[%s8328_s20 + $0x111] sm:$0xff] }
  0xa2   : > { %2515 = vmatprep.subr.bf16.mxu1 %v8663_v34  ;;  %v1249_v49 = vld [vmem:[%s8328_s20 + $0x14] sm:$0xff]  ;;  %v1250_v63 = vld [vmem:[%s8328_s20 + $0x1c] sm:$0xff] }
  0xa3   : > { %v1285_v7 = vpack.c.bf16 %v1250_v63, %v1249_v49  ;;  %v1261_v43 = vld [vmem:[%s8328_s20 + $0x74] sm:$0xff]  ;;  %v1211_v63 = vld [vmem:[%s8328_s20 + $0x123] sm:$0xff] }
  0xa4   : > { %3123 = vperm.xlu1 %8083, %v3073_v25   ;;  %v3091_v25 = vld [vmem:[%s11121_s5 + $0xa8] sm:$0xff] }
  0xa5   : > { %2516 = vmatpush1.bf16.msra.mxu1 %v8146_v53  ;;  %v1202_v53 = vld [vmem:[%s8328_s20 + $0xdb] sm:$0xff] }
  0xa6   : > { %836 = vmatmul.mubr.bf16.gmra.mrb[44].mxu0 %v300_v55  ;;  %2517 = vmatprep.subr.bf16.mxu1 %v8663_v34  ;;  %v305_v55 = vpack.c.bf16 %v286_v44, %v285_v48  ;;  %v8151_v48 = vld [vmem:[%s11117_s1 + $0x220] sm:$0xff]   ;;  %v3089_v44 = vld [vmem:[%s11121_s5 + $0x98] sm:$0xff] }
  0xa7   : > { %843 = vmatprep.mubr.bf16.mxu0 %v373_v56  ;;  %v378_v56 = vpack.c.bf16 %v360_v50, %v359_v46  ;;  %v1209_v46 = vld [vmem:[%s8328_s20 + $0x113] sm:$0xff]  ;;  %v1210_v50 = vld [vmem:[%s8328_s20 + $0x11b] sm:$0xff] }
  0xa8   : > { %1649 = vmatmul.mubr.bf16.gmra.mrb[60].mxu1 %v8445_v58  ;;  %v353_v58 = vld [vmem:[%s8328_s20 + $0xe1] sm:$0xff] }
  0xa9   : > { %1656 = vmatprep.mubr.bf16.mxu1 %v1220_v61  ;;  %2518 = vmatpush1.bf16.msra.mxu1 %v8147_v62  ;;  %v375_v38 = vpack.c.bf16 %v354_v12, %v353_v58  ;;  %v288_v61 = vld [vmem:[%s8328_s20 + $0x118] sm:$0xff]  ;;  %v1225_v62 = vpack.c.bf16 %v1202_v53, %v1201_v52  ;;  %v1252_v58 = vld [vmem:[%s8328_s20 + $0x2c] sm:$0xff] }
  0xaa   : > { %2519 = vmatprep.subr.bf16.mxu1 %v8663_v34  ;;  %v306_v4 = vpack.c.bf16 %v288_v61, %v287_v59  ;;  %v1253_v12 = vld [vmem:[%s8328_s20 + $0x34] sm:$0xff]  ;;  %v8153_v53 = vld [vmem:[%s11117_s1 + $0x228] sm:$0xff]   ;;  %v1266_v59 = vld [vmem:[%s8328_s20 + $0x9c] sm:$0xff] }
  0xab   : > { %v8154_v61 = vld [vmem:[%s11117_s1 + $0x230] sm:$0xff]  }
  0xad   : > { %2520 = vmatpush1.bf16.msra.mxu1 %v8149_v0  ;;  %v3077_v0 = vld [vmem:[%s11121_s5 + $0x38] sm:$0xff] }
  0xae   : > { %844 = vmatmul.mubr.bf16.gmra.mrb[48].mxu0 %v301_v26  ;;  %2521 = vmatprep.subr.bf16.mxu1 %v8663_v34  ;;  %v1203_v26 = vld [vmem:[%s8328_s20 + $0xe3] sm:$0xff] }
  0xaf   : > { %851 = vmatprep.mubr.bf16.mxu0 %v374_v6  ;;  %v1204_v6 = vld [vmem:[%s8328_s20 + $0xeb] sm:$0xff] }
  0xb0   : > { %1657 = vmatmul.mubr.bf16.gmra.mrb[64].mxu1 %v8450_v60  ;;  %v356_v60 = vld [vmem:[%s8328_s20 + $0xf9] sm:$0xff] }
  0xb1   : > { %1664 = vmatprep.mubr.bf16.mxu1 %v1221_v9  ;;  %2522 = vmatpush1.bf16.msra.mxu1 %v8150_v10  ;;  %v376_v28 = vpack.c.bf16 %v356_v60, %v355_v22  ;;  %v1226_v9 = vpack.c.bf16 %v1204_v6, %v1203_v26  ;;  %v1251_v10 = vld [vmem:[%s8328_s20 + $0x24] sm:$0xff] }
  0xb2   : > { %2523 = vmatprep.subr.bf16.mxu1 %v8663_v34  ;;  %v3086_v60 = vld [vmem:[%s11121_s5 + $0x80] sm:$0xff]  ;;  %v3095_v26 = vld [vmem:[%s11121_s5 + $0xc8] sm:$0xff] }
  0xb5   : > { %2524 = vmatpush1.bf16.msra.mxu1 %v8152_v14  ;;  %v1254_v14 = vld [vmem:[%s8328_s20 + $0x3c] sm:$0xff] }
  0xb6   : > { %852 = vmatmul.mubr.bf16.gmra.mrb[52].mxu0 %v302_v17  ;;  %v8795_v17 = vpack.c.bf16 %v1252_v58, %v1251_v10  ;;  %v1270_v10 = vld [vmem:[%s8328_s20 + $0xbc] sm:$0xff] }
  0xb7   : > { %859 = vmatprep.mubr.bf16.mxu0 %v375_v38  ;;  %v1205_v38 = vld [vmem:[%s8328_s20 + $0xf3] sm:$0xff]  ;;  %v1139_v58 = vld [vmem:[%s8328_s20 + $0x122] sm:$0xff] }
  0xb8   : > { %1665 = vmatmul.mubr.bf16.gmra.mrb[68].mxu1 %v8474_v11  ;;  %v358_v11 = vld [vmem:[%s8328_s20 + $0x109] sm:$0xff]  ;;  %v1227_v22 = vpack.c.bf16 %v1206_v18, %v1205_v38 }
  0xb9   : > { %1672 = vmatprep.mubr.bf16.mxu1 %v1222_v20  ;;  %v377_v42 = vpack.c.bf16 %v358_v11, %v357_v1  ;;  %v3083_v20 = vld [vmem:[%s11121_s5 + $0x68] sm:$0xff]  ;;  %v8148_v11 = vld [vmem:[%s11117_s1 + $0x218] sm:$0xff]  }
  0xba   : > { %v2103_v38 = vld [vmem:[%s8328_s20 + $0x2d] sm:$0xff] }
  0xbe   : > { %860 = vmatmul.mubr.bf16.gmra.mrb[56].mxu0 %v303_v27  ;;  %v1257_v27 = vld [vmem:[%s8328_s20 + $0x54] sm:$0xff] }
  0xbf   : > { %867 = vmatprep.mubr.bf16.mxu0 %v376_v28  ;;  %v1258_v28 = vld [vmem:[%s8328_s20 + $0x5c] sm:$0xff] }
  0xc0   : > { %1673 = vmatmul.mubr.bf16.gmra.mrb[72].mxu1 %v8479_v13  ;;  %v3074_v13 = vld [vmem:[%s11121_s5 + $0x20] sm:$0xff]  ;;  %v8831_v1 = vpack.c.bf16 %v1258_v28, %v1257_v27  ;;  %v1273_v27 = vld [vmem:[%s8328_s20 + $0xd4] sm:$0xff] }
  0xc1   : > { %1680 = vmatprep.mubr.bf16.mxu1 %v1223_v33  ;;  %3128 = vperm.xlu0 %8082, %v3074_v13   ;;  %v1208_v33 = vld [vmem:[%s8328_s20 + $0x10b] sm:$0xff]  ;;  %v1262_v13 = vld [vmem:[%s8328_s20 + $0x7c] sm:$0xff] }
  0xc2   : > { %v1228_v37 = vpack.c.bf16 %v1208_v33, %v1207_v32  ;;  %v8862_v52 = vpack.c.bf16 %v1262_v13, %v1261_v43  ;;  %v1274_v28 = vld [vmem:[%s8328_s20 + $0xdc] sm:$0xff]  ;;  %v3104_v33 = vld [vmem:[%s11121_s5 + $0x110] sm:$0xff]  ;;  %v1275_v43 = vld [vmem:[%s8328_s20 + $0xe4] sm:$0xff] }
  0xc3   : > { %v2105_v32 = vld [vmem:[%s8328_s20 + $0x3d] sm:$0xff]  ;;  %v1276_v13 = vld [vmem:[%s8328_s20 + $0xec] sm:$0xff] }
  0xc5   : > { %3138 = vperm.xlu0 %8082, %v3076_v54   ;;  %v1229_v54 = vpack.c.bf16 %v1210_v50, %v1209_v46  ;;  %v3105_v46 = vld [vmem:[%s11121_s5 + $0x118] sm:$0xff]  ;;  %v8971_v50 = vpack.c.bf16 %v1276_v13, %v1275_v43 }
  0xc6   : > { %868 = vmatmul.mubr.bf16.gmra.mrb[60].mxu0 %v304_v41  ;;  %v1259_v41 = vld [vmem:[%s8328_s20 + $0x64] sm:$0xff] }
  0xc7   : > { %875 = vmatprep.mubr.bf16.mxu0 %v377_v42  ;;  %v1260_v42 = vld [vmem:[%s8328_s20 + $0x6c] sm:$0xff] }
  0xc8   : > { %1681 = vmatmul.mubr.bf16.gmra.mrb[76].mxu1 %v8502_v29  ;;  %v3075_v29 = vld [vmem:[%s11121_s5 + $0x28] sm:$0xff] }
  0xc9   : > { %1688 = vmatprep.mubr.bf16.mxu1 %v1224_v45  ;;  %3133 = vperm.xlu1 %8083, %v3075_v29   ;;  %v8855_v45 = vpack.c.bf16 %v1260_v42, %v1259_v41  ;;  %v1264_v29 = vld [vmem:[%s8328_s20 + $0x8c] sm:$0xff] }
  0xca   : > { %3148 = vperm.xlu0 %8082, %v3078_v57   ;;  %v1265_v57 = vld [vmem:[%s8328_s20 + $0x94] sm:$0xff] }
  0xcd   : > { %3143 = vperm.xlu1 %8083, %v3077_v0   ;;  %v1212_v0 = vld [vmem:[%s8328_s20 + $0x12b] sm:$0xff] }
  0xce   : > { %876 = vmatmul.mubr.bf16.gmra.mrb[64].mxu0 %v305_v55  ;;  %3158 = vperm.xlu0 %8082, %v3080_v2   ;;  %v3094_v55 = vld [vmem:[%s11121_s5 + $0xc0] sm:$0xff]  ;;  %v8893_v2 = vpack.c.bf16 %v1266_v59, %v1265_v57  ;;  %v1230_v6 = vpack.c.bf16 %v1212_v0, %v1211_v63  ;;  %v1280_v59 = vld [vmem:[%s8328_s20 + $0x10c] sm:$0xff]  ;;  %v2108_v0 = vld [vmem:[%s8328_s20 + $0x55] sm:$0xff] }
  0xcf   : > { %883 = vmatprep.mubr.bf16.mxu0 %v378_v56  ;;  %v1263_v56 = vld [vmem:[%s8328_s20 + $0x84] sm:$0xff] }
  0xd0   : > { %1689 = vmatmul.mubr.bf16.gmra.mrb[80].mxu1 %v8507_v31  ;;  %v3079_v31 = vld [vmem:[%s11121_s5 + $0x48] sm:$0xff]  ;;  %v8886_v49 = vpack.c.bf16 %v1264_v29, %v1263_v56 }
  0xd1   : > { %1696 = vmatprep.mubr.bf16.mxu1 %v1225_v62  ;;  %3153 = vperm.xlu1 %8083, %v3079_v31   ;;  %v3093_v62 = vld [vmem:[%s11121_s5 + $0xb8] sm:$0xff]  ;;  %v1267_v31 = vld [vmem:[%s8328_s20 + $0xa4] sm:$0xff] }
  0xd2   : > { %3168 = vperm.xlu0 %8082, %v3082_v8   ;;  %v1268_v8 = vld [vmem:[%s8328_s20 + $0xac] sm:$0xff]  ;;  %v1279_v57 = vld [vmem:[%s8328_s20 + $0x104] sm:$0xff] }
  0xd3   : > { %v8992_v63 = vpack.c.bf16 %v1280_v59, %v1279_v57  ;;  %v2182_v57 = vld [vmem:[%s8328_s20 + $0x66] sm:$0xff]  ;;  %v2183_v59 = vld [vmem:[%s8328_s20 + $0x6e] sm:$0xff] }
  0xd5   : > { %3163 = vperm.xlu1 %8083, %v3081_v15   ;;  %v8916_v15 = vpack.c.bf16 %v1268_v8, %v1267_v31  ;;  %v1283_v8 = vld [vmem:[%s8328_s20 + $0x124] sm:$0xff] }
  0xd6   : > { %884 = vmatmul.mubr.bf16.gmra.mrb[68].mxu0 %v306_v4  ;;  %3178 = vperm.xlu0 %8082, %v3084_v16   ;;  %v8155_v4 = vld [vmem:[%s11117_s1 + $0x238] sm:$0xff]   ;;  %v2102_v16 = vld [vmem:[%s8328_s20 + $0x25] sm:$0xff] }
  0xd7   : > { %7827 = vmatprep.mubr.bf16.mxu0 %v1285_v7  ;;  %v3098_v7 = vld [vmem:[%s11121_s5 + $0xe0] sm:$0xff] }
  0xd8   : > { %1697 = vmatmul.mubr.bf16.gmra.mrb[84].mxu1 %v8530_v47  ;;  %v8799_v47 = vpack.c.bf16 %v1254_v14, %v1253_v12  ;;  %v1140_v12 = vld [vmem:[%s8328_s20 + $0x12a] sm:$0xff]  ;;  %v3097_v14 = vld [vmem:[%s11121_s5 + $0xd8] sm:$0xff] }
  0xd9   : > { %1704 = vmatprep.mubr.bf16.mxu1 %v1226_v9  ;;  %3173 = vperm.xlu1 %8083, %v3083_v20   ;;  %v1269_v9 = vld [vmem:[%s8328_s20 + $0xb4] sm:$0xff]  ;;  %v3099_v20 = vld [vmem:[%s11121_s5 + $0xe8] sm:$0xff] }
  0xda   : > { %3188 = vperm.xlu0 %8082, %v3086_v60   ;;  %v8923_v18 = vpack.c.bf16 %v1270_v10, %v1269_v9  ;;  %v3102_v60 = vld [vmem:[%s11121_s5 + $0x100] sm:$0xff]  ;;  %v1284_v9 = vld [vmem:[%s8328_s20 + $0x12c] sm:$0xff] }
  0xdb   : > { %v2174_v10 = vld [vmem:[%s8328_s20 + $0x26] sm:$0xff] }
  0xdd   : > { %3183 = vperm.xlu1 %8083, %v3085_v30   ;;  %v2104_v30 = vld [vmem:[%s8328_s20 + $0x35] sm:$0xff] }
  0xde   : > { %7828 = vmatmul.mubr.bf16.vlgmr.msra.gmra.mrb[72].mxu0 %v8795_v17 }
  0xdf   : > { %7864 = vmatpush3.bf16.msra.mxu0 %v8596_v35  ;;  %7831 = vmatprep.mubr.bf16.mxu0 %v8799_v47  ;;  %v8824_v35 = vpack.c.bf16 %v1256_v24, %v1255_v23  ;;  %v1271_v23 = vld [vmem:[%s8328_s20 + $0xc4] sm:$0xff]  ;;  %v1272_v24 = vld [vmem:[%s8328_s20 + $0xcc] sm:$0xff] }
  0xe0   : > { %1705 = vmatmul.mubr.bf16.gmra.mrb[88].mxu1 %v8535_v51  ;;  %7865 = vmatprep.subr.bf16.mxu0 %v8142_v19  ;;  %v3088_v51 = vld [vmem:[%s11121_s5 + $0x90] sm:$0xff] }
  0xe1   : > { %1712 = vmatprep.mubr.bf16.mxu1 %v1227_v22  ;;  %3198 = vperm.xlu0 %8082, %v3088_v51   ;;  %v2138_v22 = vpack.c.bf16 %v2103_v38, %v2102_v16  ;;  %v8948_v51 = vpack.c.bf16 %v1274_v28, %v1273_v27  ;;  %v2111_v16 = vld [vmem:[%s8328_s20 + $0x6d] sm:$0xff] }
  0xe2   : > { %3193 = vperm.xlu1 %8083, %v3087_v36   ;;  %v2179_v27 = vld [vmem:[%s8328_s20 + $0x4e] sm:$0xff] }
  0xe3   : > { %7866 = vmatpush3.bf16.msra.mxu0 %v8142_v19  ;;  %v1158_v19 = vpack.c.bf16 %v1140_v12, %v1139_v58  ;;  %v2175_v58 = vld [vmem:[%s8328_s20 + $0x2e] sm:$0xff]  ;;  %v9013_v12 = vpack.c.bf16 %v1284_v9, %v1283_v8  ;;  %v2214_v9 = vpack.c.bf16 %v2183_v59, %v2182_v57  ;;  %v2188_v57 = vld [vmem:[%s8328_s20 + $0x96] sm:$0xff]  ;;  %v2189_v59 = vld [vmem:[%s8328_s20 + $0x9e] sm:$0xff] }
  0xe4   : > { %7867 = vmatprep.subr.bf16.mxu0 %v8145_v39  ;;  %v2210_v38 = vpack.c.bf16 %v2175_v58, %v2174_v10 }
  0xe5   : > { %3208 = vperm.xlu0 %8082, %v3090_v40   ;;  %v2139_v40 = vpack.c.bf16 %v2105_v32, %v2104_v30 }
  0xe6   : > { %7832 = vmatmul.mubr.bf16.gmra.mrb[76].mxu0 %v8824_v35  ;;  %3203 = vperm.xlu1 %8083, %v3089_v44   ;;  %v1278_v44 = vld [vmem:[%s8328_s20 + $0xfc] sm:$0xff] }
  0xe7   : > { %7835 = vmatprep.mubr.bf16.mxu0 %v8831_v1  ;;  %7868 = vmatpush3.bf16.msra.mxu0 %v8145_v39  ;;  %v8941_v39 = vpack.c.bf16 %v1272_v24, %v1271_v23  ;;  %v2177_v23 = vld [vmem:[%s8328_s20 + $0x3e] sm:$0xff]  ;;  %v2178_v24 = vld [vmem:[%s8328_s20 + $0x46] sm:$0xff] }
  0xe8   : > { %1713 = vmatmul.mubr.bf16.gmra.mrb[92].mxu1 %v8555_v3  ;;  %7869 = vmatprep.subr.bf16.mxu0 %v8148_v11  ;;  %v3092_v3 = vld [vmem:[%s11121_s5 + $0xb0] sm:$0xff]  ;;  %v2212_v43 = vpack.c.bf16 %v2179_v27, %v2178_v24 }
  0xe9   : > { %1720 = vmatprep.mubr.bf16.mxu1 %v1228_v37  ;;  %3218 = vperm.xlu0 %8082, %v3092_v3   ;;  %v3103_v37 = vld [vmem:[%s11121_s5 + $0x108] sm:$0xff] }
  0xea   : > { %3213 = vperm.xlu1 %8083, %v3091_v25   ;;  %v2106_v3 = vld [vmem:[%s8328_s20 + $0x45] sm:$0xff]  ;;  %v2187_v24 = vld [vmem:[%s8328_s20 + $0x8e] sm:$0xff] }
  0xeb   : > { %7870 = vmatpush3.bf16.msra.mxu0 %v8148_v11 }
  0xec   : > { %7871 = vmatprep.subr.bf16.mxu0 %v8151_v48 }
  0xed   : > { %3228 = vperm.xlu0 %8082, %v3094_v55  }
  0xee   : > { %7836 = vmatmul.mubr.bf16.gmra.mrb[80].mxu0 %v8855_v45  ;;  %3223 = vperm.xlu1 %8083, %v3093_v62   ;;  %v1282_v62 = vld [vmem:[%s8328_s20 + $0x11c] sm:$0xff] }
  0xef   : > { %7839 = vmatprep.mubr.bf16.mxu0 %v8862_v52  ;;  %7872 = vmatpush3.bf16.msra.mxu0 %v8151_v48  ;;  %v1277_v48 = vld [vmem:[%s8328_s20 + $0xf4] sm:$0xff] }
  0xf0   : > { %1721 = vmatmul.mubr.bf16.gmra.mrb[96].mxu1 %v8560_v5  ;;  %7873 = vmatprep.subr.bf16.mxu0 %v8153_v53  ;;  %v3096_v5 = vld [vmem:[%s11121_s5 + $0xd0] sm:$0xff]  ;;  %v8975_v25 = vpack.c.bf16 %v1278_v44, %v1277_v48 }
  0xf1   : > { %1728 = vmatprep.mubr.bf16.mxu1 %v1229_v54  ;;  %3238 = vperm.xlu0 %8082, %v3096_v5   ;;  %v2109_v5 = vld [vmem:[%s8328_s20 + $0x5d] sm:$0xff] }
  0xf2   : > { %3233 = vperm.xlu1 %8083, %v3095_v26  }
  0xf3   : > { %7874 = vmatpush3.bf16.msra.mxu0 %v8153_v53  ;;  %v2107_v53 = vld [vmem:[%s8328_s20 + $0x4d] sm:$0xff] }
  0xf4   : > { %7875 = vmatprep.subr.bf16.mxu0 %v8154_v61  ;;  %v2140_v55 = vpack.c.bf16 %v2107_v53, %v2106_v3  ;;  %v2180_v53 = vld [vmem:[%s8328_s20 + $0x56] sm:$0xff] }
  0xf5   : > { %3248 = vperm.xlu0 %8082, %v3098_v7   ;;  %v2141_v7 = vpack.c.bf16 %v2109_v5, %v2108_v0  ;;  %v2114_v5 = vld [vmem:[%s8328_s20 + $0x85] sm:$0xff] }
  0xf6   : > { %7840 = vmatmul.mubr.bf16.gmra.mrb[84].mxu0 %v8886_v49  ;;  %3243 = vperm.xlu1 %8083, %v3097_v14   ;;  %v2110_v14 = vld [vmem:[%s8328_s20 + $0x65] sm:$0xff] }
  0xf7   : > { %7843 = vmatprep.mubr.bf16.mxu0 %v8893_v2  ;;  %7876 = vmatpush3.bf16.msra.mxu0 %v8154_v61  ;;  %v1281_v61 = vld [vmem:[%s8328_s20 + $0x114] sm:$0xff] }
  0xf8   : > { %1729 = vmatmul.mubr.bf16.gmra.mrb[100].mxu1 %v8583_v21  ;;  %7877 = vmatprep.subr.bf16.mxu0 %v8155_v4  ;;  %v3100_v21 = vld [vmem:[%s11121_s5 + $0xf0] sm:$0xff] }
  0xf9   : > { %1736 = vmatprep.mubr.bf16.mxu1 %v1230_v6  ;;  %3258 = vperm.xlu0 %8082, %v3100_v21  }
  0xfa   : > { %3253 = vperm.xlu1 %8083, %v3099_v20   ;;  %v2142_v20 = vpack.c.bf16 %v2111_v16, %v2110_v14 }
  0xfb   : > { %7878 = vmatpush3.bf16.msra.mxu0 %v8155_v4  ;;  %v8996_v4 = vpack.c.bf16 %v1282_v62, %v1281_v61 }
  0xfc   : > { %4150 = vmatprep.subr.bf16.mxu0 %v8663_v34  ;;  %v3101_v34 = vld [vmem:[%s11121_s5 + $0xf8] sm:$0xff] }
  0xfd   : > { %3268 = vperm.xlu0 %8082, %v3102_v60   ;;  %v2176_v60 = vld [vmem:[%s8328_s20 + $0x36] sm:$0xff] }
  0xfe   : > { %7844 = vmatmul.mubr.bf16.gmra.mrb[88].mxu0 %v8916_v15  ;;  %3263 = vperm.xlu1 %8083, %v3101_v34   ;;  %v2211_v32 = vpack.c.bf16 %v2177_v23, %v2176_v60  ;;  %v2185_v60 = vld [vmem:[%s8328_s20 + $0x7e] sm:$0xff]  ;;  %v2186_v23 = vld [vmem:[%s8328_s20 + $0x86] sm:$0xff] }
  0xff   : > { %7847 = vmatprep.mubr.bf16.mxu0 %v8923_v18 }
 0x100   : > { %1737 = vmatmul.mubr.bf16.gmra.mrb[104].mxu1 %v1158_v19 }
 0x101   : > { %2525 = vmatprep.mubr.bf16.mxu1 %v2138_v22  ;;  %3278 = vperm.xlu0 %8082, %v3104_v33   ;;  %v2112_v33 = vld [vmem:[%s8328_s20 + $0x75] sm:$0xff] }
 0x102   : > { %3273 = vperm.xlu1 %8083, %v3103_v37   ;;  %v2113_v37 = vld [vmem:[%s8328_s20 + $0x7d] sm:$0xff] }
 0x103   : > { %v8950_v11 = vpop.f32.mrb[0].mxu1 }
 0x104   : > { %v8952_v36 = vpop.f32.mrb[1].mxu1 }
 0x105   : > { %v8957_v41 = vpop.f32.mrb[2].mxu1 }
 0x106   : > { %7848 = vmatmul.mubr.bf16.gmra.mrb[92].mxu0 %v8941_v39  ;;  %v8960_v42 = vpop.f32.mrb[3].mxu1  ;;  %3283 = vperm.xlu1 %8083, %v3105_v46  }
 0x107   : > { %7851 = vmatprep.mubr.bf16.mxu0 %v8948_v51 }
 0x108   : > { %2526 = vmatmul.mubr.bf16.vlgmr.msra.gmra.mrb[108].mxu1 %v8795_v17 }
 0x109   : > { %2533 = vmatprep.mubr.bf16.mxu1 %v2139_v40 }
 0x10b   : > { %v8977_v17 = vpop.f32.mrb[4].mxu1 }
 0x10c   : > { %v8979_v54 = vpop.f32.mrb[5].mxu1 }
 0x10d   : > { %v8981_v56 = vpop.f32.mrb[6].mxu1 }
 0x10e   : > { %7852 = vmatmul.mubr.bf16.gmra.mrb[96].mxu0 %v8971_v50  ;;  %v8984_v29 = vpop.f32.mrb[7].mxu1 }
 0x10f   : > { %7855 = vmatprep.mubr.bf16.mxu0 %v8975_v25 }
 0x110   : > { %2534 = vmatmul.mubr.bf16.gmra.mrb[112].mxu1 %v8799_v47 }
 0x111   : > { %2541 = vmatprep.mubr.bf16.mxu1 %v2140_v55  ;;  %v2181_v55 = vld [vmem:[%s8328_s20 + $0x5e] sm:$0xff] }
 0x112   : > { %v2213_v0 = vpack.c.bf16 %v2181_v55, %v2180_v53 }
 0x113   : > { %v8998_v26 = vpop.f32.mrb[8].mxu1 }
 0x114   : > { %v9000_v6 = vpop.f32.mrb[9].mxu1 }
 0x115   : > { %v9002_v47 = vpop.f32.mrb[10].mxu1 }
 0x116   : > { %7856 = vmatmul.mubr.bf16.gmra.mrb[100].mxu0 %v8992_v63  ;;  %v9005_v31 = vpop.f32.mrb[11].mxu1 }
 0x117   : > { %7859 = vmatprep.mubr.bf16.mxu0 %v8996_v4 }
 0x118   : > { %2542 = vmatmul.mubr.bf16.gmra.mrb[116].mxu1 %v8824_v35 }
 0x119   : > { %2549 = vmatprep.mubr.bf16.mxu1 %v2141_v7  ;;  %v2115_v7 = vld [vmem:[%s8328_s20 + $0x8d] sm:$0xff] }
 0x11b   : > { %v9017_v21 = vpop.f32.mrb[12].mxu1 }
 0x11c   : > { %v9019_v19 = vpop.f32.mrb[13].mxu1 }
 0x11d   : > { %v9021_v22 = vpop.f32.mrb[14].mxu1 }
 0x11e   : > { %7860 = vmatmul.mubr.bf16.gmra.mrb[104].mxu0 %v9013_v12  ;;  %v9024_v35 = vpop.f32.mrb[15].mxu1 }
 0x11f   : > { %7879 = vmatprep.mubr.bf16.mxu0 %v2210_v38 }
 0x120   : > { %2550 = vmatmul.mubr.bf16.gmra.mrb[120].mxu1 %v8831_v1 }
 0x121   : > { %v749_v28 = vpop.f32.mrb[0].mxu0  ;;  %2557 = vmatprep.mubr.bf16.mxu1 %v2142_v20  ;;  %v2184_v20 = vld [vmem:[%s8328_s20 + $0x76] sm:$0xff] }
 0x122   : > { %v9032_v34 = vadd.f32 %v8952_v36, %v749_v28  ;;  %v751_v30 = vpop.f32.mrb[1].mxu0  ;;  %v2143_v36 = vpack.c.bf16 %v2113_v37, %v2112_v33  ;;  %v2117_v33 = vld [vmem:[%s8328_s20 + $0x9d] sm:$0xff] }
 0x123   : > { %v752_v40 = vpop.f32.mrb[2].mxu0  ;;  %v9036_v13 = vpop.f32.mrb[16].mxu1  ;;  %v2215_v30 = vpack.c.bf16 %v2185_v60, %v2184_v20 }
 0x124   : > { %v9039_v1 = vadd.f32 %v8960_v42, %v752_v40  ;;  %v754_v48 = vpop.f32.mrb[3].mxu0  ;;  %v9041_v44 = vpop.f32.mrb[17].mxu1  ;;  %v2216_v40 = vpack.c.bf16 %v2187_v24, %v2186_v23 }
 0x125   : > { %v9043_v46 = vpop.f32.mrb[18].mxu1 }
 0x126   : > { %7880 = vmatmul.mubr.bf16.vlgmr.msra.gmra.mrb[108].mxu0 %v2211_v32  ;;  %v9045_v3 = vpop.f32.mrb[19].mxu1  ;;  %v2116_v32 = vld [vmem:[%s8328_s20 + $0x95] sm:$0xff] }
 0x127   : > { %7883 = vmatprep.mubr.bf16.mxu0 %v2212_v43 }
 0x128   : > { %2558 = vmatmul.mubr.bf16.gmra.mrb[124].mxu1 %v8855_v45 }
 0x129   : > { %v757_v42 = vpop.f32.mrb[4].mxu0  ;;  %2565 = vmatprep.mubr.bf16.mxu1 %v2143_v36 }
 0x12a   : > { %v9053_v61 = vadd.f32 %v8950_v11, %v757_v42  ;;  %v759_v62 = vpop.f32.mrb[5].mxu0  ;;  %v2144_v11 = vpack.c.bf16 %v2115_v7, %v2114_v5  ;;  %v2190_v42 = vld [vmem:[%s8328_s20 + $0xa6] sm:$0xff]  ;;  %v2217_v7 = vpack.c.bf16 %v2189_v59, %v2188_v57  ;;  %v2121_v57 = vld [vmem:[%s8328_s20 + $0xbd] sm:$0xff] }
 0x12b   : > { %v760_v8 = vpop.f32.mrb[6].mxu0  ;;  %v9057_v10 = vpop.f32.mrb[20].mxu1  ;;  %v2191_v62 = vld [vmem:[%s8328_s20 + $0xae] sm:$0xff] }
 0x12c   : > { %v9060_v45 = vadd.f32 %v8957_v41, %v760_v8  ;;  %v762_v58 = vpop.f32.mrb[7].mxu0  ;;  %v9062_v14 = vpop.f32.mrb[21].mxu1  ;;  %v2118_v8 = vld [vmem:[%s8328_s20 + $0xa5] sm:$0xff] }
 0x12d   : > { %v9064_v16 = vpop.f32.mrb[22].mxu1 }
 0x12e   : > { %7884 = vmatmul.mubr.bf16.gmra.mrb[112].mxu0 %v2213_v0  ;;  %v9066_v38 = vpop.f32.mrb[23].mxu1 }
 0x12f   : > { %7887 = vmatprep.mubr.bf16.mxu0 %v2214_v9  ;;  %v2119_v9 = vld [vmem:[%s8328_s20 + $0xad] sm:$0xff] }
 0x130   : > { %2566 = vmatmul.mubr.bf16.gmra.mrb[128].mxu1 %v8862_v52 }
 0x131   : > { %v765_v41 = vpop.f32.mrb[8].mxu0  ;;  %2573 = vmatprep.mubr.bf16.mxu1 %v2144_v11  ;;  %v2218_v11 = vpack.c.bf16 %v2191_v62, %v2190_v42 }
 0x132   : > { %v9074_v27 = vadd.f32 %v8979_v54, %v765_v41  ;;  %v767_v28 = vpop.f32.mrb[9].mxu0  ;;  %v2145_v54 = vpack.c.bf16 %v2117_v33, %v2116_v32  ;;  %v2194_v32 = vld [vmem:[%s8328_s20 + $0xc6] sm:$0xff]  ;;  %v2195_v33 = vld [vmem:[%s8328_s20 + $0xce] sm:$0xff] }
 0x133   : > { %v768_v37 = vpop.f32.mrb[10].mxu0  ;;  %v9078_v43 = vpop.f32.mrb[24].mxu1  ;;  %v2192_v28 = vld [vmem:[%s8328_s20 + $0xb6] sm:$0xff]  ;;  %v2220_v42 = vpack.c.bf16 %v2195_v33, %v2194_v32  ;;  %v8158_v32 = vld [vmem:[%s11119_s3 + $0x8] sm:$0xff]  }
 0x134   : > { %v9081_v52 = vadd.f32 %v8984_v29, %v768_v37  ;;  %v770_v48 = vpop.f32.mrb[11].mxu0  ;;  %v9083_v36 = vpop.f32.mrb[25].mxu1 }
 0x135   : > { %v9085_v53 = vpop.f32.mrb[26].mxu1 }
 0x136   : > { %7888 = vmatmul.mubr.bf16.gmra.mrb[116].mxu0 %v2215_v30  ;;  %v9087_v55 = vpop.f32.mrb[27].mxu1  ;;  %v2193_v30 = vld [vmem:[%s8328_s20 + $0xbe] sm:$0xff] }
 0x137   : > { %7891 = vmatprep.mubr.bf16.mxu0 %v2216_v40  ;;  %v2219_v48 = vpack.c.bf16 %v2193_v30, %v2192_v28  ;;  %v9142_v28 = vld [vmem:[#allocation3] sm:$0xff] }
 0x138   : > { %2574 = vmatmul.mubr.bf16.gmra.mrb[132].mxu1 %v8886_v49  ;;  %11144 = vst [vmem:[#allocation5_spill] sm:$0xff] %v9142_v28 }
 0x139   : > { %v773_v29 = vpop.f32.mrb[12].mxu0  ;;  %2581 = vmatprep.mubr.bf16.mxu1 %v2145_v54  ;;  %v2120_v54 = vld [vmem:[%s8328_s20 + $0xb5] sm:$0xff] }
 0x13a   : > { %v9095_v0 = vadd.f32 %v8977_v17, %v773_v29  ;;  %v775_v5 = vpop.f32.mrb[13].mxu0  ;;  %v2146_v17 = vpack.c.bf16 %v2119_v9, %v2118_v8  ;;  %v8157_v8 = vld [vmem:[%s11119_s3] sm:$0xff]  }
 0x13b   : > { %v776_v58 = vpop.f32.mrb[14].mxu0  ;;  %v9099_v20 = vpop.f32.mrb[28].mxu1  ;;  %4151 = vmatpush1.bf16.msra.mxu0 %v8157_v8 }
 0x13c   : > { %v9102_v49 = vadd.f32 %v8981_v56, %v776_v58  ;;  %v778_v60 = vpop.f32.mrb[15].mxu0  ;;  %v9104_v23 = vpop.f32.mrb[29].mxu1  ;;  %v2196_v58 = vld [vmem:[%s8328_s20 + $0xd6] sm:$0xff]  ;;  %4152 = vmatprep.subr.bf16.mxu0 %v9142_v28 }
 0x13d   : > { %v9106_v24 = vpop.f32.mrb[30].mxu1  ;;  %v2198_v60 = vld [vmem:[%s8328_s20 + $0xe6] sm:$0xff] }
 0x13e   : > { %7892 = vmatmul.mubr.bf16.gmra.mrb[120].mxu0 %v2217_v7  ;;  %v9108_v41 = vpop.f32.mrb[31].mxu1 }
 0x13f   : > { %7895 = vmatprep.mubr.bf16.mxu0 %v2218_v11  ;;  %v2197_v11 = vld [vmem:[%s8328_s20 + $0xde] sm:$0xff]  ;;  %4153 = vmatpush1.bf16.msra.mxu0 %v8158_v32 }
 0x140   : > { %2582 = vmatmul.mubr.bf16.gmra.mrb[136].mxu1 %v8893_v2  ;;  %4154 = vmatprep.subr.bf16.mxu0 %v9142_v28  ;;  %v8160_v32 = vld [vmem:[%s11119_s3 + $0x18] sm:$0xff]  }
 0x141   : > { %v781_v56 = vpop.f32.mrb[16].mxu0  ;;  %2589 = vmatprep.mubr.bf16.mxu1 %v2146_v17  ;;  %v2199_v17 = vld [vmem:[%s8328_s20 + $0xee] sm:$0xff] }
 0x142   : > { %v9116_v37 = vadd.f32 %v9000_v6, %v781_v56  ;;  %v783_v40 = vpop.f32.mrb[17].mxu0  ;;  %v2147_v6 = vpack.c.bf16 %v2121_v57, %v2120_v54  ;;  %v2222_v57 = vpack.c.bf16 %v2199_v17, %v2198_v60  ;;  %v2201_v60 = vld [vmem:[%s8328_s20 + $0xfe] sm:$0xff]  ;;  %v2203_v17 = vld [vmem:[%s8328_s20 + $0x10e] sm:$0xff] }
 0x143   : > { %v784_v59 = vpop.f32.mrb[18].mxu0  ;;  %v9120_v62 = vpop.f32.mrb[32].mxu1  ;;  %v2122_v40 = vld [vmem:[%s8328_s20 + $0xc5] sm:$0xff] }
 0x144   : > { %v9123_v2 = vadd.f32 %v9005_v31, %v784_v59  ;;  %v786_v29 = vpop.f32.mrb[19].mxu0  ;;  %v9125_v5 = vpop.f32.mrb[33].mxu1  ;;  %v8156_v31 = vld [vmem:[%s11119_s3 + $0x80] sm:$0xff]  }
 0x145   : > { %v9127_v7 = vpop.f32.mrb[34].mxu1  ;;  %7915 = vmatprep.subr.bf16.mxu1 %v8156_v31 }
 0x146   : > { %7896 = vmatmul.mubr.bf16.gmra.mrb[124].mxu0 %v2219_v48  ;;  %v9132_v9 = vpop.f32.mrb[35].mxu1  ;;  %v2123_v48 = vld [vmem:[%s8328_s20 + $0xcd] sm:$0xff]  ;;  %7916 = vmatpush3.bf16.msra.mxu1 %v8156_v31  ;;  %v2200_v31 = vld [vmem:[%s8328_s20 + $0xf6] sm:$0xff] }
 0x147   : > { %7899 = vmatprep.mubr.bf16.mxu0 %v2220_v42 }
 0x148   : > { %2590 = vmatmul.mubr.bf16.gmra.mrb[140].mxu1 %v8916_v15  ;;  %v2221_v15 = vpack.c.bf16 %v2197_v11, %v2196_v58  ;;  %v8159_v58 = vld [vmem:[%s11119_s3 + $0x10] sm:$0xff]  }
 0x149   : > { %v789_v30 = vpop.f32.mrb[20].mxu0  ;;  %2597 = vmatprep.mubr.bf16.mxu1 %v2147_v6  ;;  %v2148_v6 = vpack.c.bf16 %v2123_v48, %v2122_v40  ;;  %4155 = vmatpush1.bf16.msra.mxu0 %v8159_v58  ;;  %v2124_v48 = vld [vmem:[%s8328_s20 + $0xd5] sm:$0xff] }
 0x14a   : > { %v9149_v33 = vadd.f32 %v8998_v26, %v789_v30  ;;  %v791_v56 = vpop.f32.mrb[21].mxu0  ;;  %4156 = vmatprep.subr.bf16.mxu0 %v9142_v28 }
 0x14b   : > { %v792_v54 = vpop.f32.mrb[22].mxu0  ;;  %v9153_v59 = vpop.f32.mrb[36].mxu1 }
 0x14c   : > { %v9156_v42 = vadd.f32 %v9002_v47, %v792_v54  ;;  %v794_v29 = vpop.f32.mrb[23].mxu0  ;;  %v1604_v26 = vpop.f32.mrb[37].mxu1  ;;  %v2202_v47 = vld [vmem:[%s8328_s20 + $0x106] sm:$0xff]  ;;  %v2223_v54 = vpack.c.bf16 %v2201_v60, %v2200_v31 }
 0x14d   : > { %v9159_v8 = vpop.f32.mrb[38].mxu1  ;;  %v2224_v29 = vpack.c.bf16 %v2203_v17, %v2202_v47  ;;  %4157 = vmatpush1.bf16.msra.mxu0 %v8160_v32  ;;  %v8162_v31 = vld [vmem:[%s11119_s3 + $0x20] sm:$0xff]   ;;  %v2204_v47 = vld [vmem:[%s8328_s20 + $0x116] sm:$0xff] }
 0x14e   : > { %7900 = vmatmul.mubr.bf16.gmra.mrb[128].mxu0 %v2221_v15  ;;  %v1607_v11 = vpop.f32.mrb[39].mxu1  ;;  %v2125_v15 = vld [vmem:[%s8328_s20 + $0xdd] sm:$0xff]  ;;  %4158 = vmatprep.subr.bf16.mxu0 %v9142_v28 }
 0x14f   : > { %7903 = vmatprep.mubr.bf16.mxu0 %v2222_v57  ;;  %v2205_v17 = vld [vmem:[%s8328_s20 + $0x11e] sm:$0xff] }
 0x150   : > { %2598 = vmatmul.mubr.bf16.gmra.mrb[144].mxu1 %v8923_v18 }
 0x151   : > { %v797_v30 = vpop.f32.mrb[24].mxu0  ;;  %2605 = vmatprep.mubr.bf16.mxu1 %v2148_v6  ;;  %4159 = vmatpush1.bf16.msra.mxu0 %v8162_v31 }
 0x152   : > { %v9174_v56 = vadd.f32 %v9019_v19, %v797_v30  ;;  %v799_v40 = vpop.f32.mrb[25].mxu0  ;;  %v2149_v19 = vpack.c.bf16 %v2125_v15, %v2124_v48  ;;  %v2207_v30 = vld [vmem:[%s8328_s20 + $0x12e] sm:$0xff]  ;;  %4160 = vmatprep.subr.bf16.mxu0 %v9142_v28 }
 0x153   : > { %v800_v18 = vpop.f32.mrb[26].mxu0  ;;  %v9178_v57 = vpop.f32.mrb[40].mxu1  ;;  %v8163_v40 = vld [vmem:[%s11119_s3 + $0x28] sm:$0xff]  }
 0x154   : > { %v9181_v26 = vadd.f32 %v9024_v35, %v800_v18  ;;  %v802_v6 = vpop.f32.mrb[27].mxu0  ;;  %v1612_v58 = vpop.f32.mrb[41].mxu1  ;;  %v2206_v35 = vld [vmem:[%s8328_s20 + $0x126] sm:$0xff] }
 0x155   : > { %v9184_v11 = vpop.f32.mrb[42].mxu1  ;;  %v2127_v18 = vld [vmem:[%s8328_s20 + $0xed] sm:$0xff]  ;;  %v2226_v58 = vpack.c.bf16 %v2207_v30, %v2206_v35  ;;  %4161 = vmatpush1.bf16.msra.mxu0 %v8163_v40  ;;  %v2208_v35 = vld [vmem:[%s8328_s20 + $0x136] sm:$0xff]  ;;  %v2209_v30 = vld [vmem:[%s8328_s20 + $0x13e] sm:$0xff] }
 0x156   : > { %7904 = vmatmul.mubr.bf16.gmra.mrb[132].mxu0 %v2223_v54  ;;  %v1615_v60 = vpop.f32.mrb[43].mxu1  ;;  %v2126_v54 = vld [vmem:[%s8328_s20 + $0xe5] sm:$0xff]  ;;  %4162 = vmatprep.subr.bf16.mxu0 %v9142_v28 }
 0x157   : > { %7907 = vmatprep.mubr.bf16.mxu0 %v2224_v29  ;;  %v2225_v29 = vpack.c.bf16 %v2205_v17, %v2204_v47  ;;  %v8164_v17 = vld [vmem:[%s11119_s3 + $0x30] sm:$0xff]  }
 0x158   : > { %2606 = vmatmul.mubr.bf16.gmra.mrb[148].mxu1 %v8941_v39 }
 0x159   : > { %v805_v32 = vpop.f32.mrb[28].mxu0  ;;  %2613 = vmatprep.mubr.bf16.mxu1 %v2149_v19  ;;  %4163 = vmatpush1.bf16.msra.mxu0 %v8164_v17 }
 0x15a   : > { %v9199_v48 = vadd.f32 %v9017_v21, %v805_v32  ;;  %v807_v15 = vpop.f32.mrb[29].mxu0  ;;  %v8161_v21 = vld [vmem:[%s11119_s3 + $0x88] sm:$0xff]   ;;  %v2150_v32 = vpack.c.bf16 %v2127_v18, %v2126_v54  ;;  %4164 = vmatprep.subr.bf16.mxu0 %v9142_v28 }
 0x15b   : > { %v808_v6 = vpop.f32.mrb[30].mxu0  ;;  %v9203_v39 = vpop.f32.mrb[44].mxu1  ;;  %7917 = vmatprep.subr.bf16.mxu1 %v8161_v21  ;;  %v8165_v15 = vld [vmem:[%s11119_s3 + $0x38] sm:$0xff]  }
 0x15c   : > { %v9206_v19 = vadd.f32 %v9021_v22, %v808_v6  ;;  %v810_v31 = vpop.f32.mrb[31].mxu0  ;;  %v1620_v60 = vpop.f32.mrb[45].mxu1  ;;  %7918 = vmatpush3.bf16.msra.mxu1 %v8161_v21  ;;  %v2129_v6 = vld [vmem:[%s8328_s20 + $0xfd] sm:$0xff] }
 0x15d   : > { %v9212_v47 = vpop.f32.mrb[46].mxu1  ;;  %4165 = vmatpush1.bf16.msra.mxu0 %v8165_v15 }
 0x15e   : > { %7908 = vmatmul.mubr.bf16.gmra.mrb[136].mxu0 %v2225_v29  ;;  %v1623_v22 = vpop.f32.mrb[47].mxu1  ;;  %v2128_v29 = vld [vmem:[%s8328_s20 + $0xf5] sm:$0xff]  ;;  %4166 = vmatprep.subr.bf16.mxu0 %v9142_v28 }
 0x15f   : > { %7911 = vmatprep.mubr.bf16.mxu0 %v2226_v58  ;;  %v2227_v58 = vpack.c.bf16 %v2209_v30, %v2208_v35  ;;  %v2151_v17 = vpack.c.bf16 %v2129_v6, %v2128_v29  ;;  %v8168_v30 = vld [vmem:[%s11119_s3 + $0x48] sm:$0xff]  }
 0x160   : > { %2614 = vmatmul.mubr.bf16.gmra.mrb[152].mxu1 %v8948_v51  ;;  %v2131_v29 = vld [vmem:[%s8328_s20 + $0x10d] sm:$0xff] }
 0x161   : > { %v813_v40 = vpop.f32.mrb[32].mxu0  ;;  %2621 = vmatprep.mubr.bf16.mxu1 %v2150_v32 }
 0x162   : > { %v9225_v54 = vadd.f32 %v9041_v44, %v813_v40  ;;  %v815_v18 = vpop.f32.mrb[33].mxu0  ;;  %v8167_v44 = vld [vmem:[%s11119_s3 + $0x40] sm:$0xff]  }
 0x163   : > { %v816_v31 = vpop.f32.mrb[34].mxu0  ;;  %v9229_v60 = vpop.f32.mrb[48].mxu1  ;;  %4167 = vmatpush1.bf16.msra.mxu0 %v8167_v44  ;;  %v2130_v18 = vld [vmem:[%s8328_s20 + $0x105] sm:$0xff]  ;;  %v8166_v44 = vld [vmem:[%s11119_s3 + $0x90] sm:$0xff]  }
 0x164   : > { %11145 = vst [vmem:[#allocation6_spill] sm:$0xff] %v9225_v54  ;;  %v9232_v51 = vadd.f32 %v9045_v3, %v816_v31  ;;  %v818_v21 = vpop.f32.mrb[35].mxu0  ;;  %v1628_v32 = vpop.f32.mrb[49].mxu1  ;;  %4168 = vmatprep.subr.bf16.mxu0 %v9142_v28  ;;  %7919 = vmatprep.subr.bf16.mxu1 %v8166_v44 }
 0x165   : > { %v9234_v22 = vpop.f32.mrb[50].mxu1  ;;  %v2152_v32 = vpack.c.bf16 %v2131_v29, %v2130_v18  ;;  %7920 = vmatpush3.bf16.msra.mxu1 %v8166_v44  ;;  %v2133_v18 = vld [vmem:[%s8328_s20 + $0x11d] sm:$0xff] }
 0x166   : > { %11146 = vst [vmem:[#allocation7_spill] sm:$0xff] %v9232_v51  ;;  %v1631_v35 = vpop.f32.mrb[51].mxu1  ;;  %7912 = vmatmul.mubr.bf16.gmra.mrb[140].mxu0 %v2227_v58  ;;  %v8170_v29 = vld [vmem:[%s11119_s3 + $0x58] sm:$0xff]  }
 0x167   : > { %4169 = vmatpush1.bf16.msra.mxu0 %v8168_v30  ;;  %v2137_v51 = vld [vmem:[%s8328_s20 + $0x13d] sm:$0xff] }
 0x168   : > { %2622 = vmatmul.mubr.bf16.gmra.mrb[156].mxu1 %v8971_v50  ;;  %4170 = vmatprep.subr.bf16.mxu0 %v9142_v28 }
 0x169   : > { %v821_v3 = vpop.f32.mrb[36].mxu0  ;;  %2629 = vmatprep.mubr.bf16.mxu1 %v2151_v17 }
 0x16a   : > { %v9246_v40 = vadd.f32 %v9036_v13, %v821_v3  ;;  %v823_v15 = vpop.f32.mrb[37].mxu0 }
 0x16b   : > { %v824_v6 = vpop.f32.mrb[38].mxu0  ;;  %v9250_v31 = vpop.f32.mrb[52].mxu1  ;;  %v2132_v15 = vld [vmem:[%s8328_s20 + $0x115] sm:$0xff] }
 0x16c   : > { %11147 = vst [vmem:[#allocation8_spill] sm:$0xff] %v9246_v40  ;;  %v9253_v50 = vadd.f32 %v9043_v46, %v824_v6  ;;  %v826_v58 = vpop.f32.mrb[39].mxu0  ;;  %v1636_v21 = vpop.f32.mrb[53].mxu1  ;;  %v8169_v46 = vld [vmem:[%s11119_s3 + $0x50] sm:$0xff]  }
 0x16d   : > { %v9255_v17 = vpop.f32.mrb[54].mxu1  ;;  %4171 = vmatpush1.bf16.msra.mxu0 %v8169_v46  ;;  %v8172_v46 = vld [vmem:[%s11119_s3 + $0x60] sm:$0xff]  }
 0x16e   : > { %11148 = vst [vmem:[#allocation9_spill] sm:$0xff] %v9253_v50  ;;  %v1639_v13 = vpop.f32.mrb[55].mxu1  ;;  %4172 = vmatprep.subr.bf16.mxu0 %v9142_v28 }
 0x170   : > { %2630 = vmatmul.mubr.bf16.gmra.mrb[160].mxu1 %v8975_v25 }
 0x171   : > { %v829_v35 = vpop.f32.mrb[40].mxu0  ;;  %2637 = vmatprep.mubr.bf16.mxu1 %v2152_v32  ;;  %v2153_v32 = vpack.c.bf16 %v2133_v18, %v2132_v15  ;;  %4173 = vmatpush1.bf16.msra.mxu0 %v8170_v29  ;;  %v2135_v15 = vld [vmem:[%s8328_s20 + $0x12d] sm:$0xff] }
 0x172   : > { %v9266_v3 = vadd.f32 %v9062_v14, %v829_v35  ;;  %v831_v30 = vpop.f32.mrb[41].mxu0  ;;  %4174 = vmatprep.subr.bf16.mxu0 %v9142_v28  ;;  %v8173_v18 = vld [vmem:[%s11119_s3 + $0x68] sm:$0xff]  }
 0x173   : > { %v832_v6 = vpop.f32.mrb[42].mxu0  ;;  %v9273_v58 = vpop.f32.mrb[56].mxu1 }
 0x174   : > { %11149 = vst [vmem:[#allocation10_spill] sm:$0xff] %v9266_v3  ;;  %v9277_v25 = vadd.f32 %v9066_v38, %v832_v6  ;;  %v834_v14 = vpop.f32.mrb[43].mxu0  ;;  %v1644_v21 = vpop.f32.mrb[57].mxu1  ;;  %v2134_v6 = vld [vmem:[%s8328_s20 + $0x125] sm:$0xff] }
 0x175   : > { %v9279_v13 = vpop.f32.mrb[58].mxu1  ;;  %4175 = vmatpush1.bf16.msra.mxu0 %v8172_v46 }
 0x176   : > { %11150 = vst [vmem:[#allocation11_spill] sm:$0xff] %v9277_v25  ;;  %v1647_v44 = vpop.f32.mrb[59].mxu1  ;;  %4176 = vmatprep.subr.bf16.mxu0 %v9142_v28  ;;  %v3362_v25 = vld [vmem:[#allocation3] sm:$0xc0] }
 0x177   : > { %v2154_v44 = vpack.c.bf16 %v2135_v15, %v2134_v6  ;;  %v3383_v6 = vshrl.u32 %v3362_v25, 16  ;;  %v3386_v15 = vshll.u32 %v3362_v25, 16  ;;  %v8176_v25 = vld [vmem:[%s11119_s3 + $0x78] sm:$0xff]  }
 0x178   : > { %2638 = vmatmul.mubr.bf16.gmra.mrb[164].mxu1 %v8992_v63  ;;  %v8171_v63 = vld [vmem:[%s11119_s3 + $0x98] sm:$0xff]  }
 0x179   : > { %v837_v35 = vpop.f32.mrb[44].mxu0  ;;  %2645 = vmatprep.mubr.bf16.mxu1 %v2153_v32  ;;  %7921 = vmatprep.subr.bf16.mxu1 %v8171_v63 }
 0x17a   : > { %v9287_v38 = vadd.f32 %v9057_v10, %v837_v35  ;;  %v839_v30 = vpop.f32.mrb[45].mxu0  ;;  %7922 = vmatpush3.bf16.msra.mxu1 %v8171_v63  ;;  %4177 = vmatpush1.bf16.msra.mxu0 %v8173_v18  ;;  %v2136_v63 = vld [vmem:[%s8328_s20 + $0x135] sm:$0xff] }
 0x17b   : > { %v840_v29 = vpop.f32.mrb[46].mxu0  ;;  %v9294_v14 = vpop.f32.mrb[60].mxu1  ;;  %v8174_v30 = vld [vmem:[%s11119_s3 + $0x70] sm:$0xff]   ;;  %4178 = vmatprep.subr.bf16.mxu0 %v9142_v28 }
 0x17c   : > { %11151 = vst [vmem:[#allocation12_spill] sm:$0xff] %v9287_v38  ;;  %v9301_v10 = vadd.f32 %v9064_v16, %v840_v29  ;;  %v842_v21 = vpop.f32.mrb[47].mxu0  ;;  %v1652_v32 = vpop.f32.mrb[61].mxu1  ;;  %v8175_v16 = vld [vmem:[%s11119_s3 + $0xa0] sm:$0xff]   ;;  %v3391_v29 = vshrl.u32 %v9142_v28, 16 }
 0x17d   : > { %v9303_v46 = vpop.f32.mrb[62].mxu1  ;;  %7923 = vmatprep.subr.bf16.mxu1 %v8175_v16  ;;  %v3588_v32 = vld [vmem:[#allocation3] sm:$0x80] }
 0x17e   : > { %11152 = vst [vmem:[#allocation13_spill] sm:$0xff] %v9301_v10  ;;  %v1655_v35 = vpop.f32.mrb[63].mxu1  ;;  %v3388_v10 = vrot.slane %v3386_v15, 7  ;;  %4179 = vmatpush1.bf16.msra.mxu0 %v8174_v30  ;;  %7924 = vmatpush3.bf16.msra.mxu1 %v8175_v16  ;;  %v3627_v21 = vrot.slane %v3588_v32, 7  ;;  %v11154_v30 = vshll.u32 %v9142_v28, 16 }
 0x17f   : > { %v3385_v35 = vrot.slane %v3383_v6, 6  ;;  %4180 = vmatprep.subr.bf16.mxu0 %v9142_v28 }
 0x180   : > { %2646 = vmatmul.mubr.bf16.gmra.mrb[168].mxu1 %v8996_v4  ;;  %v11123_v4 = vrot.slane %v9142_v28, 7  ;;  %v3396_v16 = vrot.slane %v11154_v30, 7 }
 0x181   : > { %v845_v18 = vpop.f32.mrb[48].mxu0  ;;  %2653 = vmatprep.mubr.bf16.mxu1 %v2154_v44  ;;  %v3393_v44 = vrot.slane %v3391_v29, 6 }
 0x182   : > { %v9317_v3 = vadd.f32 %v9083_v36, %v845_v18  ;;  %v847_v38 = vpop.f32.mrb[49].mxu0  ;;  %v8177_v36 = vld [vmem:[%s11119_s3 + $0xa8] sm:$0xff]   ;;  %v3629_v32 = vsel %vm3626_vm0, %v3627_v21, %v11123_v4  ;;  %4181 = vmatpush1.bf16.msra.mxu0 %v8176_v25  ;;  %v3700_v25 = vld [vmem:[#allocation3] sm:$0x80] }
 0x183   : > { %v848_v50 = vpop.f32.mrb[50].mxu0  ;;  %v9324_v54 = vpop.f32.mrb[64].mxu1  ;;  %v3389_v38 = vor.u32 %v3388_v10, %v3385_v35  ;;  %7925 = vmatprep.subr.bf16.mxu1 %v8177_v36  ;;  %4182 = vmatprep.mubr.bf16.mxu0 %v3629_v32  ;;  %v9340_v10 = vor.u32 %v3396_v16, %v3393_v44 }
 0x184   : > { %11153 = vst [vmem:[#allocation14_spill] sm:$0xff] %v9317_v3  ;;  %v9333_v6 = vadd.f32 %v9087_v55, %v848_v50  ;;  %v850_v15 = vpop.f32.mrb[51].mxu0  ;;  %v1660_v18 = vpop.f32.mrb[65].mxu1  ;;  %v2155_v3 = vpack.c.bf16 %v2137_v51, %v2136_v63  ;;  %7926 = vmatpush3.bf16.msra.mxu1 %v8177_v36  ;;  %v8178_v50 = vld [vmem:[%s11119_s3 + $0xb0] sm:$0xff]   ;;  %v2065_v63 = vld [vmem:[%s8328_s20 + $0x13c] sm:$0xff] }
 0x185   : > { %v9338_v40 = vpop.f32.mrb[66].mxu1  ;;  %11155 = vst [vmem:[#allocation15_spill] sm:$0xff] %v9340_v10  ;;  %v3398_v55 = vsel %vm3381_vm1, %v3389_v38, %v9340_v10  ;;  %v2064_v51 = vld [vmem:[%s8328_s20 + $0x134] sm:$0xff]  ;;  %7927 = vmatprep.subr.bf16.mxu1 %v8178_v50  ;;  %v9358_v15 = vrot.slane %v3391_v29, 7 }
 0x186   : > { %v1663_v35 = vpop.f32.mrb[67].mxu1  ;;  %4183 = vmatmul.mubr.bf16.vlgmr.msra.gmra.mrb[144].mxu0 %v3398_v55  ;;  %v8180_v38 = vld [vmem:[%s11119_s3 + $0xb8] sm:$0xff]  }
 0x187   : > { %11156 = vst [vmem:[#allocation16_spill] sm:$0xff] %v9358_v15 }
 0x188   : > { %2654 = vmatmul.mubr.bf16.gmra.mrb[172].mxu1 %v9013_v12  ;;  %v3721_v12 = vshrl.u32 %v3700_v25, 16 }
 0x189   : > { %v853_v21 = vpop.f32.mrb[52].mxu0  ;;  %2661 = vmatprep.mubr.bf16.mxu1 %v2155_v3  ;;  %7928 = vmatpush3.bf16.msra.mxu1 %v8178_v50 }
 0x18a   : > { %v9351_v44 = vadd.f32 %v9078_v43, %v853_v21  ;;  %v855_v30 = vpop.f32.mrb[53].mxu0  ;;  %v2083_v43 = vpack.c.bf16 %v2065_v63, %v2064_v51  ;;  %7929 = vmatprep.subr.bf16.mxu1 %v8180_v38  ;;  %v3723_v55 = vrot.slane %v3721_v12, 7  ;;  %v11157_v21 = vshll.u32 %v9142_v28, 16 }
 0x18b   : > { %v856_v36 = vpop.f32.mrb[54].mxu0  ;;  %v9353_v16 = vpop.f32.mrb[68].mxu1 }
 0x18c   : > { %v9361_v3 = vadd.f32 %v9085_v53, %v856_v36  ;;  %v858_v18 = vpop.f32.mrb[55].mxu0  ;;  %v1668_v32 = vpop.f32.mrb[69].mxu1  ;;  %v3730_v50 = vor.u32 %v9358_v15, %v11157_v21  ;;  %v8179_v21 = vld [vmem:[%s11119_s3 + $0x140] sm:$0xff]  }
 0x18d   : > { %v9363_v35 = vpop.f32.mrb[70].mxu1  ;;  %7930 = vmatpush3.bf16.msra.mxu1 %v8180_v38  ;;  %7967 = vmatprep.subr.bf16.mxu0 %v8179_v21 }
 0x18e   : > { %v1671_v30 = vpop.f32.mrb[71].mxu1  ;;  %v3731_v29 = vsel %vm3719_vm2, %v3723_v55, %v3730_v50  ;;  %5230 = vmatprep.subr.bf16.mxu1 %v9142_v28  ;;  %7968 = vmatpush3.bf16.msra.mxu0 %v8179_v21 }
 0x190   : > { %2662 = vmatmul.mubr.bf16.gmra.mrb[176].mxu1 %v2083_v43 }
 0x191   : > { %v861_v53 = vpop.f32.mrb[56].mxu0  ;;  %7931 = vmatprep.mubr.bf16.mxu1 %v3731_v29 }
 0x192   : > { %v9371_v51 = vadd.f32 %v9104_v23, %v861_v53  ;;  %v863_v63 = vpop.f32.mrb[57].mxu0 }
 0x193   : > { %v864_v25 = vpop.f32.mrb[58].mxu0  ;;  %v9373_v36 = vpop.f32.mrb[72].mxu1 }
 0x194   : > { %v9376_v12 = vadd.f32 %v9108_v41, %v864_v25  ;;  %v866_v18 = vpop.f32.mrb[59].mxu0  ;;  %v1676_v32 = vpop.f32.mrb[73].mxu1 }
 0x195   : > { %v9378_v38 = vpop.f32.mrb[74].mxu1 }
 0x196   : > { %v1679_v55 = vpop.f32.mrb[75].mxu1 }
 0x199   : > { %v869_v43 = vpop.f32.mrb[60].mxu0 }
 0x19a   : > { %v9384_v23 = vadd.f32 %v9099_v20, %v869_v43  ;;  %v871_v50 = vpop.f32.mrb[61].mxu0 }
 0x19b   : > { %v872_v30 = vpop.f32.mrb[62].mxu0  ;;  %v9386_v29 = vpop.f32.mrb[76].mxu1 }
 0x19c   : > { %v9389_v41 = vadd.f32 %v9106_v24, %v872_v30  ;;  %v874_v53 = vpop.f32.mrb[63].mxu0  ;;  %v1684_v63 = vpop.f32.mrb[77].mxu1 }
 0x19d   : > { %v9391_v25 = vpop.f32.mrb[78].mxu1 }
 0x19e   : > { %v1687_v18 = vpop.f32.mrb[79].mxu1 }
 0x1a1   : > { %v877_v32 = vpop.f32.mrb[64].mxu0 }
 0x1a2   : > { %v9394_v55 = vadd.f32 %v9125_v5, %v877_v32  ;;  %v879_v20 = vpop.f32.mrb[65].mxu0 }
 0x1a3   : > { %v880_v43 = vpop.f32.mrb[66].mxu0  ;;  %v9396_v50 = vpop.f32.mrb[80].mxu1 }
 0x1a4   : > { %v9399_v4 = vadd.f32 %v9132_v9, %v880_v43  ;;  %v882_v15 = vpop.f32.mrb[67].mxu0  ;;  %v1692_v24 = vpop.f32.mrb[81].mxu1  ;;  %v8181_v9 = vld [vmem:[%s11119_s3 + $0x148] sm:$0xff]  }
 0x1a5   : > { %v9401_v30 = vpop.f32.mrb[82].mxu1  ;;  %7969 = vmatprep.subr.bf16.mxu0 %v8181_v9 }
 0x1a6   : > { %11158 = vst [vmem:[#allocation17_spill] sm:$0xff] %v9399_v4  ;;  %v1695_v53 = vpop.f32.mrb[83].mxu1  ;;  %7970 = vmatpush3.bf16.msra.mxu0 %v8181_v9 }
 0x1a9   : > { %v885_v21 = vpop.f32.mrb[68].mxu0 }
 0x1aa   : > { %v9404_v63 = vadd.f32 %v9120_v62, %v885_v21  ;;  %v887_v18 = vpop.f32.mrb[69].mxu0 }
 0x1ab   : > { %v888_v10 = vpop.f32.mrb[70].mxu0  ;;  %v9406_v5 = vpop.f32.mrb[84].mxu1 }
 0x1ac   : > { %v9409_v32 = vadd.f32 %v9127_v7, %v888_v10  ;;  %v890_v20 = vpop.f32.mrb[71].mxu0  ;;  %v1700_v28 = vpop.f32.mrb[85].mxu1 }
 0x1ad   : > { %v9414_v15 = vpop.f32.mrb[86].mxu1 }
 0x1ae   : > { %11159 = vst [vmem:[#allocation18_spill] sm:$0xff] %v9409_v32  ;;  %v1703_v43 = vpop.f32.mrb[87].mxu1 }
 0x1b1   : > { %v7829_v62 = vpop.f32.mrb[72].mxu0 }
 0x1b2   : > { %v1788_v24 = vadd.f32 %v7829_v62, %v9178_v57  ;;  %v1779_v53 = vpop.f32.mrb[73].mxu0 }
 0x1b3   : > { %v1780_v21 = vadd.f32 %v1779_v53, %v9153_v59  ;;  %v7830_v18 = vpop.f32.mrb[74].mxu0  ;;  %v9418_v7 = vpop.f32.mrb[88].mxu1 }
 0x1b4   : > { %v9421_v28 = vadd.f32 %v1788_v24, %v9053_v61  ;;  %v1791_v10 = vadd.f32 %v7830_v18, %v9184_v11  ;;  %v1782_v20 = vpop.f32.mrb[75].mxu0  ;;  %v1708_v4 = vpop.f32.mrb[89].mxu1 }
 0x1b5   : > { %v9425_v43 = vadd.f32 %v1780_v21, %v9032_v34  ;;  %v1783_v9 = vadd.f32 %v1782_v20, %v9159_v8  ;;  %v9428_v32 = vpop.f32.mrb[90].mxu1 }
 0x1b6   : > { %v9431_v57 = vadd.f32 %v1791_v10, %v9060_v45  ;;  %v1711_v59 = vpop.f32.mrb[91].mxu1 }
 0x1b7   : > { %v9434_v62 = vadd.f32 %v1783_v9, %v9039_v1 }
 0x1b9   : > { %v7833_v61 = vpop.f32.mrb[76].mxu0 }
 0x1ba   : > { %v1804_v24 = vadd.f32 %v7833_v61, %v9229_v60  ;;  %v1795_v11 = vpop.f32.mrb[77].mxu0 }
 0x1bb   : > { %v1796_v4 = vadd.f32 %v1795_v11, %v9203_v39  ;;  %v7834_v53 = vpop.f32.mrb[78].mxu0  ;;  %v9438_v34 = vpop.f32.mrb[92].mxu1 }
 0x1bc   : > { %v9441_v8 = vadd.f32 %v1804_v24, %v9095_v0  ;;  %v1807_v21 = vadd.f32 %v7834_v53, %v9234_v22  ;;  %v1798_v45 = vpop.f32.mrb[79].mxu0  ;;  %v1716_v18 = vpop.f32.mrb[93].mxu1 }
 0x1bd   : > { %v9445_v10 = vadd.f32 %v1796_v4, %v9074_v27  ;;  %v1799_v1 = vadd.f32 %v1798_v45, %v9212_v47  ;;  %v9448_v20 = vpop.f32.mrb[94].mxu1  ;;  %v8182_v27 = vld [vmem:[%s11119_s3 + $0x150] sm:$0xff]  }
 0x1be   : > { %v9451_v60 = vadd.f32 %v1807_v21, %v9102_v49  ;;  %v1719_v39 = vpop.f32.mrb[95].mxu1  ;;  %7971 = vmatprep.subr.bf16.mxu0 %v8182_v27 }
 0x1bf   : > { %v9454_v9 = vadd.f32 %v1799_v1, %v9081_v52  ;;  %7972 = vmatpush3.bf16.msra.mxu0 %v8182_v27 }
 0x1c1   : > { %v7837_v0 = vpop.f32.mrb[80].mxu0 }
 0x1c2   : > { %v1820_v59 = vadd.f32 %v7837_v0, %v9273_v58  ;;  %v1811_v22 = vpop.f32.mrb[81].mxu0 }
 0x1c3   : > { %v1812_v61 = vadd.f32 %v1811_v22, %v9250_v31  ;;  %v7838_v47 = vpop.f32.mrb[82].mxu0  ;;  %v9461_v24 = vpop.f32.mrb[96].mxu1 }
 0x1c4   : > { %v9464_v49 = vadd.f32 %v1820_v59, %v9149_v33  ;;  %v1823_v11 = vadd.f32 %v7838_v47, %v9279_v13  ;;  %v1814_v52 = vpop.f32.mrb[83].mxu0  ;;  %v1724_v4 = vpop.f32.mrb[97].mxu1 }
 0x1c5   : > { %v9468_v58 = vadd.f32 %v1812_v61, %v9116_v37  ;;  %v1815_v53 = vadd.f32 %v1814_v52, %v9255_v17  ;;  %v9471_v21 = vpop.f32.mrb[98].mxu1 }
 0x1c6   : > { %v9474_v31 = vadd.f32 %v1823_v11, %v9156_v42  ;;  %v1727_v45 = vpop.f32.mrb[99].mxu1 }
 0x1c7   : > { %v9477_v33 = vadd.f32 %v1815_v53, %v9123_v2  ;;  %v11160_v53 = vld [vmem:[#allocation8_spill] sm:$0xff] }
 0x1c9   : > { %v7841_v18 = vpop.f32.mrb[84].mxu0 }
 0x1ca   : > { %v1836_v13 = vadd.f32 %v7841_v18, %v9324_v54  ;;  %v1827_v1 = vpop.f32.mrb[85].mxu0 }
 0x1cb   : > { %v1828_v39 = vadd.f32 %v1827_v1, %v9294_v14  ;;  %v7842_v37 = vpop.f32.mrb[86].mxu0  ;;  %v9481_v0 = vpop.f32.mrb[100].mxu1 }
 0x1cc   : > { %v9484_v17 = vadd.f32 %v1836_v13, %v9199_v48  ;;  %v1839_v59 = vadd.f32 %v7842_v37, %v9338_v40  ;;  %v1830_v42 = vpop.f32.mrb[87].mxu0  ;;  %v1732_v22 = vpop.f32.mrb[101].mxu1  ;;  %v11161_v13 = vld [vmem:[#allocation6_spill] sm:$0xff] }
 0x1cd   : > { %v9488_v27 = vadd.f32 %v1828_v39, %v9174_v56  ;;  %v1831_v2 = vadd.f32 %v1830_v42, %v9303_v46  ;;  %v9491_v61 = vpop.f32.mrb[102].mxu1  ;;  %v8185_v56 = vld [vmem:[%s11119_s3 + $0x158] sm:$0xff]   ;;  %v11163_v42 = vld [vmem:[#allocation7_spill] sm:$0xff] }
 0x1ce   : > { %v9494_v54 = vadd.f32 %v1839_v59, %v9206_v19  ;;  %v1735_v14 = vpop.f32.mrb[103].mxu1  ;;  %7973 = vmatprep.subr.bf16.mxu0 %v8185_v56 }
 0x1cf   : > { %v9497_v47 = vadd.f32 %v1831_v2, %v9181_v26  ;;  %7974 = vmatpush3.bf16.msra.mxu0 %v8185_v56 }
 0x1d1   : > { %v7845_v48 = vpop.f32.mrb[88].mxu0 }
 0x1d2   : > { %v1852_v11 = vadd.f32 %v7845_v48, %v9373_v36  ;;  %v1843_v40 = vpop.f32.mrb[89].mxu0 }
 0x1d3   : > { %v1844_v52 = vadd.f32 %v1843_v40, %v9353_v16  ;;  %v7846_v46 = vpop.f32.mrb[90].mxu0  ;;  %v9504_v4 = vpop.f32.mrb[104].mxu1  ;;  %v11162_v16 = vld [vmem:[#allocation9_spill] sm:$0xff] }
 0x1d4   : > { %v9507_v19 = vadd.f32 %v1852_v11, %v11160_v53  ;;  %v1855_v45 = vadd.f32 %v7846_v46, %v9378_v38  ;;  %v1846_v26 = vpop.f32.mrb[91].mxu0  ;;  %v1740_v18 = vpop.f32.mrb[105].mxu1 }
 0x1d5   : > { %v9511_v36 = vadd.f32 %v1844_v52, %v11161_v13  ;;  %v1847_v1 = vadd.f32 %v1846_v26, %v9363_v35  ;;  %v9514_v39 = vpop.f32.mrb[106].mxu1  ;;  %v11164_v35 = vld [vmem:[#allocation12_spill] sm:$0xff] }
 0x1d6   : > { %v9517_v37 = vadd.f32 %v1855_v45, %v11162_v16  ;;  %v1743_v59 = vpop.f32.mrb[107].mxu1  ;;  %v11165_v45 = vld [vmem:[#allocation10_spill] sm:$0xff]  ;;  %v11167_v16 = vld [vmem:[#allocation11_spill] sm:$0xff] }
 0x1d7   : > { %v9520_v22 = vadd.f32 %v1847_v1, %v11163_v42 }
 0x1d9   : > { %v7849_v2 = vpop.f32.mrb[92].mxu0 }
 0x1da   : > { %v1868_v38 = vadd.f32 %v7849_v2, %v9396_v50  ;;  %v1859_v14 = vpop.f32.mrb[93].mxu0  ;;  %v11166_v50 = vld [vmem:[#allocation13_spill] sm:$0xff]  ;;  %v9542_v2 = vpop.permute.xlu0 %3108 }
 0x1db   : > { %v1860_v48 = vadd.f32 %v1859_v14, %v9386_v29  ;;  %v7850_v11 = vpop.f32.mrb[94].mxu0  ;;  %v9524_v40 = vpop.f32.mrb[108].mxu1  ;;  %v8190_v14 = vld [vmem:[%s11119_s3 + $0x160] sm:$0xff]  }
 0x1dc   : > { %v9527_v52 = vadd.f32 %v1868_v38, %v11164_v35  ;;  %v1871_v56 = vadd.f32 %v7850_v11, %v9401_v30  ;;  %v1862_v46 = vpop.f32.mrb[95].mxu0  ;;  %v2529_v53 = vpop.f32.mrb[109].mxu1  ;;  %7975 = vmatprep.subr.bf16.mxu0 %v8190_v14 }
 0x1dd   : > { %v9531_v26 = vadd.f32 %v1860_v48, %v11165_v45  ;;  %v1863_v18 = vadd.f32 %v1862_v46, %v9391_v25  ;;  %v9534_v13 = vpop.f32.mrb[110].mxu1  ;;  %v11168_v45 = vld [vmem:[#allocation14_spill] sm:$0xff]  ;;  %7976 = vmatpush3.bf16.msra.mxu0 %v8190_v14 }
 0x1de   : > { %v9537_v1 = vadd.f32 %v1871_v56, %v11166_v50  ;;  %v2532_v29 = vpop.f32.mrb[111].mxu1 }
 0x1df   : > { %v9540_v59 = vadd.f32 %v1863_v18, %v11167_v16 }
 0x1e1   : > { %v7853_v42 = vpop.f32.mrb[96].mxu0 }
 0x1e2   : > { %v1884_v30 = vadd.f32 %v7853_v42, %v9418_v7  ;;  %v1875_v38 = vpop.f32.mrb[97].mxu0  ;;  %v9565_v42 = vpop.permute.xlu1 %3118 }
 0x1e3   : > { %v1876_v25 = vadd.f32 %v1875_v38, %v9406_v5  ;;  %v7854_v48 = vpop.f32.mrb[98].mxu0  ;;  %v2535_v11 = vpop.f32.mrb[112].mxu1 }
 0x1e4   : > { %v9550_v35 = vadd.f32 %v1884_v30, %v9351_v44  ;;  %v1887_v56 = vadd.f32 %v7854_v48, %v9428_v32  ;;  %v1878_v46 = vpop.f32.mrb[99].mxu0  ;;  %v2537_v53 = vpop.f32.mrb[113].mxu1 }
 0x1e5   : > { %v9554_v18 = vadd.f32 %v1876_v25, %v11168_v45  ;;  %v1879_v7 = vadd.f32 %v1878_v46, %v9414_v15  ;;  %v2538_v50 = vpop.f32.mrb[114].mxu1  ;;  %v9563_v44 = vpop.permute.xlu0 %3113 }
 0x1e6   : > { %v9558_v29 = vadd.f32 %v1887_v56, %v9361_v3  ;;  %v2540_v5 = vpop.f32.mrb[115].mxu1 }
 0x1e7   : > { %v9561_v16 = vadd.f32 %v1879_v7, %v9333_v6 }
 0x1e9   : > { %v7857_v32 = vpop.f32.mrb[100].mxu0 }
 0x1ea   : > { %v1900_v30 = vadd.f32 %v7857_v32, %v9461_v24  ;;  %v1891_v38 = vpop.f32.mrb[101].mxu0 }
 0x1eb   : > { %v1892_v25 = vadd.f32 %v1891_v38, %v9438_v34  ;;  %v7858_v15 = vpop.f32.mrb[102].mxu0  ;;  %v9569_v48 = vpop.f32.mrb[116].mxu1 }
 0x1ec   : > { %v9572_v3 = vadd.f32 %v1900_v30, %v9384_v23  ;;  %v1903_v14 = vadd.f32 %v7858_v15, %v9471_v21  ;;  %v1894_v6 = vpop.f32.mrb[103].mxu0  ;;  %v2545_v56 = vpop.f32.mrb[117].mxu1 }
 0x1ed   : > { %v9576_v46 = vadd.f32 %v1892_v25, %v9371_v51  ;;  %v1895_v53 = vadd.f32 %v1894_v6, %v9448_v20  ;;  %v9579_v45 = vpop.f32.mrb[118].mxu1  ;;  %v9587_v23 = vpop.permute.xlu0 %3128  ;;  %v8196_v51 = vld [vmem:[%s11119_s3 + $0x168] sm:$0xff]  }
 0x1ee   : > { %v9582_v24 = vadd.f32 %v1903_v14, %v9389_v41  ;;  %v2548_v34 = vpop.f32.mrb[119].mxu1  ;;  %v3124_v21 = vpop.permute.xlu1 %3123  ;;  %7977 = vmatprep.subr.bf16.mxu0 %v8196_v51 }
 0x1ef   : > { %v9585_v7 = vadd.f32 %v1895_v53, %v9376_v12  ;;  %7978 = vmatpush3.bf16.msra.mxu0 %v8196_v51  ;;  %v11170_v53 = vld [vmem:[#allocation18_spill] sm:$0xff] }
 0x1f1   : > { %v7861_v5 = vpop.f32.mrb[104].mxu0 }
 0x1f2   : > { %v1916_v32 = vadd.f32 %v7861_v5, %v9504_v4  ;;  %v1907_v30 = vpop.f32.mrb[105].mxu0  ;;  %v8201_v4 = vld [vmem:[%s11119_s3 + $0x170] sm:$0xff]  }
 0x1f3   : > { %v1908_v20 = vadd.f32 %v1907_v30, %v9481_v0  ;;  %v7862_v38 = vpop.f32.mrb[106].mxu0  ;;  %v2551_v41 = vpop.f32.mrb[120].mxu1  ;;  %7979 = vmatprep.subr.bf16.mxu0 %v8201_v4 }
 0x1f4   : > { %v9595_v25 = vadd.f32 %v1916_v32, %v9404_v63  ;;  %v1919_v12 = vadd.f32 %v7862_v38, %v9514_v39  ;;  %v1910_v15 = vpop.f32.mrb[107].mxu0  ;;  %v2553_v14 = vpop.f32.mrb[121].mxu1  ;;  %v11172_v39 = vld [vmem:[#allocation17_spill] sm:$0xff]  ;;  %7980 = vmatpush3.bf16.msra.mxu0 %v8201_v4 }
 0x1f5   : > { %v9602_v6 = vadd.f32 %v1908_v20, %v9394_v55  ;;  %v1911_v56 = vadd.f32 %v1910_v15, %v9491_v61  ;;  %v2554_v0 = vpop.f32.mrb[122].mxu1  ;;  %v9611_v32 = vpop.permute.xlu0 %3138  ;;  %v9618_v61 = vld [vmem:[%s11118_s2] ss:$0 sm:$0xff] }
 0x1f6   : > { %11169 = vst [vmem:[#allocation8_spill] sm:$0xff] %v9595_v25  ;;  %v9606_v34 = vadd.f32 %v1919_v12, %v11170_v53  ;;  %v2556_v63 = vpop.f32.mrb[123].mxu1  ;;  %v9613_v38 = vpop.permute.xlu1 %3133 }
 0x1f7   : > { %v9609_v5 = vadd.f32 %v1911_v56, %v11172_v39 }
 0x1f8   : > { %11171 = vst [vmem:[#allocation6_spill] sm:$0xff] %v9606_v34 }
 0x1f9   : > { %11173 = vst [vmem:[#allocation9_spill] sm:$0xff] %v9609_v5  ;;  %v7881_v30 = vpop.f32.mrb[108].mxu0 }
 0x1fa   : > { %v2713_v55 = vadd.f32 %v7881_v30, %v2535_v11  ;;  %v2704_v20 = vpop.f32.mrb[109].mxu0 }
 0x1fb   : > { %v2705_v51 = vadd.f32 %v2704_v20, %v9524_v40  ;;  %v7882_v12 = vpop.f32.mrb[110].mxu0  ;;  %v9621_v15 = vpop.f32.mrb[124].mxu1 }
 0x1fc   : > { %v2885_v14 = vadd.f32 %v2713_v55, %v9421_v28  ;;  %v2716_v56 = vadd.f32 %v7882_v12, %v2538_v50  ;;  %v2707_v53 = vpop.f32.mrb[111].mxu0  ;;  %v2561_v63 = vpop.f32.mrb[125].mxu1 }
 0x1fd   : > { %v2883_v4 = vadd.f32 %v2705_v51, %v9425_v43  ;;  %v2708_v11 = vadd.f32 %v2707_v53, %v9534_v13  ;;  %v9626_v39 = vpop.f32.mrb[126].mxu1  ;;  %v9633_v50 = vpop.permute.xlu0 %3148 }
 0x1fe   : > { %v3000_v30 = vadd.f32 %v9618_v61, %v2885_v14  ;;  %v2886_v34 = vadd.f32 %v2716_v56, %v9431_v57  ;;  %v2564_v25 = vpop.f32.mrb[127].mxu1  ;;  %v3144_v51 = vpop.permute.xlu1 %3143 }
 0x1ff   : > { %v2998_v40 = vadd.f32 %v9618_v61, %v2883_v4  ;;  %v2884_v20 = vadd.f32 %v2708_v11, %v9434_v62  ;;  %v8203_v62 = vld [vmem:[%s11119_s3 + $0x178] sm:$0xff]  }
 0x200   : > { %v3036_v5 = vmax.f32 %v3000_v30, 0.0  ;;  %v3001_v28 = vadd.f32 %v9618_v61, %v2886_v34  ;;  %7981 = vmatprep.subr.bf16.mxu0 %v8203_v62 }
 0x201   : > { %v3034_v55 = vmax.f32 %v2998_v40, 0.0  ;;  %v2999_v43 = vadd.f32 %v9618_v61, %v2884_v20  ;;  %v7885_v13 = vpop.f32.mrb[112].mxu0  ;;  %7982 = vmatpush3.bf16.msra.mxu0 %v8203_v62 }
 0x202   : > { %v3037_v12 = vmax.f32 %v3001_v28, 0.0  ;;  %v2729_v53 = vadd.f32 %v7885_v13, %v2551_v41  ;;  %v2720_v14 = vpop.f32.mrb[113].mxu0  ;;  %v3288_v34 = vmul.f32 %v9565_v42, %v3036_v5  ;;  %v9660_v62 = vpop.permute.xlu1 %3153 }
 0x203   : > { %v3035_v63 = vmax.f32 %v2999_v43, 0.0  ;;  %v2721_v57 = vadd.f32 %v2720_v14, %v9569_v48  ;;  %v7886_v25 = vpop.f32.mrb[114].mxu0  ;;  %v2567_v56 = vpop.f32.mrb[128].mxu1  ;;  %v3286_v41 = vmul.f32 %v9542_v2, %v3034_v55 }
 0x204   : > { %v3289_v4 = vmul.f32 %v3124_v21, %v3037_v12  ;;  %v2889_v11 = vadd.f32 %v2729_v53, %v9441_v8  ;;  %v2732_v30 = vadd.f32 %v7886_v25, %v2554_v0  ;;  %v2723_v40 = vpop.f32.mrb[115].mxu0  ;;  %v2569_v20 = vpop.f32.mrb[129].mxu1 }
 0x205   : > { %v3287_v28 = vmul.f32 %v9563_v44, %v3035_v63  ;;  %v2887_v48 = vadd.f32 %v2721_v57, %v9445_v10  ;;  %v2724_v43 = vadd.f32 %v2723_v40, %v9579_v45  ;;  %v2570_v13 = vpop.f32.mrb[130].mxu1  ;;  %v9652_v44 = vld [vmem:[#allocation3] sm:$0xff]  ;;  %v3159_v12 = vpop.permute.xlu0 %3158 }
 0x206   : > { %v9646_v14 = vpack.c.bf16 %v3289_v4, %v3288_v34  ;;  %v3004_v42 = vadd.f32 %v9618_v61, %v2889_v11  ;;  %v2890_v21 = vadd.f32 %v2732_v30, %v9451_v60  ;;  %v2572_v8 = vpop.f32.mrb[131].mxu1  ;;  %6480 = vmatprep.subr.bf16.mxu0 %v9652_v44 }
 0x207   : > { %v3326_v0 = vpack.c.bf16 %v3287_v28, %v3286_v41  ;;  %v3002_v5 = vadd.f32 %v9618_v61, %v2887_v48  ;;  %v2888_v2 = vadd.f32 %v2724_v43, %v9454_v9 }
 0x208   : > { %3345 = vst [vmem:[#allocation3 + $0x18] sm:$0xff] %v9646_v14  ;;  %v3040_v10 = vmax.f32 %v3004_v42, 0.0  ;;  %v3005_v45 = vadd.f32 %v9618_v61, %v2890_v21  ;;  %v3632_v55 = vrot.slane %v9646_v14, 7  ;;  %v11174_v42 = vld [vmem:[#allocation5_spill] sm:$0xff] }
 0x209   : > { %3344 = vst [vmem:[#allocation3 + $0x10] sm:$0xff] %v3326_v0  ;;  %v3038_v53 = vmax.f32 %v3002_v5, 0.0  ;;  %v3003_v63 = vadd.f32 %v9618_v61, %v2888_v2  ;;  %v7889_v57 = vpop.f32.mrb[116].mxu0  ;;  %v3630_v9 = vrot.slane %v3326_v0, 7  ;;  %v3400_v25 = vshrl.u32 %v3326_v0, 16 }
 0x20a   : > { %v3292_v34 = vmul.f32 %v9611_v32, %v3040_v10  ;;  %v3041_v4 = vmax.f32 %v3005_v45, 0.0  ;;  %v2745_v11 = vadd.f32 %v7889_v57, %v2567_v56  ;;  %v2736_v30 = vpop.f32.mrb[117].mxu0  ;;  %v3403_v40 = vshll.u32 %v3326_v0, 16 }
 0x20b   : > { %v3290_v20 = vmul.f32 %v9587_v23, %v3038_v53  ;;  %v3039_v41 = vmax.f32 %v3003_v63, 0.0  ;;  %v2737_v28 = vadd.f32 %v2736_v30, %v9621_v15  ;;  %v7890_v48 = vpop.f32.mrb[118].mxu0  ;;  %v2575_v43 = vpop.f32.mrb[132].mxu1  ;;  %v11175_v21 = vrot.slane %v11174_v42, 7 }
 0x20c   : > { %v3293_v5 = vmul.f32 %v3144_v51, %v3041_v4  ;;  %v2893_v2 = vadd.f32 %v2745_v11, %v9464_v49  ;;  %v2748_v60 = vadd.f32 %v7890_v48, %v2570_v13  ;;  %v2739_v32 = vpop.f32.mrb[119].mxu0  ;;  %v2577_v10 = vpop.f32.mrb[133].mxu1  ;;  %v3402_v56 = vrot.slane %v3400_v25, 6 }
 0x20d   : > { %v3631_v8 = vsel %vm3626_vm0, %v11175_v21, %v3630_v9  ;;  %v3291_v0 = vmul.f32 %v9613_v38, %v3039_v41  ;;  %v2891_v23 = vadd.f32 %v2737_v28, %v9468_v58  ;;  %v2740_v15 = vadd.f32 %v2739_v32, %v9626_v39  ;;  %v2578_v45 = vpop.f32.mrb[134].mxu1  ;;  %v11176_v28 = vld [vmem:[#allocation15_spill] sm:$0xff] }
 0x20e   : > { %4190 = vmatprep.mubr.bf16.mxu0 %v3631_v8  ;;  %v3405_v53 = vrot.slane %v3403_v40, 7  ;;  %v9672_v63 = vpack.c.bf16 %v3293_v5, %v3292_v34  ;;  %v3008_v57 = vadd.f32 %v9618_v61, %v2893_v2  ;;  %v2894_v51 = vadd.f32 %v2748_v60, %v9474_v31  ;;  %v2580_v49 = vpop.f32.mrb[135].mxu1  ;;  %v8183_v60 = vld [vmem:[%s11119_s3 + $0xc0] sm:$0xff]   ;;  %v11178_v2 = vld [vmem:[#allocation16_spill] sm:$0xff] }
 0x20f   : > { %v3735_v13 = vrot.slane %v3400_v25, 7  ;;  %v9676_v4 = vpack.c.bf16 %v3291_v0, %v3290_v20  ;;  %v3006_v11 = vadd.f32 %v9618_v61, %v2891_v23  ;;  %v2892_v38 = vadd.f32 %v2740_v15, %v9477_v33  ;;  %v3164_v25 = vpop.permute.xlu1 %3163 }
 0x210   : > { %v9680_v30 = vor.u32 %v3405_v53, %v3402_v56  ;;  %3347 = vst [vmem:[#allocation3 + $0x28] sm:$0xff] %v9672_v63  ;;  %v3044_v58 = vmax.f32 %v3008_v57, 0.0  ;;  %v3009_v39 = vadd.f32 %v9618_v61, %v2894_v51  ;;  %v3633_v31 = vsel %vm3626_vm0, %v3630_v9, %v3632_v55  ;;  %v3169_v9 = vpop.permute.xlu0 %3168 }
 0x211   : > { %v3738_v34 = vor.u32 %v3735_v13, %v3403_v40  ;;  %3346 = vst [vmem:[#allocation3 + $0x20] sm:$0xff] %v9676_v4  ;;  %v3042_v33 = vmax.f32 %v3006_v11, 0.0  ;;  %v3007_v20 = vadd.f32 %v9618_v61, %v2892_v38  ;;  %v7893_v41 = vpop.f32.mrb[120].mxu0  ;;  %v11177_v40 = vshrl.u32 %v9646_v14, 16 }
 0x212   : > { %v3407_v48 = vsel %vm3381_vm1, %v11176_v28, %v9680_v30  ;;  %v3296_v21 = vmul.f32 %v3159_v12, %v3044_v58  ;;  %v3045_v8 = vmax.f32 %v3009_v39, 0.0  ;;  %v2752_v5 = vpop.f32.mrb[121].mxu0  ;;  %v3744_v10 = vshll.u32 %v9646_v14, 16 }
 0x213   : > { %v9697_v42 = vrot.slane %v11177_v40, 7  ;;  %4191 = vmatmul.mubr.bf16.gmra.mrb[148].mxu0 %v3407_v48  ;;  %v3739_v32 = vsel %vm3719_vm2, %v11178_v2, %v3738_v34  ;;  %v3294_v56 = vmul.f32 %v9633_v50, %v3042_v33  ;;  %v3043_v0 = vmax.f32 %v3007_v20, 0.0  ;;  %v2583_v23 = vpop.f32.mrb[136].mxu1  ;;  %v7894_v53 = vpop.f32.mrb[122].mxu0  ;;  %v8184_v50 = vld [vmem:[%s11119_s3 + $0xc8] sm:$0xff]  }
 0x214   : > { %v2753_v15 = vadd.f32 %v2752_v5, %v2575_v43  ;;  %7932 = vmatmul.mubr.bf16.vlgmr.msra.gmra.mrb[180].mxu1 %v3739_v32  ;;  %4198 = vmatprep.mubr.bf16.mxu0 %v3633_v31  ;;  %v11179_v57 = vmov %v11177_v40  ;;  %v3297_v12 = vmul.f32 %v3164_v25, %v3045_v8  ;;  %v2761_v49 = vadd.f32 %v7893_v41, %v2583_v23  ;;  %v2585_v11 = vpop.f32.mrb[137].mxu1  ;;  %v2755_v38 = vpop.f32.mrb[123].mxu0 }
 0x215   : > { %v3411_v51 = vrot.slane %v11179_v57, 6  ;;  %v3746_v58 = vor.u32 %v3744_v10, %v9697_v42  ;;  %v3414_v39 = vrot.slane %v3744_v10, 7  ;;  %5231 = vmatpush1.bf16.msra.mxu1 %v8183_v60  ;;  %v3295_v43 = vmul.f32 %v9660_v62, %v3043_v0  ;;  %v2586_v31 = vpop.f32.mrb[138].mxu1  ;;  %v3174_v40 = vpop.permute.xlu1 %3173 }
 0x216   : > { %v2895_v34 = vadd.f32 %v2753_v15, %v9488_v27  ;;  %v2756_v33 = vadd.f32 %v2755_v38, %v2578_v45  ;;  %v3749_v20 = vshrl.u32 %v9676_v4, 16  ;;  %5232 = vmatprep.subr.bf16.mxu1 %v9652_v44  ;;  %v9713_v25 = vpack.c.bf16 %v3297_v12, %v3296_v21  ;;  %v2588_v60 = vpop.f32.mrb[139].mxu1  ;;  %v3179_v0 = vpop.permute.xlu0 %3178 }
 0x217   : > { %v2897_v41 = vadd.f32 %v2761_v49, %v9484_v17  ;;  %v2764_v28 = vadd.f32 %v7894_v53, %v2586_v31  ;;  %v3747_v48 = vsel %vm3719_vm2, %v3735_v13, %v3746_v58  ;;  %v9717_v8 = vpack.c.bf16 %v3295_v43, %v3294_v56  ;;  %v8186_v13 = vld [vmem:[%s11119_s3 + $0xd0] sm:$0xff]  }
 0x218   : > { %v3010_v62 = vadd.f32 %v9618_v61, %v2895_v34  ;;  %v2896_v27 = vadd.f32 %v2756_v33, %v9497_v47  ;;  %7935 = vmatprep.mubr.bf16.mxu1 %v3747_v48  ;;  %v9721_v45 = vor.u32 %v3414_v39, %v3411_v51  ;;  %3349 = vst [vmem:[#allocation3 + $0x38] sm:$0xff] %v9713_v25  ;;  %v3751_v5 = vrot.slane %v3749_v20, 7  ;;  %v8187_v33 = vld [vmem:[%s11119_s3 + $0xd8] sm:$0xff]  }
 0x219   : > { %v3012_v21 = vadd.f32 %v9618_v61, %v2897_v41  ;;  %v2898_v17 = vadd.f32 %v2764_v28, %v9494_v54  ;;  %v3752_v2 = vshll.u32 %v9676_v4, 16  ;;  %5233 = vmatpush1.bf16.msra.mxu1 %v8184_v50  ;;  %3348 = vst [vmem:[#allocation3 + $0x30] sm:$0xff] %v9717_v8  ;;  %v9732_v10 = vpop.f32.mrb[124].mxu0  ;;  %v3634_v54 = vrot.slane %v9676_v4, 7  ;;  %v3184_v41 = vpop.permute.xlu1 %3183 }
 0x21a   : > { %v3046_v47 = vmax.f32 %v3010_v62, 0.0  ;;  %v3011_v32 = vadd.f32 %v9618_v61, %v2896_v27  ;;  %v3416_v56 = vsel %vm3381_vm1, %v9680_v30, %v9721_v45  ;;  %5234 = vmatprep.subr.bf16.mxu1 %v9652_v44  ;;  %v2768_v53 = vpop.f32.mrb[125].mxu0  ;;  %v3757_v51 = vshrl.u32 %v9672_v63, 16 }
 0x21b   : > { %v3048_v23 = vmax.f32 %v3012_v21, 0.0  ;;  %v3013_v15 = vadd.f32 %v9618_v61, %v2898_v17  ;;  %4199 = vmatmul.mubr.bf16.gmra.mrb[152].mxu0 %v3416_v56  ;;  %v3754_v57 = vor.u32 %v3752_v2, %v3751_v5  ;;  %v2591_v11 = vpop.f32.mrb[140].mxu1  ;;  %v9741_v38 = vpop.f32.mrb[126].mxu0  ;;  %v3635_v30 = vsel %vm3626_vm0, %v3632_v55, %v3634_v54 }
 0x21c   : > { %v3298_v12 = vmul.f32 %v3169_v9, %v3046_v47  ;;  %v3047_v49 = vmax.f32 %v3011_v32, 0.0  ;;  %v3760_v58 = vshll.u32 %v9672_v63, 16  ;;  %v2769_v43 = vadd.f32 %v2768_v53, %v2591_v11  ;;  %v2593_v34 = vpop.f32.mrb[141].mxu1  ;;  %v2771_v31 = vpop.f32.mrb[127].mxu0  ;;  %4206 = vmatprep.mubr.bf16.mxu0 %v3635_v30 }
 0x21d   : > { %v3300_v39 = vmul.f32 %v3179_v0, %v3048_v23  ;;  %v3049_v50 = vmax.f32 %v3013_v15, 0.0  ;;  %v3755_v9 = vsel %vm3719_vm2, %v9697_v42, %v3754_v57  ;;  %5235 = vmatpush1.bf16.msra.mxu1 %v8186_v13  ;;  %v2594_v28 = vpop.f32.mrb[142].mxu1  ;;  %v3759_v55 = vrot.slane %v3757_v51, 7  ;;  %v3194_v4 = vpop.permute.xlu1 %3193 }
 0x21e   : > { %v3299_v14 = vmul.f32 %v3174_v40, %v3047_v49  ;;  %7936 = vmatmul.mubr.bf16.gmra.mrb[184].mxu1 %v3755_v9  ;;  %v3420_v60 = vrot.slane %v3749_v20, 6  ;;  %v3423_v48 = vrot.slane %v3752_v2, 7  ;;  %5236 = vmatprep.subr.bf16.mxu1 %v9652_v44  ;;  %v2899_v27 = vadd.f32 %v2769_v43, %v9511_v36  ;;  %v2596_v42 = vpop.f32.mrb[143].mxu1  ;;  %v8188_v36 = vld [vmem:[%s11119_s3 + $0xe0] sm:$0xff]  }
 0x21f   : > { %v3301_v62 = vmul.f32 %v3184_v41, %v3049_v50  ;;  %v2772_v21 = vadd.f32 %v2771_v31, %v2594_v28  ;;  %v3765_v17 = vshrl.u32 %v9717_v8, 16  ;;  %v3762_v47 = vor.u32 %v3760_v58, %v3759_v55 }
 0x220   : > { %v9757_v13 = vpack.c.bf16 %v3299_v14, %v3298_v12  ;;  %v3424_v32 = vor.u32 %v3423_v48, %v3420_v60  ;;  %v3768_v40 = vshll.u32 %v9717_v8, 16  ;;  %v3014_v20 = vadd.f32 %v9618_v61, %v2899_v27  ;;  %v3189_v12 = vpop.permute.xlu0 %3188 }
 0x221   : > { %v9760_v56 = vpack.c.bf16 %v3301_v62, %v3300_v39  ;;  %v2900_v2 = vadd.f32 %v2772_v21, %v9520_v22  ;;  %v3767_v0 = vrot.slane %v3765_v17, 7  ;;  %5237 = vmatpush1.bf16.msra.mxu1 %v8187_v33  ;;  %v3763_v23 = vsel %vm3719_vm2, %v3751_v5, %v3762_v47  ;;  %v9773_v53 = vpop.f32.mrb[128].mxu0 }
 0x222   : > { %3350 = vst [vmem:[#allocation3 + $0x40] sm:$0xff] %v9757_v13  ;;  %v3425_v15 = vsel %vm3381_vm1, %v9721_v45, %v3424_v32  ;;  %v3636_v57 = vrot.slane %v9672_v63, 7  ;;  %v3773_v22 = vshrl.u32 %v9713_v25, 16  ;;  %5238 = vmatprep.subr.bf16.mxu1 %v9652_v44  ;;  %v3050_v49 = vmax.f32 %v3014_v20, 0.0  ;;  %7939 = vmatprep.mubr.bf16.mxu1 %v3763_v23  ;;  %v9783_v30 = vpop.f32.mrb[129].mxu0 }
 0x223   : > { %3351 = vst [vmem:[#allocation3 + $0x48] sm:$0xff] %v9760_v56  ;;  %v3015_v11 = vadd.f32 %v9618_v61, %v2900_v2  ;;  %4207 = vmatmul.mubr.bf16.gmra.mrb[156].mxu0 %v3425_v15  ;;  %v3770_v5 = vor.u32 %v3768_v40, %v3767_v0  ;;  %v3776_v45 = vshll.u32 %v9713_v25, 16  ;;  %v2599_v63 = vpop.f32.mrb[144].mxu1  ;;  %v9790_v43 = vpop.f32.mrb[130].mxu0  ;;  %v3429_v34 = vrot.slane %v3757_v51, 6 }
 0x224   : > { %v3637_v39 = vsel %vm3626_vm0, %v3634_v54, %v3636_v57  ;;  %v3775_v50 = vrot.slane %v3773_v22, 7  ;;  %v3432_v31 = vrot.slane %v3760_v58, 7  ;;  %v3302_v9 = vmul.f32 %v3189_v12, %v3050_v49  ;;  %v2601_v14 = vpop.f32.mrb[145].mxu1  ;;  %v9794_v60 = vpop.f32.mrb[131].mxu0 }
 0x225   : > { %v3051_v33 = vmax.f32 %v3015_v11, 0.0  ;;  %v2777_v41 = vadd.f32 %v9732_v10, %v2599_v63  ;;  %v3771_v28 = vsel %vm3719_vm2, %v3759_v55, %v3770_v5  ;;  %4214 = vmatprep.mubr.bf16.mxu0 %v3637_v39  ;;  %5239 = vmatpush1.bf16.msra.mxu1 %v8188_v36  ;;  %v2602_v54 = vpop.f32.mrb[146].mxu1  ;;  %v3781_v51 = vshrl.u32 %v9757_v13, 16  ;;  %v8189_v10 = vld [vmem:[%s11119_s3 + $0xe8] sm:$0xff]   ;;  %v3199_v63 = vpop.permute.xlu0 %3198 }
 0x226   : > { %7940 = vmatmul.mubr.bf16.gmra.mrb[188].mxu1 %v3771_v28  ;;  %v3778_v48 = vor.u32 %v3776_v45, %v3775_v50  ;;  %v3433_v62 = vor.u32 %v3432_v31, %v3429_v34  ;;  %v3784_v58 = vshll.u32 %v9757_v13, 16  ;;  %5240 = vmatprep.subr.bf16.mxu1 %v9652_v44  ;;  %v2780_v21 = vadd.f32 %v9741_v38, %v2602_v54  ;;  %v2604_v42 = vpop.f32.mrb[147].mxu1 }
 0x227   : > { %v3303_v55 = vmul.f32 %v3194_v4, %v3051_v33  ;;  %v2901_v27 = vadd.f32 %v2777_v41, %v9507_v19  ;;  %v3638_v47 = vrot.slane %v9717_v8, 7  ;;  %v3783_v36 = vrot.slane %v3781_v51, 7  ;;  %v8191_v8 = vld [vmem:[%s11119_s3 + $0xf0] sm:$0xff]  }
 0x228   : > { %v3779_v20 = vsel %vm3719_vm2, %v3767_v0, %v3778_v48  ;;  %v3434_v2 = vsel %vm3381_vm1, %v3424_v32, %v3433_v62  ;;  %v3789_v23 = vshrl.u32 %v9760_v56, 16  ;;  %v2902_v49 = vadd.f32 %v2780_v21, %v9517_v37 }
 0x229   : > { %v9810_v15 = vpack.c.bf16 %v3303_v55, %v3302_v9  ;;  %v3016_v12 = vadd.f32 %v9618_v61, %v2901_v27  ;;  %7943 = vmatprep.mubr.bf16.mxu1 %v3779_v20  ;;  %v3639_v19 = vsel %vm3626_vm0, %v3636_v57, %v3638_v47  ;;  %v3786_v38 = vor.u32 %v3784_v58, %v3783_v36  ;;  %v9822_v5 = vpop.f32.mrb[132].mxu0  ;;  %v3204_v55 = vpop.permute.xlu1 %3203 }
 0x22a   : > { %v3791_v0 = vrot.slane %v3789_v23, 7  ;;  %v3792_v32 = vshll.u32 %v9760_v56, 16  ;;  %v3438_v11 = vrot.slane %v3765_v17, 6  ;;  %5241 = vmatpush1.bf16.msra.mxu1 %v8189_v10  ;;  %v3017_v57 = vadd.f32 %v9618_v61, %v2902_v49  ;;  %v9829_v31 = vpop.f32.mrb[133].mxu0 }
 0x22b   : > { %3352 = vst [vmem:[#allocation3 + $0x50] sm:$0xff] %v9810_v15  ;;  %v3052_v37 = vmax.f32 %v3016_v12, 0.0  ;;  %4215 = vmatmul.mubr.bf16.gmra.mrb[160].mxu0 %v3434_v2  ;;  %v3441_v39 = vrot.slane %v3768_v40, 7  ;;  %v3797_v34 = vshrl.u32 %v9810_v15, 16  ;;  %5242 = vmatprep.subr.bf16.mxu1 %v9652_v44  ;;  %v2607_v17 = vpop.f32.mrb[148].mxu1  ;;  %v3787_v9 = vsel %vm3719_vm2, %v3775_v50, %v3786_v38  ;;  %v9837_v28 = vpop.f32.mrb[134].mxu0 }
 0x22c   : > { %4222 = vmatprep.mubr.bf16.mxu0 %v3639_v19  ;;  %v3794_v33 = vor.u32 %v3792_v32, %v3791_v0  ;;  %v3800_v41 = vshll.u32 %v9810_v15, 16  ;;  %v3640_v14 = vrot.slane %v9713_v25, 7  ;;  %v3053_v4 = vmax.f32 %v3017_v57, 0.0  ;;  %v2609_v48 = vpop.f32.mrb[149].mxu1  ;;  %v9843_v10 = vpop.f32.mrb[135].mxu0 }
 0x22d   : > { %v3304_v40 = vmul.f32 %v3199_v63, %v3052_v37  ;;  %v2785_v54 = vadd.f32 %v9783_v30, %v2607_v17  ;;  %v3442_v50 = vor.u32 %v3441_v39, %v3438_v11  ;;  %v2610_v27 = vpop.f32.mrb[150].mxu1  ;;  %v9848_v42 = vrot.slane %v3797_v34, 7  ;;  %v3209_v17 = vpop.permute.xlu0 %3208  ;;  %v8193_v48 = vld [vmem:[%s11119_s3 + $0x100] sm:$0xff]  }
 0x22e   : > { %7944 = vmatmul.mubr.bf16.gmra.mrb[192].mxu1 %v3787_v9  ;;  %v3795_v21 = vsel %vm3719_vm2, %v3783_v36, %v3794_v33  ;;  %v3641_v20 = vsel %vm3626_vm0, %v3638_v47, %v3640_v14  ;;  %v3447_v2 = vrot.slane %v3773_v22, 6  ;;  %v3305_v12 = vmul.f32 %v3204_v55, %v3053_v4  ;;  %v2612_v19 = vpop.f32.mrb[151].mxu1 }
 0x22f   : > { %v2903_v30 = vadd.f32 %v2785_v54, %v9531_v26  ;;  %v2788_v49 = vadd.f32 %v9794_v60, %v2610_v27  ;;  %7947 = vmatprep.mubr.bf16.mxu1 %v3795_v21  ;;  %v3443_v38 = vsel %vm3381_vm1, %v3433_v62, %v3442_v50  ;;  %v3802_v36 = vor.u32 %v3800_v41, %v9848_v42  ;;  %v8192_v26 = vld [vmem:[%s11119_s3 + $0xf8] sm:$0xff]  }
 0x230   : > { %v3450_v11 = vrot.slane %v3776_v45, 7  ;;  %v3642_v47 = vrot.slane %v9757_v13, 7  ;;  %v3456_v63 = vrot.slane %v3781_v51, 6  ;;  %5243 = vmatpush1.bf16.msra.mxu1 %v8191_v8  ;;  %v9865_v22 = vpack.c.bf16 %v3305_v12, %v3304_v40  ;;  %v3214_v12 = vpop.permute.xlu1 %3213 }
 0x231   : > { %v3018_v60 = vadd.f32 %v9618_v61, %v2903_v30  ;;  %v2904_v62 = vadd.f32 %v2788_v49, %v9540_v59  ;;  %v3459_v37 = vrot.slane %v3784_v58, 7  ;;  %5244 = vmatprep.subr.bf16.mxu1 %v9652_v44  ;;  %v3803_v25 = vsel %vm3719_vm2, %v3791_v0, %v3802_v36  ;;  %v9876_v57 = vpop.f32.mrb[136].mxu0 }
 0x232   : > { %v3451_v45 = vor.u32 %v3450_v11, %v3447_v2  ;;  %v9874_v51 = vsel %vm3626_vm0, %v3640_v14, %v3642_v47  ;;  %v3644_v39 = vrot.slane %v9760_v56, 7  ;;  %3353 = vst [vmem:[#allocation3 + $0x58] sm:$0xff] %v9865_v22  ;;  %v3805_v13 = vshrl.u32 %v9865_v22, 16  ;;  %v9883_v0 = vpop.f32.mrb[137].mxu0 }
 0x233   : > { %v3054_v9 = vmax.f32 %v3018_v60, 0.0  ;;  %v3019_v59 = vadd.f32 %v9618_v61, %v2904_v62  ;;  %4223 = vmatmul.mubr.bf16.gmra.mrb[164].mxu0 %v3443_v38  ;;  %v3808_v58 = vshll.u32 %v9865_v22, 16  ;;  %v2615_v33 = vpop.f32.mrb[152].mxu1  ;;  %v3460_v8 = vor.u32 %v3459_v37, %v3456_v63  ;;  %v9889_v4 = vpop.f32.mrb[138].mxu0 }
 0x234   : > { %4230 = vmatprep.mubr.bf16.mxu0 %v3641_v20  ;;  %v3452_v14 = vsel %vm3381_vm1, %v3442_v50, %v3451_v45  ;;  %v9887_v40 = vsel %vm3626_vm0, %v3642_v47, %v3644_v39  ;;  %v3465_v54 = vrot.slane %v3789_v23, 6  ;;  %5245 = vmatpush1.bf16.msra.mxu1 %v8192_v26  ;;  %v2793_v21 = vadd.f32 %v9773_v53, %v2615_v33  ;;  %v2617_v20 = vpop.f32.mrb[153].mxu1  ;;  %v9899_v2 = vpop.f32.mrb[139].mxu0 }
 0x235   : > { %v3306_v55 = vmul.f32 %v3209_v17, %v3054_v9  ;;  %v3055_v27 = vmax.f32 %v3019_v59, 0.0  ;;  %v9897_v50 = vrot.slane %v3805_v13, 7  ;;  %5246 = vmatprep.subr.bf16.mxu1 %v9652_v44  ;;  %v2618_v30 = vpop.f32.mrb[154].mxu1  ;;  %v9903_v23 = vsel %vm3381_vm1, %v3451_v45, %v3460_v8 }
 0x236   : > { %7948 = vmatmul.mubr.bf16.gmra.mrb[196].mxu1 %v3803_v25  ;;  %v3468_v49 = vrot.slane %v3792_v32, 7  ;;  %v3646_v19 = vrot.slane %v9810_v15, 7  ;;  %v3474_v53 = vrot.slane %v3797_v34, 6  ;;  %v2905_v36 = vadd.f32 %v2793_v21, %v9527_v52  ;;  %v2620_v47 = vpop.f32.mrb[155].mxu1  ;;  %v8194_v34 = vld [vmem:[%s11119_s3 + $0x108] sm:$0xff]  }
 0x237   : > { %v3307_v38 = vmul.f32 %v3214_v12, %v3055_v27  ;;  %v2796_v11 = vadd.f32 %v9790_v43, %v2618_v30  ;;  %v3810_v63 = vor.u32 %v3808_v58, %v9897_v50  ;;  %v3477_v56 = vrot.slane %v3800_v41, 7  ;;  %v3224_v30 = vpop.permute.xlu1 %3223 }
 0x238   : > { %v3469_v26 = vor.u32 %v3468_v49, %v3465_v54  ;;  %v9914_v60 = vsel %vm3626_vm0, %v3644_v39, %v3646_v19  ;;  %v3648_v32 = vrot.slane %v9865_v22, 7  ;;  %5247 = vmatpush1.bf16.msra.mxu1 %v8193_v48  ;;  %v3020_v43 = vadd.f32 %v9618_v61, %v2905_v36  ;;  %v3219_v39 = vpop.permute.xlu0 %3218 }
 0x239   : > { %v9922_v52 = vpack.c.bf16 %v3307_v38, %v3306_v55  ;;  %v2906_v62 = vadd.f32 %v2796_v11, %v9537_v1  ;;  %v3811_v37 = vsel %vm3719_vm2, %v9848_v42, %v3810_v63  ;;  %5248 = vmatprep.subr.bf16.mxu1 %v9652_v44  ;;  %v3478_v41 = vor.u32 %v3477_v56, %v3474_v53  ;;  %v9932_v22 = vpop.f32.mrb[140].mxu0 }
 0x23a   : > { %7951 = vmatprep.mubr.bf16.mxu1 %v3811_v37  ;;  %v9930_v15 = vsel %vm3381_vm1, %v3460_v8, %v3469_v26  ;;  %v9935_v25 = vsel %vm3626_vm0, %v3646_v19, %v3648_v32  ;;  %v3483_v45 = vrot.slane %v3805_v13, 6  ;;  %v3056_v1 = vmax.f32 %v3020_v43, 0.0  ;;  %v9941_v59 = vpop.f32.mrb[141].mxu0 }
 0x23b   : > { %3354 = vst [vmem:[#allocation3 + $0x60] sm:$0xff] %v9922_v52  ;;  %v3021_v17 = vadd.f32 %v9618_v61, %v2906_v62  ;;  %4231 = vmatmul.mubr.bf16.gmra.mrb[168].mxu0 %v3452_v14  ;;  %v3813_v42 = vshrl.u32 %v9922_v52, 16  ;;  %v3816_v9 = vshll.u32 %v9922_v52, 16  ;;  %v2623_v33 = vpop.f32.mrb[156].mxu1  ;;  %v9945_v8 = vsel %vm3381_vm1, %v3469_v26, %v3478_v41  ;;  %v9947_v13 = vpop.f32.mrb[142].mxu0  ;;  %v8195_v14 = vld [vmem:[%s11119_s3 + $0x110] sm:$0xff]  }
 0x23c   : > { %4238 = vmatprep.mubr.bf16.mxu0 %v9874_v51  ;;  %v3486_v54 = vrot.slane %v3808_v58, 7  ;;  %v3650_v48 = vrot.slane %v9922_v52, 7  ;;  %5249 = vmatpush1.bf16.msra.mxu1 %v8194_v34  ;;  %v3308_v55 = vmul.f32 %v3219_v39, %v3056_v1  ;;  %v2801_v21 = vadd.f32 %v9829_v31, %v2623_v33  ;;  %v2625_v20 = vpop.f32.mrb[157].mxu1  ;;  %v9954_v51 = vpop.f32.mrb[143].mxu0  ;;  %v8197_v34 = vld [vmem:[%s11119_s3 + $0x118] sm:$0xff]   ;;  %v8198_v39 = vld [vmem:[%s11119_s3 + $0x120] sm:$0xff]  }
 0x23d   : > { %v3057_v27 = vmax.f32 %v3021_v17, 0.0  ;;  %v3815_v12 = vrot.slane %v3813_v42, 7  ;;  %5250 = vmatprep.subr.bf16.mxu1 %v9652_v44  ;;  %v2626_v49 = vpop.f32.mrb[158].mxu1  ;;  %v3492_v53 = vrot.slane %v3813_v42, 6  ;;  %v3495_v38 = vrot.slane %v3816_v9, 7  ;;  %v3229_v1 = vpop.permute.xlu0 %3228 }
 0x23e   : > { %v3487_v58 = vor.u32 %v3486_v54, %v3483_v45  ;;  %v9958_v19 = vsel %vm3626_vm0, %v3648_v32, %v3650_v48  ;;  %v2907_v11 = vadd.f32 %v2801_v21, %v9554_v18  ;;  %v2804_v47 = vadd.f32 %v9843_v10, %v2626_v49  ;;  %v2628_v31 = vpop.f32.mrb[159].mxu1  ;;  %v3234_v33 = vpop.permute.xlu1 %3233 }
 0x23f   : > { %v3309_v36 = vmul.f32 %v3224_v30, %v3057_v27  ;;  %v3818_v63 = vor.u32 %v3816_v9, %v3815_v12  ;;  %v3496_v56 = vor.u32 %v3495_v38, %v3492_v53  ;;  %v8199_v53 = vld [vmem:[%s11119_s3 + $0x128] sm:$0xff]  }
 0x240   : > { %v9963_v26 = vsel %vm3381_vm1, %v3478_v41, %v3487_v58  ;;  %5251 = vmatpush1.bf16.msra.mxu1 %v8195_v14  ;;  %v3022_v52 = vadd.f32 %v9618_v61, %v2907_v11  ;;  %v2908_v43 = vadd.f32 %v2804_v47, %v9561_v16 }
 0x241   : > { %v9968_v32 = vpack.c.bf16 %v3309_v36, %v3308_v55  ;;  %v3819_v18 = vsel %vm3719_vm2, %v9897_v50, %v3818_v63  ;;  %5252 = vmatprep.subr.bf16.mxu1 %v9652_v44  ;;  %v9976_v10 = vsel %vm3381_vm1, %v3487_v58, %v3496_v56 }
 0x242   : > { %7952 = vmatmul.mubr.bf16.gmra.mrb[200].mxu1 %v3819_v18  ;;  %v3058_v62 = vmax.f32 %v3022_v52, 0.0  ;;  %v3023_v37 = vadd.f32 %v9618_v61, %v2908_v43  ;;  %v3244_v18 = vpop.permute.xlu1 %3243 }
 0x243   : > { %3355 = vst [vmem:[#allocation3 + $0x68] sm:$0xff] %v9968_v32  ;;  %4239 = vmatmul.mubr.bf16.gmra.mrb[172].mxu0 %v9903_v23  ;;  %v3821_v41 = vshrl.u32 %v9968_v32, 16  ;;  %v3824_v16 = vshll.u32 %v9968_v32, 16  ;;  %v2631_v45 = vpop.f32.mrb[160].mxu1  ;;  %v3652_v50 = vrot.slane %v9968_v32, 7 }
 0x244   : > { %4246 = vmatprep.mubr.bf16.mxu0 %v9887_v40  ;;  %5253 = vmatpush1.bf16.msra.mxu1 %v8197_v34  ;;  %v3059_v17 = vmax.f32 %v3023_v37, 0.0  ;;  %v2809_v42 = vadd.f32 %v9822_v5, %v2631_v45  ;;  %v2633_v9 = vpop.f32.mrb[161].mxu1  ;;  %v3310_v54 = vmul.f32 %v3229_v1, %v3058_v62  ;;  %v3239_v34 = vpop.permute.xlu0 %3238 }
 0x245   : > { %v3823_v23 = vrot.slane %v3821_v41, 7  ;;  %5254 = vmatprep.subr.bf16.mxu1 %v9652_v44  ;;  %v2634_v14 = vpop.f32.mrb[162].mxu1  ;;  %v9991_v40 = vsel %vm3626_vm0, %v3650_v48, %v3652_v50  ;;  %v3501_v55 = vrot.slane %v3821_v41, 6  ;;  %v3504_v27 = vrot.slane %v3824_v16, 7  ;;  %v8202_v9 = vld [vmem:[%s11119_s3 + $0x138] sm:$0xff]  }
 0x246   : > { %v3311_v21 = vmul.f32 %v3234_v33, %v3059_v17  ;;  %v2909_v20 = vadd.f32 %v2809_v42, %v9550_v35  ;;  %v2812_v30 = vadd.f32 %v9837_v28, %v2634_v14  ;;  %v2636_v49 = vpop.f32.mrb[163].mxu1 }
 0x247   : > { %v3826_v58 = vor.u32 %v3824_v16, %v3823_v23  ;;  %v3505_v5 = vor.u32 %v3504_v27, %v3501_v55 }
 0x248   : > { %5255 = vmatpush1.bf16.msra.mxu1 %v8198_v39  ;;  %v9998_v38 = vpack.c.bf16 %v3311_v21, %v3310_v54  ;;  %v3024_v48 = vadd.f32 %v9618_v61, %v2909_v20  ;;  %v2910_v36 = vadd.f32 %v2812_v30, %v9558_v29  ;;  %v3249_v20 = vpop.permute.xlu0 %3248 }
 0x249   : > { %v3827_v11 = vsel %vm3719_vm2, %v3815_v12, %v3826_v58  ;;  %5256 = vmatprep.subr.bf16.mxu1 %v9652_v44  ;;  %v10005_v35 = vsel %vm3381_vm1, %v3496_v56, %v3505_v5  ;;  %v8200_v56 = vld [vmem:[%s11119_s3 + $0x130] sm:$0xff]  }
 0x24a   : > { %7955 = vmatprep.mubr.bf16.mxu1 %v3827_v11  ;;  %3356 = vst [vmem:[#allocation3 + $0x70] sm:$0xff] %v9998_v38  ;;  %v3060_v28 = vmax.f32 %v3024_v48, 0.0  ;;  %v3025_v47 = vadd.f32 %v9618_v61, %v2910_v36  ;;  %v3829_v31 = vshrl.u32 %v9998_v38, 16  ;;  %v3832_v63 = vshll.u32 %v9998_v38, 16 }
 0x24b   : > { %4247 = vmatmul.mubr.bf16.gmra.mrb[176].mxu0 %v9930_v15  ;;  %v2639_v29 = vpop.f32.mrb[164].mxu1  ;;  %v3654_v12 = vrot.slane %v9998_v38, 7 }
 0x24c   : > { %4254 = vmatprep.mubr.bf16.mxu0 %v9914_v60  ;;  %5257 = vmatpush1.bf16.msra.mxu1 %v8199_v53  ;;  %v3061_v32 = vmax.f32 %v3025_v47, 0.0  ;;  %v2817_v52 = vadd.f32 %v9883_v0, %v2639_v29  ;;  %v2641_v43 = vpop.f32.mrb[165].mxu1  ;;  %v3831_v15 = vrot.slane %v3829_v31, 7  ;;  %v3312_v62 = vmul.f32 %v3239_v34, %v3060_v28  ;;  %v10058_v29 = vld [vmem:[%s11118_s2] ss:$0 sm:$0xff] }
 0x24d   : > { %5258 = vmatprep.subr.bf16.mxu1 %v9652_v44  ;;  %v2642_v37 = vpop.f32.mrb[166].mxu1  ;;  %v10020_v60 = vsel %vm3626_vm0, %v3652_v50, %v3654_v12  ;;  %v3510_v41 = vrot.slane %v3829_v31, 6  ;;  %v3513_v16 = vrot.slane %v3832_v63, 7 }
 0x24e   : > { %v3313_v45 = vmul.f32 %v3244_v18, %v3061_v32  ;;  %v2911_v39 = vadd.f32 %v2817_v52, %v9576_v46  ;;  %v2820_v1 = vadd.f32 %v9899_v2, %v2642_v37  ;;  %v2644_v17 = vpop.f32.mrb[167].mxu1  ;;  %v3834_v42 = vor.u32 %v3832_v63, %v3831_v15  ;;  %v10036_v46 = vld [vmem:[%s11119_s3 + $0x200] sm:$0xff]  }
 0x24f   : > { %v3514_v0 = vor.u32 %v3513_v16, %v3510_v41 }
 0x250   : > { %5259 = vmatpush1.bf16.msra.mxu1 %v8200_v56  ;;  %v10027_v33 = vpack.c.bf16 %v3313_v45, %v3312_v62  ;;  %v3026_v50 = vadd.f32 %v9618_v61, %v2911_v39  ;;  %v2912_v54 = vadd.f32 %v2820_v1, %v9585_v7  ;;  %v3835_v14 = vsel %vm3719_vm2, %v3823_v23, %v3834_v42 }
 0x251   : > { %5260 = vmatprep.subr.bf16.mxu1 %v9652_v44  ;;  %7956 = vmatmul.mubr.bf16.gmra.mrb[204].mxu1 %v3835_v14  ;;  %v10039_v2 = vsel %vm3381_vm1, %v3505_v5, %v3514_v0 }
 0x252   : > { %3357 = vst [vmem:[#allocation3 + $0x78] sm:$0xff] %v10027_v33  ;;  %v3062_v55 = vmax.f32 %v3026_v50, 0.0  ;;  %v3027_v27 = vadd.f32 %v9618_v61, %v2912_v54  ;;  %v3837_v7 = vshrl.u32 %v10027_v33, 16  ;;  %v3840_v44 = vshll.u32 %v10027_v33, 16  ;;  %v3254_v61 = vpop.permute.xlu1 %3253 }
 0x253   : > { %4255 = vmatmul.mubr.bf16.gmra.mrb[180].mxu0 %v9945_v8  ;;  %v2647_v23 = vpop.f32.mrb[168].mxu1  ;;  %v3656_v21 = vrot.slane %v10027_v33, 7 }
 0x254   : > { %4262 = vmatprep.mubr.bf16.mxu0 %v9935_v25  ;;  %5261 = vmatpush1.bf16.msra.mxu1 %v8202_v9  ;;  %v3063_v30 = vmax.f32 %v3027_v27, 0.0  ;;  %v2825_v49 = vadd.f32 %v9876_v57, %v2647_v23  ;;  %v2649_v58 = vpop.f32.mrb[169].mxu1  ;;  %v3839_v5 = vrot.slane %v3837_v7, 7  ;;  %v3314_v8 = vmul.f32 %v3249_v20, %v3062_v55  ;;  %v11182_v23 = vld [vmem:[#allocation9_spill] sm:$0xff] }
 0x255   : > { %8019 = vmatprep.subr.bf16.mxu1 %v10036_v46  ;;  %v2650_v53 = vpop.f32.mrb[170].mxu1  ;;  %v10051_v38 = vsel %vm3626_vm0, %v3654_v12, %v3656_v21  ;;  %v3519_v48 = vrot.slane %v3837_v7, 6  ;;  %v3522_v36 = vrot.slane %v3840_v44, 7 }
 0x256   : > { %v3315_v25 = vmul.f32 %v3254_v61, %v3063_v30  ;;  %v2913_v11 = vadd.f32 %v2825_v49, %v9572_v3  ;;  %v2828_v28 = vadd.f32 %v9889_v4, %v2650_v53  ;;  %v2652_v47 = vpop.f32.mrb[171].mxu1  ;;  %v3842_v31 = vor.u32 %v3840_v44, %v3839_v5  ;;  %v3259_v4 = vpop.permute.xlu0 %3258 }
 0x257   : > { %v3523_v57 = vor.u32 %v3522_v36, %v3519_v48  ;;  %v3264_v62 = vpop.permute.xlu1 %3263 }
 0x258   : > { %v3340_v63 = vpack.c.bf16 %v3315_v25, %v3314_v8  ;;  %v3028_v56 = vadd.f32 %v10058_v29, %v2913_v11  ;;  %v2914_v12 = vadd.f32 %v2828_v28, %v9582_v24  ;;  %v3843_v34 = vsel %vm3719_vm2, %v3831_v15, %v3842_v31 }
 0x259   : > { %7959 = vmatprep.mubr.bf16.mxu1 %v3843_v34  ;;  %v10064_v3 = vsel %vm3381_vm1, %v3514_v0, %v3523_v57  ;;  %v10070_v39 = vpop.f32.mrb[144].mxu0 }
 0x25a   : > { %3358 = vst [vmem:[#allocation3 + $0x80] sm:$0xff] %v3340_v63  ;;  %v3064_v32 = vmax.f32 %v3028_v56, 0.0  ;;  %v3029_v52 = vadd.f32 %v10058_v29, %v2914_v12  ;;  %v3845_v43 = vshrl.u32 %v3340_v63, 16  ;;  %v3848_v18 = vshll.u32 %v3340_v63, 16  ;;  %11180 = vst [vmem:[#allocation7_spill] sm:$0xff] %v10070_v39  ;;  %v4186_v9 = vpop.f32.mrb[145].mxu0  ;;  %v3269_v8 = vpop.permute.xlu0 %3268 }
 0x25b   : > { %4263 = vmatmul.mubr.bf16.gmra.mrb[184].mxu0 %v9963_v26  ;;  %v2655_v37 = vpop.f32.mrb[172].mxu1  ;;  %v3658_v24 = vrot.slane %v3340_v63, 7  ;;  %v3274_v11 = vpop.permute.xlu1 %3273  ;;  %v4540_v9 = vld [vmem:[#allocation3 + $0x8] sm:$0x80] }
 0x25c   : > { %4270 = vmatprep.mubr.bf16.mxu0 %v9958_v19  ;;  %v3065_v41 = vmax.f32 %v3029_v52, 0.0  ;;  %v2833_v15 = vadd.f32 %v9941_v59, %v2655_v37  ;;  %v2657_v16 = vpop.f32.mrb[173].mxu1  ;;  %v3847_v45 = vrot.slane %v3845_v43, 7  ;;  %v3316_v1 = vmul.f32 %v3259_v4, %v3064_v32  ;;  %v10077_v59 = vpop.f32.mrb[146].mxu0  ;;  %v10107_v37 = vld [vmem:[#allocation3 + $0x10] sm:$0xff] }
 0x25d   : > { %v2658_v17 = vpop.f32.mrb[174].mxu1  ;;  %v10073_v42 = vsel %vm3626_vm0, %v3656_v21, %v3658_v24  ;;  %v3528_v26 = vrot.slane %v3845_v43, 6  ;;  %v3531_v0 = vrot.slane %v3848_v18, 7  ;;  %11181 = vst [vmem:[#allocation12_spill] sm:$0xff] %v10077_v59  ;;  %v4189_v27 = vpop.f32.mrb[147].mxu0  ;;  %v11184_v43 = vld [vmem:[#allocation6_spill] sm:$0xff] }
 0x25e   : > { %v3317_v33 = vmul.f32 %v3264_v62, %v3065_v41  ;;  %v2915_v50 = vadd.f32 %v2833_v15, %v9602_v6  ;;  %v2836_v19 = vadd.f32 %v9954_v51, %v2658_v17  ;;  %v2660_v54 = vpop.f32.mrb[175].mxu1  ;;  %v3850_v14 = vor.u32 %v3848_v18, %v3847_v45 }
 0x25f   : > { %v3532_v55 = vor.u32 %v3531_v0, %v3528_v26  ;;  %v3279_v26 = vpop.permute.xlu0 %3278  ;;  %v3284_v0 = vpop.permute.xlu1 %3283 }
 0x260   : > { %v10079_v7 = vpack.c.bf16 %v3317_v33, %v3316_v1  ;;  %v3030_v44 = vadd.f32 %v10058_v29, %v2915_v50  ;;  %v2916_v21 = vadd.f32 %v2836_v19, %v11182_v23  ;;  %v3851_v20 = vsel %vm3719_vm2, %v3839_v5, %v3850_v14 }
 0x261   : > { %7960 = vmatmul.mubr.bf16.gmra.mrb[208].mxu1 %v3851_v20  ;;  %v10085_v30 = vsel %vm3381_vm1, %v3523_v57, %v3532_v55  ;;  %v4560_v14 = vshrl.u32 %v4540_v9, 16 }
 0x262   : > { %3359 = vst [vmem:[#allocation3 + $0x88] sm:$0xff] %v10079_v7  ;;  %v3066_v6 = vmax.f32 %v3030_v44, 0.0  ;;  %v3031_v51 = vadd.f32 %v10058_v29, %v2916_v21  ;;  %v3853_v49 = vshrl.u32 %v10079_v7, 16  ;;  %v3856_v58 = vshll.u32 %v10079_v7, 16 }
 0x263   : > { %4271 = vmatmul.mubr.bf16.gmra.mrb[188].mxu0 %v9976_v10  ;;  %v2663_v61 = vpop.f32.mrb[176].mxu1  ;;  %v3660_v5 = vrot.slane %v10079_v7, 7  ;;  %v4562_v27 = vrot.slane %v4560_v14, 7  ;;  %v10202_v14 = vld [vmem:[#allocation3 + $0x48] sm:$0xff] }
 0x264   : > { %4278 = vmatprep.mubr.bf16.mxu0 %v9991_v40  ;;  %v3067_v53 = vmax.f32 %v3031_v51, 0.0  ;;  %v2841_v48 = vadd.f32 %v9932_v22, %v2663_v61  ;;  %v2665_v36 = vpop.f32.mrb[177].mxu1  ;;  %v3855_v25 = vrot.slane %v3853_v49, 7  ;;  %v3318_v28 = vmul.f32 %v3269_v8, %v3066_v6  ;;  %v11183_v40 = vld [vmem:[#allocation8_spill] sm:$0xff]  ;;  %v10128_v6 = vld [vmem:[#allocation3 + $0x20] sm:$0xff]  ;;  %v8214_v61 = vld [vmem:[%s11119_s3 + $0x210] sm:$0xff]  }
 0x265   : > { %v2666_v47 = vpop.f32.mrb[178].mxu1  ;;  %v10098_v10 = vsel %vm3626_vm0, %v3658_v24, %v3660_v5  ;;  %v3537_v31 = vrot.slane %v3853_v49, 6  ;;  %v3540_v57 = vrot.slane %v3856_v58, 7  ;;  %v8209_v51 = vld [vmem:[%s11119_s3 + $0x208] sm:$0xff]  }
 0x266   : > { %v3319_v63 = vmul.f32 %v3274_v11, %v3067_v53  ;;  %v2917_v56 = vadd.f32 %v2841_v48, %v11183_v40  ;;  %v2844_v12 = vadd.f32 %v9947_v13, %v2666_v47  ;;  %v3858_v34 = vor.u32 %v3856_v58, %v3855_v25  ;;  %v2668_v4 = vpop.f32.mrb[179].mxu1  ;;  %v10143_v53 = vld [vmem:[#allocation3 + $0x28] sm:$0xff]  ;;  %v10158_v47 = vld [vmem:[#allocation3 + $0x38] sm:$0xff] }
 0x267   : > { %v10102_v22 = vor.u32 %v3540_v57, %v3537_v31  ;;  %v4583_v48 = vshll.u32 %v10128_v6, 16  ;;  %v10155_v11 = vshrl.u32 %v10143_v53, 16  ;;  %11187 = vst [vmem:[#allocation11_spill] sm:$0xff] %v10158_v47  ;;  %v8219_v31 = vld [vmem:[%s11119_s3 + $0x218] sm:$0xff]  }
 0x268   : > { %v3342_v32 = vpack.c.bf16 %v3319_v63, %v3318_v28  ;;  %v3032_v52 = vadd.f32 %v10058_v29, %v2917_v56  ;;  %v2918_v18 = vadd.f32 %v2844_v12, %v11184_v43  ;;  %v3859_v62 = vsel %vm3719_vm2, %v3847_v45, %v3858_v34 }
 0x269   : > { %7963 = vmatprep.mubr.bf16.mxu1 %v3859_v62  ;;  %v10111_v24 = vsel %vm3381_vm1, %v3532_v55, %v10102_v22  ;;  %v4564_v45 = vshrl.u32 %v10107_v37, 16  ;;  %v4567_v55 = vshll.u32 %v10107_v37, 16  ;;  %11186 = vst [vmem:[#allocation13_spill] sm:$0xff] %v10155_v11  ;;  %v5721_v12 = vrot.slane %v4583_v48, 1 }
 0x26a   : > { %3360 = vst [vmem:[#allocation3 + $0x90] sm:$0xff] %v3342_v32  ;;  %v3068_v13 = vmax.f32 %v3032_v52, 0.0  ;;  %v3033_v41 = vadd.f32 %v10058_v29, %v2918_v18  ;;  %v3861_v15 = vshrl.u32 %v3342_v32, 16  ;;  %v3864_v17 = vshll.u32 %v3342_v32, 16  ;;  %v10175_v52 = vld [vmem:[#allocation3 + $0x40] sm:$0xff] }
 0x26b   : > { %4279 = vmatmul.mubr.bf16.gmra.mrb[192].mxu0 %v10005_v35  ;;  %v4566_v35 = vrot.slane %v4564_v45, 7  ;;  %v10173_v32 = vshll.u32 %v10158_v47, 16  ;;  %v4804_v18 = vrot.slane %v4567_v55, 1 }
 0x26c   : > { %4286 = vmatprep.mubr.bf16.mxu0 %v10020_v60  ;;  %v3069_v16 = vmax.f32 %v3033_v41, 0.0  ;;  %v3863_v1 = vrot.slane %v3861_v15, 7  ;;  %v3320_v33 = vmul.f32 %v3279_v26, %v3068_v13  ;;  %v4744_v60 = vld [vmem:[#allocation3 + $0x18] sm:$0xff]  ;;  %v10137_v49 = vrot.slane %v3864_v17, 1 }
 0x26d   : > { %v4569_v44 = vor.u32 %v4567_v55, %v4566_v35  ;;  %v4572_v23 = vshrl.u32 %v4744_v60, 16  ;;  %v10190_v26 = vshll.u32 %v10175_v52, 16 }
 0x26e   : > { %v3321_v50 = vmul.f32 %v3284_v0, %v3069_v16  ;;  %v3866_v19 = vor.u32 %v3864_v17, %v3863_v1  ;;  %v10187_v17 = vshll.u32 %v10143_v53, 16 }
 0x26f   : > { %v4570_v21 = vsel %vm3719_vm2, %v4562_v27, %v4569_v44  ;;  %v4574_v20 = vrot.slane %v4572_v23, 7 }
 0x270   : > { %v10117_v54 = vpack.c.bf16 %v3321_v50, %v3320_v33  ;;  %v3867_v29 = vsel %vm3719_vm2, %v3855_v25, %v3866_v19  ;;  %11188 = vst [vmem:[#allocation14_spill] sm:$0xff] %v10187_v17  ;;  %v10196_v33 = vshrl.u32 %v10158_v47, 16  ;;  %v5745_v50 = vrot.slane %v10173_v32, 1 }
 0x271   : > { %7964 = vmatmul.mubr.bf16.gmra.mrb[212].mxu1 %v3867_v29  ;;  %v3380_v40 = vld [vmem:[#allocation3 + $0x90] sm:$0x7f]  ;;  %v4805_v29 = vor.u32 %v4804_v18, %v4564_v45 }
 0x272   : > { %3361 = vst [vmem:[#allocation3 + $0x98] sm:$0xff] %v10117_v54  ;;  %5262 = vmatprep.mubr.bf16.mxu1 %v10107_v37  ;;  %v4935_v8 = vshll.u32 %v10117_v54, 16  ;;  %v3606_v4 = vld [vmem:[#allocation3 + $0x90] sm:$0x7f]  ;;  %v3544_v41 = vshrl.u32 %v3380_v40, 16 }
 0x273   : > { %4287 = vmatmul.mubr.bf16.gmra.mrb[196].mxu0 %v10039_v2  ;;  %v4575_v2 = vshll.u32 %v4744_v60, 16  ;;  %v3662_v1 = vrot.slane %v3606_v4, 7  ;;  %v10265_v4 = vld [vmem:[#allocation3 + $0x68] sm:$0xff] }
 0x274   : > { %4294 = vmatprep.mubr.bf16.mxu0 %v10051_v38  ;;  %v4580_v38 = vshrl.u32 %v10128_v6, 16  ;;  %v10149_v36 = vrot.slane %v4935_v8, 1  ;;  %v3546_v55 = vrot.slane %v3544_v41, 6  ;;  %v6065_v41 = vrot.slane %v10196_v33, 1 }
 0x275   : > { %v4577_v58 = vor.u32 %v4575_v2, %v4574_v20  ;;  %v5716_v63 = vrot.slane %v4575_v2, 1  ;;  %v3663_v37 = vsel %vm3626_vm0, %v3660_v5, %v3662_v1  ;;  %v8226_v5 = vld [vmem:[%s11119_s3 + $0x230] sm:$0xff]  }
 0x276   : > { %v5725_v13 = vor.u32 %v5721_v12, %v4580_v38 }
 0x277   : > { %v4578_v25 = vsel %vm3719_vm2, %v4566_v35, %v4577_v58  ;;  %v5717_v43 = vor.u32 %v5716_v63, %v4572_v23  ;;  %v8225_v35 = vld [vmem:[%s11119_s3 + $0x228] sm:$0xff]   ;;  %v5749_v23 = vor.u32 %v5745_v50, %v10196_v33  ;;  %v10233_v58 = vshrl.u32 %v10175_v52, 16 }
 0x278   : > { %v4810_v8 = vsel %vm4798_vm3, %v4805_v29, %v5716_v63  ;;  %v10300_v29 = vshrl.u32 %v10265_v4, 16 }
 0x279   : > { %5263 = vmatmul.mubr.bf16.vlgmr.msra.gmra.mrb[216].mxu1 %v4570_v21  ;;  %v10184_v16 = vsel %vm4798_vm3, %v5717_v43, %v5721_v12  ;;  %v5753_v21 = vrot.slane %v10190_v26, 1  ;;  %v10267_v43 = vld [vmem:[#allocation3 + $0x70] sm:$0xff] }
 0x27a   : > { %5270 = vmatprep.mubr.bf16.mxu1 %v4744_v60  ;;  %8020 = vmatpush3.bf16.msra.mxu1 %v10036_v46  ;;  %v10151_v46 = vrot.slane %v4580_v38, 7 }
 0x27b   : > { %4295 = vmatmul.mubr.bf16.gmra.mrb[200].mxu0 %v10064_v3  ;;  %8021 = vmatprep.subr.bf16.mxu1 %v8209_v51  ;;  %v10145_v3 = vld [vmem:[#allocation3 + $0x30] sm:$0xff]  ;;  %v10225_v7 = vsel %vm4798_vm3, %v5749_v23, %v5753_v21  ;;  %v5757_v63 = vor.u32 %v5753_v21, %v10233_v58 }
 0x27c   : > { %4302 = vmatprep.mubr.bf16.mxu0 %v10073_v42  ;;  %11185 = vst [vmem:[#allocation10_spill] sm:$0xff] %v10145_v3  ;;  %v4933_v42 = vor.u32 %v10137_v49, %v3861_v15  ;;  %v4596_v28 = vshrl.u32 %v10145_v3, 16  ;;  %v4599_v56 = vshll.u32 %v10145_v3, 16  ;;  %v4585_v34 = vor.u32 %v4583_v48, %v10151_v46 }
 0x27d   : > { %v3547_v15 = vshll.u32 %v3380_v40, 16  ;;  %v10253_v40 = vld [vmem:[#allocation3 + $0x60] sm:$0xff] }
 0x27e   : > { %8022 = vmatpush3.bf16.msra.mxu1 %v8209_v51  ;;  %v10165_v57 = vsel %vm4798_vm3, %v4933_v42, %v10149_v36  ;;  %v10178_v62 = vrot.slane %v4596_v28, 7  ;;  %v10192_v0 = vrot.slane %v4599_v56, 1  ;;  %v4586_v9 = vsel %vm3719_vm2, %v4574_v20, %v4585_v34 }
 0x27f   : > { %8023 = vmatprep.subr.bf16.mxu1 %v8214_v61  ;;  %v3549_v27 = vrot.slane %v3547_v15, 7  ;;  %v4825_v20 = vrot.slane %v10187_v17, 1  ;;  %v11128_v51 = vrot.slane %v10196_v33, 7  ;;  %v10288_v1 = vshll.u32 %v10253_v40, 16 }
 0x280   : > { %v5741_v60 = vor.u32 %v10192_v0, %v4596_v28  ;;  %v4601_v44 = vor.u32 %v4599_v56, %v10178_v62  ;;  %v10257_v56 = vshrl.u32 %v10202_v14, 16 }
 0x281   : > { %5271 = vmatmul.mubr.bf16.gmra.mrb[220].mxu1 %v4578_v25  ;;  %v3550_v2 = vor.u32 %v3549_v27, %v3546_v55  ;;  %v10240_v48 = vsel %vm4798_vm3, %v5725_v13, %v4825_v20  ;;  %v10242_v25 = vld [vmem:[#allocation3 + $0x58] sm:$0xff]  ;;  %v10247_v28 = vor.u32 %v10173_v32, %v11128_v51  ;;  %v6074_v55 = vrot.slane %v10233_v58, 1 }
 0x282   : > { %5278 = vmatprep.mubr.bf16.mxu1 %v10128_v6  ;;  %8024 = vmatpush3.bf16.msra.mxu1 %v8214_v61  ;;  %v10215_v45 = vsel %vm4798_vm3, %v5741_v60, %v5745_v50  ;;  %v10235_v61 = vld [vmem:[#allocation3 + $0x50] sm:$0xff]  ;;  %11189 = vst [vmem:[#allocation18_spill] sm:$0xff] %v10240_v48  ;;  %v10285_v15 = vshrl.u32 %v10242_v25, 16  ;;  %v6068_v50 = vrot.slane %v10173_v32, 2  ;;  %v10305_v60 = vld [vmem:[#allocation3 + $0x80] sm:$0xff]  ;;  %v10309_v27 = vshrl.u32 %v10267_v43, 16 }
 0x283   : > { %4303 = vmatmul.mubr.bf16.gmra.mrb[204].mxu0 %v10085_v30  ;;  %v4590_v30 = vrot.slane %v10155_v11, 7  ;;  %8025 = vmatprep.subr.bf16.mxu1 %v8219_v31  ;;  %v10260_v12 = vshll.u32 %v10235_v61, 16  ;;  %v10263_v34 = vshrl.u32 %v10235_v61, 16  ;;  %v3551_v18 = vsel %vm3381_vm1, %v10102_v22, %v3550_v2  ;;  %11190 = vst [vmem:[#allocation17_spill] sm:$0xff] %v10305_v60 }
 0x284   : > { %4310 = vmatprep.mubr.bf16.mxu0 %v10098_v10  ;;  %v8224_v10 = vld [vmem:[%s11119_s3 + $0x220] sm:$0xff]   ;;  %v10291_v22 = vshrl.u32 %v10253_v40, 16  ;;  %v10311_v32 = vor.u32 %v6068_v50, %v6065_v41  ;;  %v10335_v50 = vld [vmem:[#allocation3 + $0x90] sm:$0xff]  ;;  %v6101_v51 = vrot.slane %v10285_v15, 1 }
 0x285   : > { %v4593_v19 = vor.u32 %v10187_v17, %v4590_v30  ;;  %v4602_v42 = vsel %vm3719_vm2, %v4590_v30, %v4601_v44  ;;  %v8227_v30 = vld [vmem:[%s11119_s3 + $0x238] sm:$0xff]   ;;  %v6077_v44 = vrot.slane %v10190_v26, 2  ;;  %v6092_v2 = vrot.slane %v10263_v34, 1  ;;  %v8205_v41 = vld [vmem:[%s11119_s3 + $0x180] sm:$0xff]   ;;  %11193 = vst [vmem:[#allocation16_spill] sm:$0xff] %v10335_v50 }
 0x286   : > { %8026 = vmatpush3.bf16.msra.mxu1 %v8219_v31  ;;  %11191 = vst [vmem:[#allocation5_spill] sm:$0xff] %v10311_v32  ;;  %v6110_v59 = vrot.slane %v10291_v22, 1 }
 0x287   : > { %8027 = vmatprep.subr.bf16.mxu1 %v8224_v10  ;;  %v4594_v38 = vsel %vm3719_vm2, %v10151_v46, %v4593_v19  ;;  %v10250_v46 = vor.u32 %v4825_v20, %v10155_v11  ;;  %v10297_v19 = vshll.u32 %v10265_v4, 16  ;;  %v10321_v20 = vld [vmem:[#allocation3 + $0x88] sm:$0xff] }
 0x288   : > { %11192 = vst [vmem:[#allocation15_spill] sm:$0xff] %v10321_v20  ;;  %v10340_v11 = vshll.u32 %v10321_v20, 16 }
 0x289   : > { %5279 = vmatmul.mubr.bf16.gmra.mrb[224].mxu1 %v4586_v9  ;;  %v10293_v9 = vld [vmem:[#allocation3 + $0x78] sm:$0xff] }
 0x28a   : > { %5286 = vmatprep.mubr.bf16.mxu1 %v10143_v53  ;;  %8028 = vmatpush3.bf16.msra.mxu1 %v8224_v10  ;;  %v10275_v10 = vshll.u32 %v10242_v25, 16  ;;  %v10316_v23 = vshll.u32 %v10293_v9, 16  ;;  %v10319_v21 = vshrl.u32 %v10293_v9, 16 }
 0x28b   : > { %4311 = vmatmul.mubr.bf16.gmra.mrb[208].mxu0 %v10111_v24  ;;  %v10222_v24 = vshll.u32 %v10202_v14, 16  ;;  %8029 = vmatprep.subr.bf16.mxu1 %v8225_v35 }
 0x28c   : > { %4318 = vmatprep.mubr.bf16.mxu0 %v3663_v37  ;;  %v6083_v37 = vrot.slane %v10257_v56, 1  ;;  %v6104_v17 = vrot.slane %v10275_v10, 2 }
 0x28d   : > { %v11127_v31 = vrot.slane %v10222_v24, 1 }
 0x28e   : > { %8030 = vmatpush3.bf16.msra.mxu1 %v8225_v35  ;;  %v10303_v35 = vshll.u32 %v10267_v43, 16 }
 0x28f   : > { %8031 = vmatprep.subr.bf16.mxu1 %v8226_v5  ;;  %v10280_v13 = vsel %vm4798_vm3, %v5757_v63, %v11127_v31  ;;  %v6078_v63 = vor.u32 %v6077_v44, %v6074_v55 }
 0x291   : > { %5287 = vmatmul.mubr.bf16.gmra.mrb[228].mxu1 %v4594_v38  ;;  %v10326_v38 = vshll.u32 %v10305_v60, 16  ;;  %v10344_v55 = vsel %vm6026_vm4, %v10311_v32, %v6078_v63  ;;  %v6131_v32 = vrot.slane %v10303_v35, 2 }
 0x292   : > { %5294 = vmatprep.mubr.bf16.mxu1 %v10145_v3  ;;  %8032 = vmatpush3.bf16.msra.mxu1 %v8226_v5  ;;  %v6086_v5 = vrot.slane %v10222_v24, 2  ;;  %11194 = vst [vmem:[#allocation9_spill] sm:$0xff] %v10344_v55  ;;  %v10355_v3 = vshrl.u32 %v10321_v20, 16  ;;  %v6128_v55 = vrot.slane %v10309_v27, 1  ;;  %v6140_v20 = vrot.slane %v10316_v23, 2 }
 0x293   : > { %4319 = vmatmul.mubr.bf16.gmra.mrb[212].mxu0 %v3551_v18  ;;  %8033 = vmatprep.subr.bf16.mxu1 %v8227_v30  ;;  %v6095_v18 = vrot.slane %v10260_v12, 2 }
 0x294   : > { %7983 = vmatprep.mubr.bf16.mxu0 %v4810_v8  ;;  %v10329_v8 = vshrl.u32 %v10305_v60, 16  ;;  %v6087_v31 = vor.u32 %v6086_v5, %v6083_v37  ;;  %v6113_v37 = vrot.slane %v10288_v1, 2  ;;  %v6119_v5 = vrot.slane %v10300_v29, 1 }
 0x295   : > { %v6096_v44 = vor.u32 %v6095_v18, %v6092_v2  ;;  %v10358_v2 = vshrl.u32 %v10335_v50, 16  ;;  %v10360_v18 = vld [vmem:[#allocation3 + $0x98] sm:$0xff] }
 0x296   : > { %8034 = vmatpush3.bf16.msra.mxu1 %v8227_v30  ;;  %v10348_v39 = vsel %vm6026_vm4, %v6078_v63, %v6087_v31  ;;  %v6105_v30 = vor.u32 %v6104_v17, %v6101_v51  ;;  %v6122_v17 = vrot.slane %v10297_v19, 2  ;;  %v8206_v51 = vld [vmem:[%s11119_s3 + $0x188] sm:$0xff]  }
 0x297   : > { %11195 = vst [vmem:[#allocation8_spill] sm:$0xff] %v10348_v39  ;;  %v6114_v39 = vor.u32 %v6113_v37, %v6110_v59  ;;  %v6132_v37 = vor.u32 %v6131_v32, %v6128_v55  ;;  %v10402_v32 = vshll.u32 %v10360_v18, 16  ;;  %v4614_v55 = vrot.slane %v10233_v58, 7 }
 0x298   : > { %v10371_v63 = vsel %vm6026_vm4, %v6096_v44, %v6105_v30 }
 0x299   : > { %5295 = vmatmul.mubr.bf16.gmra.mrb[232].mxu1 %v4602_v42  ;;  %v10363_v42 = vsel %vm6026_vm4, %v6087_v31, %v6096_v44  ;;  %11197 = vst [vmem:[#allocation19_spill] sm:$0xff] %v10371_v63  ;;  %v10379_v31 = vshll.u32 %v10335_v50, 16  ;;  %v10384_v44 = vshrl.u32 %v10360_v18, 16  ;;  %v10387_v59 = vsel %vm6026_vm4, %v6105_v30, %v6114_v39  ;;  %v8207_v30 = vld [vmem:[%s11119_s3 + $0x190] sm:$0xff]  }
 0x29a   : > { %5302 = vmatprep.mubr.bf16.mxu1 %v10158_v47  ;;  %11196 = vst [vmem:[#allocation6_spill] sm:$0xff] %v10363_v42  ;;  %v10375_v47 = vld [vmem:[#allocation3] sm:$0xff]  ;;  %v6137_v42 = vrot.slane %v10319_v21, 1  ;;  %v6146_v63 = vrot.slane %v10329_v8, 1  ;;  %v6149_v50 = vrot.slane %v10326_v38, 2 }
 0x29b   : > { %7984 = vmatmul.mubr.bf16.vlgmr.msra.gmra.mrb[216].mxu0 %v10184_v16 }
 0x29c   : > { %7987 = vmatprep.mubr.bf16.mxu0 %v10240_v48  ;;  %6481 = vmatpush1.bf16.msra.mxu0 %v8205_v41  ;;  %v6123_v41 = vor.u32 %v6122_v17, %v6119_v5  ;;  %v6141_v60 = vor.u32 %v6140_v20, %v6137_v42  ;;  %v6155_v5 = vrot.slane %v10355_v3, 1  ;;  %v4610_v17 = vsel %vm3719_vm2, %v10178_v62, %v10247_v28 }
 0x29d   : > { %6482 = vmatprep.subr.bf16.mxu0 %v10375_v47  ;;  %v6158_v20 = vrot.slane %v10340_v11, 2  ;;  %v6150_v62 = vor.u32 %v6149_v50, %v6146_v63  ;;  %v10416_v28 = vsel %vm4798_vm3, %v10250_v46, %v10192_v0  ;;  %v6173_v50 = vrot.slane %v10384_v44, 1  ;;  %v8208_v0 = vld [vmem:[%s11119_s3 + $0x198] sm:$0xff]  }
 0x29e   : > { %v10391_v48 = vsel %vm6026_vm4, %v6114_v39, %v6123_v41  ;;  %v10405_v39 = vsel %vm6026_vm4, %v6123_v41, %v6132_v37  ;;  %v10411_v42 = vsel %vm6026_vm4, %v6132_v37, %v6141_v60  ;;  %v6164_v41 = vrot.slane %v10358_v2, 1 }
 0x29f   : > { %11198 = vst [vmem:[#allocation20_spill] sm:$0xff] %v10405_v39  ;;  %v6167_v39 = vrot.slane %v10379_v31, 2  ;;  %v10423_v58 = vsel %vm6026_vm4, %v6141_v60, %v6150_v62  ;;  %v6176_v37 = vrot.slane %v10402_v32, 2  ;;  %v4617_v60 = vor.u32 %v10190_v26, %v4614_v55 }
 0x2a0   : > { %6483 = vmatpush1.bf16.msra.mxu0 %v8206_v51  ;;  %v6159_v51 = vor.u32 %v6158_v20, %v6155_v5  ;;  %11199 = vst [vmem:[#allocation21_spill] sm:$0xff] %v10423_v58  ;;  %v11140_v5 = vshrl.u32 %v10375_v47, 16  ;;  %v11141_v20 = vshll.u32 %v10375_v47, 16 }
 0x2a1   : > { %6484 = vmatprep.subr.bf16.mxu0 %v10375_v47  ;;  %5303 = vmatmul.mubr.bf16.gmra.mrb[236].mxu1 %v4610_v17  ;;  %v6168_v63 = vor.u32 %v6167_v39, %v6164_v41  ;;  %v8210_v39 = vld [vmem:[%s11119_s3 + $0x1a0] sm:$0xff]  }
 0x2a2   : > { %5310 = vmatprep.mubr.bf16.mxu1 %v10175_v52  ;;  %v10431_v46 = vsel %vm6026_vm4, %v6150_v62, %v6159_v51  ;;  %v6182_v58 = vrot.slane %v11140_v5, 1  ;;  %v6185_v26 = vrot.slane %v11141_v20, 2  ;;  %v11203_v20 = vrot.slane %v10222_v24, 1 }
 0x2a3   : > { %7988 = vmatmul.mubr.bf16.gmra.mrb[220].mxu0 %v10416_v28  ;;  %v10438_v17 = vsel %vm6026_vm4, %v6159_v51, %v6168_v63  ;;  %v11200_v51 = vrot.slane %v10196_v33, 7  ;;  %v5841_v33 = vrot.slane %v10402_v32, 1 }
 0x2a4   : > { %7991 = vmatprep.mubr.bf16.mxu0 %v10215_v45  ;;  %6485 = vmatpush1.bf16.msra.mxu0 %v8207_v30  ;;  %v6177_v30 = vor.u32 %v6176_v37, %v6173_v50  ;;  %v4622_v50 = vrot.slane %v10257_v56, 7  ;;  %v10457_v37 = vor.u32 %v6185_v26, %v6182_v58 }
 0x2a5   : > { %6486 = vmatprep.subr.bf16.mxu0 %v10375_v47  ;;  %v4618_v41 = vsel %vm3719_vm2, %v11200_v51, %v4617_v60  ;;  %v8211_v60 = vld [vmem:[%s11119_s3 + $0x1a8] sm:$0xff]   ;;  %v4865_v51 = vrot.slane %v10260_v12, 1  ;;  %v10480_v5 = vor.u32 %v5841_v33, %v10384_v44 }
 0x2a6   : > { %v10447_v62 = vsel %vm6026_vm4, %v6168_v63, %v6177_v30  ;;  %11201 = vst [vmem:[#allocation22_spill] sm:$0xff] %v10457_v37  ;;  %v10471_v58 = vsel %vm6026_vm4, %v6177_v30, %v10457_v37  ;;  %v4625_v26 = vor.u32 %v10222_v24, %v4622_v50  ;;  %v8212_v30 = vld [vmem:[%s11119_s3 + $0x1b0] sm:$0xff]  }
 0x2a7   : > { %11202 = vst [vmem:[#allocation23_spill] sm:$0xff] %v10471_v58  ;;  %v4869_v58 = vor.u32 %v10263_v34, %v4865_v51 }
 0x2a8   : > { %6487 = vmatpush1.bf16.msra.mxu0 %v8208_v0  ;;  %v11142_v0 = vrot.slane %v10379_v31, 1  ;;  %v4626_v37 = vsel %vm3719_vm2, %v4614_v55, %v4625_v26  ;;  %v4881_v55 = vrot.slane %v10288_v1, 1 }
 0x2a9   : > { %6488 = vmatprep.subr.bf16.mxu0 %v10375_v47  ;;  %5311 = vmatmul.mubr.bf16.gmra.mrb[240].mxu1 %v4618_v41 }
 0x2aa   : > { %5318 = vmatprep.mubr.bf16.mxu1 %v10202_v14  ;;  %v5837_v63 = vor.u32 %v11142_v0, %v10358_v2  ;;  %v4861_v0 = vor.u32 %v11203_v20, %v10257_v56  ;;  %v8213_v56 = vld [vmem:[%s11119_s3 + $0x1b8] sm:$0xff]   ;;  %v4889_v20 = vrot.slane %v10297_v19, 1 }
 0x2ab   : > { %7992 = vmatmul.mubr.bf16.gmra.mrb[224].mxu0 %v10225_v7 }
 0x2ac   : > { %7995 = vmatprep.mubr.bf16.mxu0 %v10280_v13  ;;  %6489 = vmatpush1.bf16.msra.mxu0 %v8210_v39  ;;  %v10477_v41 = vsel %vm4798_vm3, %v5837_v63, %v5841_v33  ;;  %v4873_v39 = vrot.slane %v10275_v10, 1  ;;  %v4630_v63 = vrot.slane %v10263_v34, 7  ;;  %v10494_v33 = vsel %vm4798_vm3, %v4861_v0, %v4865_v51 }
 0x2ad   : > { %6490 = vmatprep.subr.bf16.mxu0 %v10375_v47 }
 0x2ae   : > { %v10499_v24 = vsel %vm4798_vm3, %v4869_v58, %v4873_v39  ;;  %v4633_v34 = vor.u32 %v10260_v12, %v4630_v63  ;;  %v4877_v0 = vor.u32 %v10285_v15, %v4873_v39  ;;  %v4885_v58 = vor.u32 %v10291_v22, %v4881_v55 }
 0x2af   : > { %v4638_v12 = vrot.slane %v10285_v15, 7  ;;  %v4897_v39 = vrot.slane %v10303_v35, 1 }
 0x2b0   : > { %6491 = vmatpush1.bf16.msra.mxu0 %v8211_v60  ;;  %v4634_v60 = vsel %vm3719_vm2, %v4622_v50, %v4633_v34  ;;  %v10518_v26 = vsel %vm4798_vm3, %v4877_v0, %v4881_v55  ;;  %v10523_v51 = vsel %vm4798_vm3, %v4885_v58, %v4889_v20  ;;  %v8216_v50 = vld [vmem:[%s11119_s3 + $0x1c8] sm:$0xff]   ;;  %v8217_v34 = vld [vmem:[%s11119_s3 + $0x1d0] sm:$0xff]   ;;  %v4921_v58 = vrot.slane %v10340_v11, 1 }
 0x2b1   : > { %6492 = vmatprep.subr.bf16.mxu0 %v10375_v47  ;;  %5319 = vmatmul.mubr.bf16.gmra.mrb[244].mxu1 %v4626_v37  ;;  %v8215_v37 = vld [vmem:[%s11119_s3 + $0x1c0] sm:$0xff]   ;;  %v4641_v15 = vor.u32 %v10275_v10, %v4638_v12  ;;  %v10539_v0 = vor.u32 %v10309_v27, %v4897_v39  ;;  %v4646_v10 = vrot.slane %v10291_v22, 7  ;;  %v4913_v22 = vrot.slane %v10326_v38, 1 }
 0x2b2   : > { %5326 = vmatprep.mubr.bf16.mxu1 %v10235_v61 }
 0x2b3   : > { %7996 = vmatmul.mubr.bf16.gmra.mrb[228].mxu0 %v10494_v33  ;;  %v4642_v55 = vsel %vm3719_vm2, %v4630_v63, %v4641_v15  ;;  %v8218_v63 = vld [vmem:[%s11119_s3 + $0x1d8] sm:$0xff]   ;;  %v8220_v15 = vld [vmem:[%s11119_s3 + $0x1e0] sm:$0xff]  }
 0x2b4   : > { %7999 = vmatprep.mubr.bf16.mxu0 %v10499_v24  ;;  %6493 = vmatpush1.bf16.msra.mxu0 %v8212_v30  ;;  %v4905_v30 = vrot.slane %v10316_v23, 1 }
 0x2b5   : > { %6494 = vmatprep.subr.bf16.mxu0 %v10375_v47 }
 0x2b8   : > { %6495 = vmatpush1.bf16.msra.mxu0 %v8213_v56  ;;  %v4893_v56 = vor.u32 %v10300_v29, %v4889_v20  ;;  %v4906_v20 = vsel %vm4798_vm3, %v10539_v0, %v4905_v30 }
 0x2b9   : > { %6496 = vmatprep.subr.bf16.mxu0 %v10375_v47  ;;  %5327 = vmatmul.mubr.bf16.gmra.mrb[248].mxu1 %v4634_v60  ;;  %v4649_v60 = vor.u32 %v10288_v1, %v4646_v10  ;;  %v4654_v1 = vrot.slane %v10300_v29, 7  ;;  %v4925_v29 = vor.u32 %v10355_v3, %v4921_v58 }
 0x2ba   : > { %5334 = vmatprep.mubr.bf16.mxu1 %v10242_v25 }
 0x2bb   : > { %8000 = vmatmul.mubr.bf16.gmra.mrb[232].mxu0 %v10518_v26 }
 0x2bc   : > { %8003 = vmatprep.mubr.bf16.mxu0 %v10523_v51  ;;  %6497 = vmatpush1.bf16.msra.mxu0 %v8215_v37  ;;  %v10544_v37 = vsel %vm4798_vm3, %v4893_v56, %v4897_v39  ;;  %v4650_v39 = vsel %vm3719_vm2, %v4638_v12, %v4649_v60  ;;  %v4917_v56 = vor.u32 %v10329_v8, %v4913_v22  ;;  %v8221_v12 = vld [vmem:[%s11119_s3 + $0x1e8] sm:$0xff]  }
 0x2bd   : > { %6498 = vmatprep.subr.bf16.mxu0 %v10375_v47 }
 0x2c0   : > { %6499 = vmatpush1.bf16.msra.mxu0 %v8216_v50  ;;  %v4909_v50 = vor.u32 %v10319_v21, %v4905_v30  ;;  %v4922_v30 = vsel %vm4798_vm3, %v4917_v56, %v4921_v58  ;;  %v4939_v58 = vshrl.u32 %v10117_v54, 16  ;;  %v5935_v56 = vrot.slane %v10128_v6, 1 }
 0x2c1   : > { %6500 = vmatprep.subr.bf16.mxu0 %v10375_v47  ;;  %5335 = vmatmul.mubr.bf16.gmra.mrb[252].mxu1 %v4642_v55  ;;  %v4657_v55 = vor.u32 %v10297_v19, %v4654_v1  ;;  %v4930_v19 = vsel %vm4798_vm3, %v4925_v29, %v10137_v49  ;;  %v5937_v6 = vrot.slane %v10143_v53, 1 }
 0x2c2   : > { %5342 = vmatprep.mubr.bf16.mxu1 %v10253_v40 }
 0x2c3   : > { %8004 = vmatmul.mubr.bf16.gmra.mrb[236].mxu0 %v10544_v37  ;;  %v4658_v60 = vsel %vm3719_vm2, %v4646_v10, %v4657_v55  ;;  %v8223_v10 = vld [vmem:[%s11119_s3 + $0x1f8] sm:$0xff]   ;;  %v5938_v55 = vsel %vm5933_vm5, %v5935_v56, %v5937_v6 }
 0x2c4   : > { %8007 = vmatprep.mubr.bf16.mxu0 %v4906_v20  ;;  %6501 = vmatpush1.bf16.msra.mxu0 %v8217_v34  ;;  %v4914_v34 = vsel %vm4798_vm3, %v4909_v50, %v4913_v22  ;;  %v4797_v20 = vld [vmem:[#allocation3 + $0xa0] sm:$0x1]  ;;  %v4662_v22 = vrot.slane %v10309_v27, 7  ;;  %v4941_v27 = vor.u32 %v4939_v58, %v10149_v36 }
 0x2c5   : > { %6502 = vmatprep.subr.bf16.mxu0 %v10375_v47  ;;  %v4943_v50 = vshll.u32 %v4797_v20, 16 }
 0x2c7   : > { %v4945_v49 = vrot.slane %v4943_v50, 1 }
 0x2c8   : > { %6503 = vmatpush1.bf16.msra.mxu0 %v8218_v63  ;;  %v8222_v63 = vld [vmem:[%s11119_s3 + $0x1f0] sm:$0xff]  }
 0x2c9   : > { %6504 = vmatprep.subr.bf16.mxu0 %v10375_v47  ;;  %5343 = vmatmul.mubr.bf16.gmra.mrb[0].mxu1 %v4650_v39  ;;  %v5895_v39 = vld [vmem:[#allocation3 + $0x18] sm:$0xfe] }
 0x2ca   : > { %5350 = vmatprep.mubr.bf16.mxu1 %v10265_v4  ;;  %v5934_v54 = vrot.slane %v5895_v39, 1  ;;  %v11207_v39 = vld [vmem:[#allocation12_spill] sm:$0xff] }
 0x2cb   : > { %8008 = vmatmul.mubr.bf16.gmra.mrb[240].mxu0 %v4914_v34  ;;  %v4670_v34 = vrot.slane %v10319_v21, 7  ;;  %v11204_v21 = vld [vmem:[#allocation17_spill] sm:$0xff] }
 0x2cc   : > { %8011 = vmatprep.mubr.bf16.mxu0 %v4922_v30  ;;  %6505 = vmatpush1.bf16.msra.mxu0 %v8220_v15  ;;  %v4665_v15 = vor.u32 %v10303_v35, %v4662_v22  ;;  %v4946_v30 = vsel %vm4798_vm3, %v4941_v27, %v4945_v49  ;;  %v5936_v35 = vsel %vm5933_vm5, %v5934_v54, %v5935_v56  ;;  %v4686_v27 = vrot.slane %v10355_v3, 7  ;;  %v11209_v54 = vld [vmem:[#allocation15_spill] sm:$0xff] }
 0x2cd   : > { %6506 = vmatprep.subr.bf16.mxu0 %v10375_v47  ;;  %v4673_v36 = vor.u32 %v10316_v23, %v4670_v34  ;;  %v11205_v23 = vld [vmem:[#allocation10_spill] sm:$0xff] }
 0x2d0   : > { %6507 = vmatpush1.bf16.msra.mxu0 %v8221_v12  ;;  %v4674_v12 = vsel %vm3719_vm2, %v4662_v22, %v4673_v36 }
 0x2d1   : > { %6508 = vmatprep.subr.bf16.mxu0 %v10375_v47  ;;  %5351 = vmatmul.mubr.bf16.gmra.mrb[4].mxu1 %v4658_v60 }
 0x2d2   : > { %5358 = vmatprep.mubr.bf16.mxu1 %v10267_v43 }
 0x2d3   : > { %8012 = vmatmul.mubr.bf16.gmra.mrb[244].mxu0 %v4930_v19  ;;  %v5939_v19 = vrot.slane %v11205_v23, 1 }
 0x2d4   : > { %8015 = vmatprep.mubr.bf16.mxu0 %v10165_v57  ;;  %6509 = vmatpush1.bf16.msra.mxu0 %v8222_v63  ;;  %v4666_v57 = vsel %vm3719_vm2, %v4654_v1, %v4665_v15  ;;  %v4678_v1 = vrot.slane %v10329_v8, 7  ;;  %v11206_v8 = vld [vmem:[#allocation7_spill] sm:$0xff] }
 0x2d5   : > { %6510 = vmatprep.subr.bf16.mxu0 %v10375_v47 }
 0x2d6   : > { %v4681_v29 = vor.u32 %v10326_v38, %v4678_v1 }
 0x2d8   : > { %6511 = vmatpush1.bf16.msra.mxu0 %v8223_v10  ;;  %v4682_v15 = vsel %vm3719_vm2, %v4670_v34, %v4681_v29 }
 0x2d9   : > { %5359 = vmatmul.mubr.bf16.gmra.mrb[8].mxu1 %v4666_v57  ;;  %v11208_v57 = vld [vmem:[#allocation18_spill] sm:$0xff] }
 0x2da   : > { %5366 = vmatprep.mubr.bf16.mxu1 %v10293_v9 }
 0x2db   : > { %8016 = vmatmul.mubr.bf16.gmra.mrb[248].mxu0 %v4946_v30  ;;  %v5940_v30 = vsel %vm5933_vm5, %v5937_v6, %v5939_v19  ;;  %v11211_v6 = vld [vmem:[#allocation16_spill] sm:$0xff] }
 0x2dc   : > { %6512 = vmatprep.mubr.bf16.mxu0 %v5936_v35  ;;  %v4689_v35 = vor.u32 %v10340_v11, %v4686_v27 }
 0x2e1   : > { %5367 = vmatmul.mubr.bf16.gmra.mrb[12].mxu1 %v4674_v12  ;;  %v11210_v12 = vld [vmem:[#allocation11_spill] sm:$0xff] }
 0x2e2   : > { %5374 = vmatprep.mubr.bf16.mxu1 %v11204_v21  ;;  %v5941_v3 = vrot.slane %v11210_v12, 1 }
 0x2e3   : > { %6513 = vmatmul.mubr.bf16.vlgmr.msra.gmra.mrb[252].mxu0 %v10184_v16 }
 0x2e4   : > { %6520 = vmatprep.mubr.bf16.mxu0 %v5938_v55  ;;  %v5942_v11 = vsel %vm5933_vm5, %v5939_v19, %v5941_v3 }
 0x2e6   : > { %v4192_v20 = vpop.f32.mrb[148].mxu0 }
 0x2e7   : > { %v7933_v63 = vpop.f32.mrb[180].mxu1  ;;  %v4194_v60 = vpop.f32.mrb[149].mxu0 }
 0x2e8   : > { %v10606_v53 = vadd.f32 %v7933_v63, %v4192_v20  ;;  %v4361_v22 = vpop.f32.mrb[181].mxu1  ;;  %v4195_v50 = vpop.f32.mrb[150].mxu0  ;;  %v4690_v63 = vsel %vm3719_vm2, %v4678_v1, %v4689_v35  ;;  %v4694_v60 = vrot.slane %v10358_v2, 7 }
 0x2e9   : > { %v10609_v58 = vadd.f32 %v4361_v22, %v11206_v8  ;;  %v7934_v16 = vpop.f32.mrb[182].mxu1  ;;  %v4197_v10 = vpop.f32.mrb[151].mxu0  ;;  %5375 = vmatmul.mubr.bf16.gmra.mrb[16].mxu1 %v4682_v15  ;;  %v6008_v8 = vld [vmem:[#allocation3 + $0x20] sm:$0xff]  ;;  %v6007_v15 = vld [vmem:[#allocation3 + $0x18] sm:$0xfe] }
 0x2ea   : > { %v10613_v49 = vadd.f32 %v7934_v16, %v4195_v50  ;;  %v4364_v38 = vpop.f32.mrb[183].mxu1  ;;  %5382 = vmatprep.mubr.bf16.mxu1 %v11209_v54  ;;  %v4697_v1 = vor.u32 %v10379_v31, %v4694_v60  ;;  %v6028_v35 = vshrl.u32 %v6007_v15, 16 }
 0x2eb   : > { %v10616_v56 = vadd.f32 %v4364_v38, %v11207_v39  ;;  %6521 = vmatmul.mubr.bf16.gmra.mrb[0].mxu0 %v11208_v57  ;;  %v6036_v38 = vshrl.u32 %v6008_v8, 16  ;;  %v6039_v39 = vshll.u32 %v6008_v8, 16  ;;  %v6010_v8 = vld [vmem:[#allocation3 + $0x30] sm:$0xff] }
 0x2ec   : > { %6528 = vmatprep.mubr.bf16.mxu0 %v5940_v30 }
 0x2ee   : > { %v4200_v36 = vpop.f32.mrb[152].mxu0 }
 0x2ef   : > { %v4202_v34 = vpop.f32.mrb[153].mxu0 }
 0x2f0   : > { %v4203_v55 = vpop.f32.mrb[154].mxu0 }
 0x2f1   : > { %v7937_v29 = vpop.f32.mrb[184].mxu1  ;;  %v4205_v20 = vpop.f32.mrb[155].mxu0  ;;  %5383 = vmatmul.mubr.bf16.gmra.mrb[20].mxu1 %v4690_v63 }
 0x2f2   : > { %v4377_v23 = vpop.f32.mrb[185].mxu1  ;;  %5390 = vmatprep.mubr.bf16.mxu1 %v11211_v6  ;;  %v4702_v20 = vrot.slane %v10384_v44, 7 }
 0x2f3   : > { %v10625_v22 = vadd.f32 %v4377_v23, %v4200_v36  ;;  %v7938_v50 = vpop.f32.mrb[186].mxu1  ;;  %6529 = vmatmul.mubr.bf16.gmra.mrb[4].mxu0 %v10416_v28  ;;  %v5943_v28 = vrot.slane %v10175_v52, 1  ;;  %v6031_v36 = vshll.u32 %v6007_v15, 16  ;;  %v6038_v23 = vrot.slane %v6036_v38, 1 }
 0x2f4   : > { %v4380_v16 = vpop.f32.mrb[187].mxu1  ;;  %6536 = vmatprep.mubr.bf16.mxu0 %v5942_v11  ;;  %v6041_v11 = vrot.slane %v6039_v39, 2 }
 0x2f5   : > { %v10630_v10 = vadd.f32 %v4380_v16, %v4203_v55  ;;  %v4698_v55 = vsel %vm3719_vm2, %v4686_v27, %v4697_v1  ;;  %v5944_v52 = vsel %vm5933_vm5, %v5941_v3, %v5943_v28  ;;  %v6033_v15 = vrot.slane %v6031_v36, 2  ;;  %v11213_v36 = vld [vmem:[#allocation13_spill] sm:$0xff] }
 0x2f6   : > { %v4208_v2 = vpop.f32.mrb[156].mxu0  ;;  %v4705_v27 = vor.u32 %v10402_v32, %v4702_v20  ;;  %v6042_v44 = vor.u32 %v6041_v11, %v6038_v23  ;;  %v11214_v32 = vld [vmem:[#allocation14_spill] sm:$0xff] }
 0x2f7   : > { %11212 = vst [vmem:[#allocation17_spill] sm:$0xff] %v10630_v10  ;;  %v10633_v57 = vadd.f32 %v7937_v29, %v4208_v2  ;;  %v4210_v54 = vpop.f32.mrb[157].mxu0  ;;  %v6054_v2 = vshrl.u32 %v6010_v8, 16  ;;  %v6050_v20 = vrot.slane %v11214_v32, 2 }
 0x2f8   : > { %v4211_v30 = vpop.f32.mrb[158].mxu0  ;;  %v6057_v54 = vshll.u32 %v6010_v8, 16 }
 0x2f9   : > { %v7941_v19 = vpop.f32.mrb[188].mxu1  ;;  %v10636_v34 = vadd.f32 %v7938_v50, %v4211_v30  ;;  %v4213_v12 = vpop.f32.mrb[159].mxu0  ;;  %5391 = vmatmul.mubr.bf16.gmra.mrb[24].mxu1 %v4698_v55  ;;  %v6030_v50 = vrot.slane %v6028_v35, 1  ;;  %v4706_v35 = vsel %vm3719_vm2, %v4694_v60, %v4705_v27  ;;  %v6056_v11 = vrot.slane %v6054_v2, 1 }
 0x2fa   : > { %v4393_v63 = vpop.f32.mrb[189].mxu1  ;;  %5398 = vmatprep.mubr.bf16.mxu1 %v10360_v18  ;;  %v6059_v8 = vrot.slane %v6057_v54, 2 }
 0x2fb   : > { %v7942_v29 = vpop.f32.mrb[190].mxu1  ;;  %6537 = vmatmul.mubr.bf16.gmra.mrb[8].mxu0 %v10215_v45  ;;  %v5945_v45 = vrot.slane %v10202_v14, 1  ;;  %v6034_v12 = vor.u32 %v6033_v15, %v6030_v50 }
 0x2fc   : > { %v4396_v16 = vpop.f32.mrb[191].mxu1  ;;  %6544 = vmatprep.mubr.bf16.mxu0 %v5944_v52  ;;  %v6047_v52 = vrot.slane %v11213_v36, 1  ;;  %v6060_v50 = vor.u32 %v6059_v8, %v6056_v11 }
 0x2fd   : > { %v5946_v14 = vsel %vm5933_vm5, %v5943_v28, %v5945_v45 }
 0x2fe   : > { %v4216_v1 = vpop.f32.mrb[160].mxu0 }
 0x2ff   : > { %v10644_v38 = vadd.f32 %v4393_v63, %v4216_v1  ;;  %v4218_v39 = vpop.f32.mrb[161].mxu0  ;;  %v6043_v63 = vsel %vm6026_vm4, %v6034_v12, %v6042_v44 }
 0x300   : > { %v4219_v30 = vpop.f32.mrb[162].mxu0  ;;  %v5947_v39 = vrot.slane %v10235_v61, 1 }
 0x301   : > { %v7945_v55 = vpop.f32.mrb[192].mxu1  ;;  %v10647_v3 = vadd.f32 %v4396_v16, %v4219_v30  ;;  %v4221_v10 = vpop.f32.mrb[163].mxu0  ;;  %5399 = vmatmul.mubr.bf16.gmra.mrb[28].mxu1 %v4706_v35 }
 0x302   : > { %v4409_v23 = vpop.f32.mrb[193].mxu1  ;;  %8035 = vmatprep.mubr.bf16.mxu1 %v6043_v63  ;;  %v6051_v10 = vor.u32 %v6050_v20, %v6047_v52  ;;  %v11215_v63 = vld [vmem:[#allocation5_spill] sm:$0xff] }
 0x303   : > { %v7946_v1 = vpop.f32.mrb[194].mxu1  ;;  %6545 = vmatmul.mubr.bf16.gmra.mrb[12].mxu0 %v10225_v7  ;;  %v6070_v11 = vsel %vm6026_vm4, %v6060_v50, %v11215_v63 }
 0x304   : > { %v4412_v16 = vpop.f32.mrb[195].mxu1  ;;  %6552 = vmatprep.mubr.bf16.mxu0 %v5946_v14  ;;  %v6052_v2 = vsel %vm6026_vm4, %v6042_v44, %v6051_v10  ;;  %v6061_v28 = vsel %vm6026_vm4, %v6051_v10, %v6060_v50 }
 0x306   : > { %v4224_v60 = vpop.f32.mrb[164].mxu0 }
 0x307   : > { %v10655_v15 = vadd.f32 %v7941_v19, %v4224_v60  ;;  %v4226_v27 = vpop.f32.mrb[165].mxu0  ;;  %v5948_v19 = vsel %vm5933_vm5, %v5945_v45, %v5947_v39  ;;  %v11216_v45 = vld [vmem:[#allocation9_spill] sm:$0xff] }
 0x308   : > { %v4227_v30 = vpop.f32.mrb[166].mxu0 }
 0x309   : > { %v7949_v54 = vpop.f32.mrb[196].mxu1  ;;  %v10659_v12 = vadd.f32 %v7942_v29, %v4227_v30  ;;  %v4229_v7 = vpop.f32.mrb[167].mxu0  ;;  %8036 = vmatmul.mubr.bf16.vlgmr.msra.gmra.mrb[32].mxu1 %v6052_v2  ;;  %v5949_v29 = vrot.slane %v10242_v25, 1 }
 0x30a   : > { %v4425_v35 = vpop.f32.mrb[197].mxu1  ;;  %8039 = vmatprep.mubr.bf16.mxu1 %v6061_v28  ;;  %v11217_v28 = vld [vmem:[#allocation8_spill] sm:$0xff] }
 0x30b   : > { %v7950_v36 = vpop.f32.mrb[198].mxu1  ;;  %6553 = vmatmul.mubr.bf16.gmra.mrb[16].mxu0 %v10280_v13  ;;  %v5950_v13 = vsel %vm5933_vm5, %v5947_v39, %v5949_v29 }
 0x30c   : > { %v4428_v52 = vpop.f32.mrb[199].mxu1  ;;  %6560 = vmatprep.mubr.bf16.mxu0 %v5948_v19  ;;  %v11218_v19 = vld [vmem:[#allocation6_spill] sm:$0xff] }
 0x30e   : > { %v4232_v61 = vpop.f32.mrb[168].mxu0 }
 0x30f   : > { %v10664_v32 = vadd.f32 %v4409_v23, %v4232_v61  ;;  %v4234_v44 = vpop.f32.mrb[169].mxu0 }
 0x310   : > { %v4235_v20 = vpop.f32.mrb[170].mxu0 }
 0x311   : > { %v10669_v8 = vadd.f32 %v4412_v16, %v4235_v20  ;;  %v4237_v14 = vpop.f32.mrb[171].mxu0  ;;  %8040 = vmatmul.mubr.bf16.gmra.mrb[36].mxu1 %v6070_v11  ;;  %v5951_v16 = vrot.slane %v10253_v40, 1  ;;  %v5953_v40 = vrot.slane %v10265_v4, 1  ;;  %v11219_v11 = vld [vmem:[#allocation19_spill] sm:$0xff] }
 0x312   : > { %8043 = vmatprep.mubr.bf16.mxu1 %v11216_v45 }
 0x313   : > { %6561 = vmatmul.mubr.bf16.gmra.mrb[20].mxu0 %v10494_v33  ;;  %v5952_v39 = vsel %vm5933_vm5, %v5949_v29, %v5951_v16 }
 0x314   : > { %6568 = vmatprep.mubr.bf16.mxu0 %v5950_v13 }
 0x315   : > { %v7953_v23 = vpop.f32.mrb[200].mxu1 }
 0x316   : > { %v4240_v10 = vpop.f32.mrb[172].mxu0  ;;  %v4441_v60 = vpop.f32.mrb[201].mxu1 }
 0x317   : > { %v10674_v27 = vadd.f32 %v7945_v55, %v4240_v10  ;;  %v4242_v25 = vpop.f32.mrb[173].mxu0  ;;  %v10676_v30 = vpop.f32.mrb[202].mxu1 }
 0x318   : > { %v4243_v50 = vpop.f32.mrb[174].mxu0  ;;  %v4444_v2 = vpop.f32.mrb[203].mxu1 }
 0x319   : > { %v10679_v7 = vadd.f32 %v7946_v1, %v4243_v50  ;;  %v4245_v33 = vpop.f32.mrb[175].mxu0  ;;  %8044 = vmatmul.mubr.bf16.gmra.mrb[40].mxu1 %v11217_v28 }
 0x31a   : > { %8047 = vmatprep.mubr.bf16.mxu1 %v11218_v19 }
 0x31b   : > { %6569 = vmatmul.mubr.bf16.gmra.mrb[24].mxu0 %v10499_v24  ;;  %v5954_v24 = vsel %vm5933_vm5, %v5951_v16, %v5953_v40  ;;  %v11220_v16 = vld [vmem:[#allocation20_spill] sm:$0xff] }
 0x31c   : > { %6576 = vmatprep.mubr.bf16.mxu0 %v5952_v39  ;;  %v5704_v39 = vld [vmem:[#allocation3 + $0x78] sm:$0xff] }
 0x31e   : > { %v4248_v55 = vpop.f32.mrb[176].mxu0 }
 0x31f   : > { %v10685_v61 = vadd.f32 %v4425_v35, %v4248_v55  ;;  %v4250_v44 = vpop.f32.mrb[177].mxu0 }
 0x320   : > { %v4251_v20 = vpop.f32.mrb[178].mxu0  ;;  %v11221_v44 = vld [vmem:[#allocation21_spill] sm:$0xff] }
 0x321   : > { %v10688_v63 = vadd.f32 %v4428_v52, %v4251_v20  ;;  %v4253_v1 = vpop.f32.mrb[179].mxu0  ;;  %8048 = vmatmul.mubr.bf16.gmra.mrb[44].mxu1 %v11219_v11  ;;  %v5955_v52 = vrot.slane %v10267_v43, 1  ;;  %v5957_v43 = vrot.slane %v10293_v9, 1 }
 0x322   : > { %8051 = vmatprep.mubr.bf16.mxu1 %v10387_v59 }
 0x323   : > { %6577 = vmatmul.mubr.bf16.gmra.mrb[28].mxu0 %v10518_v26  ;;  %v5956_v59 = vsel %vm5933_vm5, %v5953_v40, %v5955_v52 }
 0x324   : > { %6584 = vmatprep.mubr.bf16.mxu0 %v5954_v24  ;;  %v10694_v29 = vpop.f32.mrb[204].mxu1  ;;  %v5705_v24 = vld [vmem:[#allocation3 + $0x80] sm:$0xff] }
 0x325   : > { %v4457_v14 = vpop.f32.mrb[205].mxu1 }
 0x326   : > { %v4256_v35 = vpop.f32.mrb[180].mxu0  ;;  %v10698_v45 = vpop.f32.mrb[206].mxu1 }
 0x327   : > { %v10696_v13 = vadd.f32 %v7949_v54, %v4256_v35  ;;  %v4258_v4 = vpop.f32.mrb[181].mxu0  ;;  %v4460_v25 = vpop.f32.mrb[207].mxu1 }
 0x328   : > { %v4259_v10 = vpop.f32.mrb[182].mxu0  ;;  %v6025_v4 = vld [vmem:[#allocation3 + $0xa8] sm:$0x3] }
 0x329   : > { %v10701_v50 = vadd.f32 %v7950_v36, %v4259_v10  ;;  %v4261_v26 = vpop.f32.mrb[183].mxu0  ;;  %8052 = vmatmul.mubr.bf16.gmra.mrb[48].mxu1 %v10391_v48  ;;  %v5807_v48 = vshll.u32 %v5704_v39, 16 }
 0x32a   : > { %8055 = vmatprep.mubr.bf16.mxu1 %v11220_v16  ;;  %v6192_v16 = vshll.u32 %v6025_v4, 16 }
 0x32b   : > { %6585 = vmatmul.mubr.bf16.gmra.mrb[32].mxu0 %v10523_v51  ;;  %v5958_v51 = vsel %vm5933_vm5, %v5955_v52, %v5957_v43  ;;  %v5809_v9 = vrot.slane %v5807_v48, 1 }
 0x32c   : > { %6592 = vmatprep.mubr.bf16.mxu0 %v5956_v59 }
 0x32d   : > { %v5810_v26 = vsel %vm4798_vm3, %v10539_v0, %v5809_v9 }
 0x32e   : > { %v4264_v54 = vpop.f32.mrb[184].mxu0 }
 0x32f   : > { %v10707_v33 = vadd.f32 %v4441_v60, %v4264_v54  ;;  %v4266_v28 = vpop.f32.mrb[185].mxu0  ;;  %v5909_v54 = vld [vmem:[#allocation3 + $0x88] sm:$0xff] }
 0x330   : > { %v4267_v19 = vpop.f32.mrb[186].mxu0 }
 0x331   : > { %v10710_v36 = vadd.f32 %v4444_v2, %v4267_v19  ;;  %v4269_v55 = vpop.f32.mrb[187].mxu0  ;;  %8056 = vmatmul.mubr.bf16.gmra.mrb[52].mxu1 %v10411_v42  ;;  %v5959_v42 = vrot.slane %v11204_v21, 1  ;;  %v6189_v21 = vshrl.u32 %v6025_v4, 16  ;;  %v5811_v19 = vshrl.u32 %v5704_v39, 16 }
 0x332   : > { %8059 = vmatprep.mubr.bf16.mxu1 %v11221_v44  ;;  %v6194_v44 = vrot.slane %v6192_v16, 2 }
 0x333   : > { %6593 = vmatmul.mubr.bf16.gmra.mrb[36].mxu0 %v10544_v37  ;;  %v5960_v59 = vsel %vm5933_vm5, %v5957_v43, %v5959_v42  ;;  %v6191_v0 = vrot.slane %v6189_v21, 1 }
 0x334   : > { %6600 = vmatprep.mubr.bf16.mxu0 %v5958_v51  ;;  %v10716_v60 = vpop.f32.mrb[208].mxu1  ;;  %v5961_v51 = vrot.slane %v5909_v54, 1 }
 0x335   : > { %v10718_v20 = vpop.f32.mrb[209].mxu1  ;;  %v6195_v4 = vor.u32 %v6194_v44, %v6191_v0 }
 0x336   : > { %v4272_v40 = vpop.f32.mrb[188].mxu0  ;;  %v10722_v11 = vpop.f32.mrb[210].mxu1  ;;  %v5962_v39 = vsel %vm5933_vm5, %v5959_v42, %v5961_v51  ;;  %v5963_v42 = vrot.slane %v11211_v6, 1 }
 0x337   : > { %v10720_v1 = vadd.f32 %v7953_v23, %v4272_v40  ;;  %v4274_v2 = vpop.f32.mrb[189].mxu0  ;;  %v10725_v35 = vpop.f32.mrb[211].mxu1  ;;  %v5815_v23 = vshll.u32 %v5705_v24, 16  ;;  %v5813_v40 = vor.u32 %v5811_v19, %v5809_v9  ;;  %v5819_v9 = vshrl.u32 %v5705_v24, 16 }
 0x338   : > { %v4275_v37 = vpop.f32.mrb[190].mxu0 }
 0x339   : > { %v10728_v52 = vadd.f32 %v10676_v30, %v4275_v37  ;;  %v4277_v10 = vpop.f32.mrb[191].mxu0  ;;  %8060 = vmatmul.mubr.bf16.gmra.mrb[56].mxu1 %v10431_v46  ;;  %v5817_v30 = vrot.slane %v5815_v23, 1  ;;  %v5823_v37 = vshll.u32 %v5909_v54, 16 }
 0x33a   : > { %8063 = vmatprep.mubr.bf16.mxu1 %v10438_v17 }
 0x33b   : > { %6601 = vmatmul.mubr.bf16.gmra.mrb[40].mxu0 %v5810_v26  ;;  %v5818_v17 = vsel %vm4798_vm3, %v5813_v40, %v5817_v30  ;;  %v5821_v0 = vor.u32 %v5819_v9, %v5817_v30  ;;  %v5964_v40 = vsel %vm5933_vm5, %v5961_v51, %v5963_v42 }
 0x33c   : > { %6608 = vmatprep.mubr.bf16.mxu0 %v5960_v59  ;;  %v11223_v59 = vld [vmem:[#allocation22_spill] sm:$0xff] }
 0x33d   : > { %v6196_v21 = vsel %vm6026_vm4, %v11223_v59, %v6195_v4  ;;  %v11224_v59 = vrot.slane %v10379_v31, 1 }
 0x33e   : > { %v4280_v28 = vpop.f32.mrb[192].mxu0 }
 0x33f   : > { %v10735_v55 = vadd.f32 %v4457_v14, %v4280_v28  ;;  %v4282_v48 = vpop.f32.mrb[193].mxu0  ;;  %v11222_v14 = vld [vmem:[#allocation23_spill] sm:$0xff] }
 0x340   : > { %v4283_v46 = vpop.f32.mrb[194].mxu0 }
 0x341   : > { %v10737_v2 = vadd.f32 %v4460_v25, %v4283_v46  ;;  %v4285_v43 = vpop.f32.mrb[195].mxu0  ;;  %8064 = vmatmul.mubr.bf16.gmra.mrb[60].mxu1 %v10447_v62  ;;  %v5825_v25 = vrot.slane %v5823_v37, 1  ;;  %v5827_v37 = vshrl.u32 %v5909_v54, 16 }
 0x342   : > { %8067 = vmatprep.mubr.bf16.mxu1 %v11222_v14 }
 0x343   : > { %6609 = vmatmul.mubr.bf16.gmra.mrb[44].mxu0 %v5818_v17  ;;  %v5826_v24 = vsel %vm4798_vm3, %v5821_v0, %v5825_v25 }
 0x344   : > { %6616 = vmatprep.mubr.bf16.mxu0 %v5962_v39  ;;  %v10743_v10 = vpop.f32.mrb[212].mxu1 }
 0x345   : > { %v4489_v23 = vpop.f32.mrb[213].mxu1 }
 0x346   : > { %v4288_v26 = vpop.f32.mrb[196].mxu0  ;;  %v10750_v28 = vpop.f32.mrb[214].mxu1 }
 0x347   : > { %v10748_v16 = vadd.f32 %v10694_v29, %v4288_v26  ;;  %v4290_v62 = vpop.f32.mrb[197].mxu0  ;;  %v4492_v48 = vpop.f32.mrb[215].mxu1  ;;  %v5829_v26 = vor.u32 %v5827_v37, %v5825_v25 }
 0x348   : > { %v4291_v19 = vpop.f32.mrb[198].mxu0 }
 0x349   : > { %v10754_v44 = vadd.f32 %v10698_v45, %v4291_v19  ;;  %v4293_v46 = vpop.f32.mrb[199].mxu0  ;;  %8068 = vmatmul.mubr.bf16.gmra.mrb[64].mxu1 %v6196_v21  ;;  %v5965_v45 = vrot.slane %v10360_v18, 1  ;;  %v5834_v21 = vsel %vm4798_vm3, %v5829_v26, %v11224_v59 }
 0x34b   : > { %6617 = vmatmul.mubr.bf16.gmra.mrb[48].mxu0 %v5826_v24 }
 0x34c   : > { %6624 = vmatprep.mubr.bf16.mxu0 %v5964_v40  ;;  %v10758_v29 = vpop.f32.mrb[216].mxu1 }
 0x34d   : > { %v5266_v17 = vpop.f32.mrb[217].mxu1 }
 0x34e   : > { %v4296_v43 = vpop.f32.mrb[200].mxu0  ;;  %v10763_v39 = vpop.f32.mrb[218].mxu1 }
 0x34f   : > { %v10761_v6 = vadd.f32 %v10718_v20, %v4296_v43  ;;  %v4298_v30 = vpop.f32.mrb[201].mxu0  ;;  %v5269_v14 = vpop.f32.mrb[219].mxu1  ;;  %v5966_v20 = vsel %vm5933_vm5, %v5963_v42, %v5965_v45  ;;  %v5913_v43 = vld [vmem:[#allocation3 + $0xa8] sm:$0x1] }
 0x350   : > { %v4299_v4 = vpop.f32.mrb[202].mxu0  ;;  %v5969_v37 = vrot.slane %v5913_v43, 1  ;;  %v11225_v14 = vshll.u32 %v10375_v47, 16 }
 0x351   : > { %v10767_v9 = vadd.f32 %v10725_v35, %v4299_v4  ;;  %v4301_v51 = vpop.f32.mrb[203].mxu0  ;;  %v5967_v35 = vrot.slane %v10375_v47, 1 }
 0x352   : > { %v5849_v26 = vrot.slane %v11225_v14, 1 }
 0x353   : > { %6625 = vmatmul.mubr.bf16.gmra.mrb[52].mxu0 %v5834_v21  ;;  %v5968_v42 = vsel %vm5933_vm5, %v5965_v45, %v5967_v35  ;;  %v5970_v45 = vsel %vm5933_vm5, %v5967_v35, %v5969_v37 }
 0x354   : > { %6632 = vmatprep.mubr.bf16.mxu0 %v5966_v20  ;;  %v5272_v54 = vpop.f32.mrb[220].mxu1 }
 0x355   : > { %v5274_v19 = vpop.f32.mrb[221].mxu1 }
 0x356   : > { %v4304_v62 = vpop.f32.mrb[204].mxu0  ;;  %v5275_v25 = vpop.f32.mrb[222].mxu1 }
 0x357   : > { %v10774_v18 = vadd.f32 %v10716_v60, %v4304_v62  ;;  %v4306_v0 = vpop.f32.mrb[205].mxu0  ;;  %v5277_v24 = vpop.f32.mrb[223].mxu1  ;;  %v5710_v60 = vld [vmem:[#allocation3 + $0xa8] sm:$0x1] }
 0x358   : > { %v4307_v46 = vpop.f32.mrb[206].mxu0  ;;  %v5855_v62 = vshll.u32 %v5710_v60, 16  ;;  %v5850_v0 = vsel %vm4798_vm3, %v10480_v5, %v5849_v26 }
 0x359   : > { %v10778_v31 = vadd.f32 %v10722_v11, %v4307_v46  ;;  %v4309_v40 = vpop.f32.mrb[207].mxu0  ;;  %v11226_v46 = vshrl.u32 %v10375_v47, 16 }
 0x35b   : > { %6633 = vmatmul.mubr.bf16.gmra.mrb[56].mxu0 %v10477_v41  ;;  %v5853_v24 = vor.u32 %v11226_v46, %v5849_v26 }
 0x35c   : > { %6640 = vmatprep.mubr.bf16.mxu0 %v5968_v42  ;;  %v5280_v17 = vpop.f32.mrb[224].mxu1 }
 0x35d   : > { %v5282_v4 = vpop.f32.mrb[225].mxu1 }
 0x35e   : > { %v4312_v30 = vpop.f32.mrb[208].mxu0  ;;  %v5283_v11 = vpop.f32.mrb[226].mxu1 }
 0x35f   : > { %v10784_v51 = vadd.f32 %v4489_v23, %v4312_v30  ;;  %v4314_v59 = vpop.f32.mrb[209].mxu0  ;;  %v5285_v20 = vpop.f32.mrb[227].mxu1  ;;  %v5857_v23 = vrot.slane %v5855_v62, 1 }
 0x360   : > { %v4315_v21 = vpop.f32.mrb[210].mxu0 }
 0x361   : > { %v10786_v19 = vadd.f32 %v4492_v48, %v4315_v21  ;;  %v4317_v41 = vpop.f32.mrb[211].mxu0  ;;  %v5858_v35 = vsel %vm4798_vm3, %v5853_v24, %v5857_v23 }
 0x363   : > { %6641 = vmatmul.mubr.bf16.gmra.mrb[60].mxu0 %v5850_v0 }
 0x364   : > { %6648 = vmatprep.mubr.bf16.mxu0 %v5970_v45  ;;  %v5288_v40 = vpop.f32.mrb[228].mxu1 }
 0x365   : > { %v5290_v42 = vpop.f32.mrb[229].mxu1 }
 0x366   : > { %v4320_v43 = vpop.f32.mrb[212].mxu0  ;;  %v5291_v60 = vpop.f32.mrb[230].mxu1 }
 0x367   : > { %v10794_v30 = vadd.f32 %v10743_v10, %v4320_v43  ;;  %v4322_v48 = vpop.f32.mrb[213].mxu0  ;;  %v5293_v14 = vpop.f32.mrb[231].mxu1 }
 0x368   : > { %v4323_v4 = vpop.f32.mrb[214].mxu0 }
 0x369   : > { %v10798_v5 = vadd.f32 %v10750_v28, %v4323_v4  ;;  %v4325_v37 = vpop.f32.mrb[215].mxu0 }
 0x36b   : > { %6649 = vmatmul.mubr.bf16.gmra.mrb[64].mxu0 %v5858_v35 }
 0x36c   : > { %v5296_v47 = vpop.f32.mrb[232].mxu1 }
 0x36d   : > { %v5298_v59 = vpop.f32.mrb[233].mxu1 }
 0x36e   : > { %v7985_v26 = vpop.f32.mrb[216].mxu0  ;;  %v5299_v62 = vpop.f32.mrb[234].mxu1 }
 0x36f   : > { %v5450_v21 = vadd.f32 %v7985_v26, %v5272_v54  ;;  %v5441_v20 = vpop.f32.mrb[217].mxu0  ;;  %v5301_v45 = vpop.f32.mrb[235].mxu1 }
 0x370   : > { %v5442_v10 = vadd.f32 %v5441_v20, %v10758_v29  ;;  %v7986_v41 = vpop.f32.mrb[218].mxu0 }
 0x371   : > { %v10802_v0 = vadd.f32 %v5450_v21, %v10606_v53  ;;  %v5453_v46 = vadd.f32 %v7986_v41, %v5275_v25  ;;  %v5444_v24 = vpop.f32.mrb[219].mxu0  ;;  %v11227_v21 = vld [vmem:[#allocation17_spill] sm:$0xff] }
 0x372   : > { %v10805_v28 = vadd.f32 %v5442_v10, %v10609_v58  ;;  %v5445_v23 = vadd.f32 %v5444_v24, %v10763_v39 }
 0x373   : > { %v10809_v43 = vadd.f32 %v5453_v46, %v10613_v49 }
 0x374   : > { %v10812_v54 = vadd.f32 %v5445_v23, %v10616_v56  ;;  %v5304_v42 = vpop.f32.mrb[236].mxu1 }
 0x375   : > { %v5306_v48 = vpop.f32.mrb[237].mxu1 }
 0x376   : > { %v7989_v29 = vpop.f32.mrb[220].mxu0  ;;  %v5307_v53 = vpop.f32.mrb[238].mxu1 }
 0x377   : > { %v5466_v4 = vadd.f32 %v7989_v29, %v5288_v40  ;;  %v5457_v14 = vpop.f32.mrb[221].mxu0  ;;  %v5309_v37 = vpop.f32.mrb[239].mxu1 }
 0x378   : > { %v5458_v35 = vadd.f32 %v5457_v14, %v5280_v17  ;;  %v7990_v25 = vpop.f32.mrb[222].mxu0 }
 0x379   : > { %v10815_v58 = vadd.f32 %v5466_v4, %v10633_v57  ;;  %v5469_v26 = vadd.f32 %v7990_v25, %v5291_v60  ;;  %v5460_v39 = vpop.f32.mrb[223].mxu0 }
 0x37a   : > { %v10818_v49 = vadd.f32 %v5458_v35, %v10625_v22  ;;  %v5461_v59 = vadd.f32 %v5460_v39, %v5283_v11 }
 0x37b   : > { %v10821_v56 = vadd.f32 %v5469_v26, %v10636_v34 }
 0x37c   : > { %v10824_v20 = vadd.f32 %v5461_v59, %v11227_v21  ;;  %v5312_v40 = vpop.f32.mrb[240].mxu1 }
 0x37d   : > { %v5314_v17 = vpop.f32.mrb[241].mxu1 }
 0x37e   : > { %v7993_v10 = vpop.f32.mrb[224].mxu0  ;;  %v5315_v46 = vpop.f32.mrb[242].mxu1 }
 0x37f   : > { %v5482_v41 = vadd.f32 %v7993_v10, %v5304_v42  ;;  %v5473_v45 = vpop.f32.mrb[225].mxu0  ;;  %v5317_v60 = vpop.f32.mrb[243].mxu1 }
 0x380   : > { %v5474_v57 = vadd.f32 %v5473_v45, %v5296_v47  ;;  %v7994_v24 = vpop.f32.mrb[226].mxu0 }
 0x381   : > { %v10827_v23 = vadd.f32 %v5482_v41, %v10655_v15  ;;  %v5485_v22 = vadd.f32 %v7994_v24, %v5307_v53  ;;  %v5476_v11 = vpop.f32.mrb[227].mxu0 }
 0x382   : > { %v10830_v34 = vadd.f32 %v5474_v57, %v10644_v38  ;;  %v5477_v29 = vadd.f32 %v5476_v11, %v5299_v62 }
 0x383   : > { %v10833_v48 = vadd.f32 %v5485_v22, %v10659_v12 }
 0x384   : > { %v10836_v4 = vadd.f32 %v5477_v29, %v10647_v3  ;;  %v5320_v42 = vpop.f32.mrb[244].mxu1 }
 0x385   : > { %v5322_v47 = vpop.f32.mrb[245].mxu1 }
 0x386   : > { %v7997_v14 = vpop.f32.mrb[228].mxu0  ;;  %v5323_v37 = vpop.f32.mrb[246].mxu1 }
 0x387   : > { %v5498_v35 = vadd.f32 %v7997_v14, %v5320_v42  ;;  %v5489_v25 = vpop.f32.mrb[229].mxu0  ;;  %v5325_v53 = vpop.f32.mrb[247].mxu1 }
 0x388   : > { %v5490_v15 = vadd.f32 %v5489_v25, %v5312_v40  ;;  %v7998_v26 = vpop.f32.mrb[230].mxu0 }
 0x389   : > { %v10839_v39 = vadd.f32 %v5498_v35, %v10674_v27  ;;  %v5501_v38 = vadd.f32 %v7998_v26, %v5323_v37  ;;  %v5492_v62 = vpop.f32.mrb[231].mxu0 }
 0x38a   : > { %v10842_v12 = vadd.f32 %v5490_v15, %v10664_v32  ;;  %v5493_v59 = vadd.f32 %v5492_v62, %v5315_v46 }
 0x38b   : > { %v10845_v3 = vadd.f32 %v5501_v38, %v10679_v7 }
 0x38c   : > { %v10848_v21 = vadd.f32 %v5493_v59, %v10669_v8  ;;  %v5328_v10 = vpop.f32.mrb[248].mxu1 }
 0x38d   : > { %v5330_v40 = vpop.f32.mrb[249].mxu1 }
 0x38e   : > { %v8001_v17 = vpop.f32.mrb[232].mxu0  ;;  %v5331_v45 = vpop.f32.mrb[250].mxu1 }
 0x38f   : > { %v5505_v41 = vpop.f32.mrb[233].mxu0  ;;  %v5333_v24 = vpop.f32.mrb[251].mxu1 }
 0x390   : > { %v5506_v57 = vadd.f32 %v5505_v41, %v5328_v10  ;;  %v8002_v27 = vpop.f32.mrb[234].mxu0 }
 0x391   : > { %v5508_v60 = vpop.f32.mrb[235].mxu0 }
 0x392   : > { %v10851_v22 = vadd.f32 %v5506_v57, %v10685_v61  ;;  %v5509_v32 = vadd.f32 %v5508_v60, %v5331_v45 }
 0x394   : > { %v10854_v46 = vadd.f32 %v5509_v32, %v10688_v63  ;;  %v5336_v7 = vpop.f32.mrb[252].mxu1 }
 0x395   : > { %v5514_v11 = vadd.f32 %v8001_v17, %v5336_v7  ;;  %v5338_v29 = vpop.f32.mrb[253].mxu1 }
 0x396   : > { %v8005_v8 = vpop.f32.mrb[236].mxu0  ;;  %v5339_v14 = vpop.f32.mrb[254].mxu1 }
 0x397   : > { %v5521_v42 = vpop.f32.mrb[237].mxu0  ;;  %v10857_v47 = vadd.f32 %v5514_v11, %v10696_v13  ;;  %v5517_v35 = vadd.f32 %v8002_v27, %v5339_v14  ;;  %v5341_v37 = vpop.f32.mrb[255].mxu1 }
 0x398   : > { %v8006_v25 = vpop.f32.mrb[238].mxu0 }
 0x399   : > { %v5524_v15 = vpop.f32.mrb[239].mxu0  ;;  %v10860_v61 = vadd.f32 %v5517_v35, %v10701_v50 }
 0x39c   : > { %v5344_v26 = vpop.f32.mrb[0].mxu1 }
 0x39d   : > { %v5522_v53 = vadd.f32 %v5521_v42, %v5344_v26  ;;  %v5346_v38 = vpop.f32.mrb[1].mxu1 }
 0x39e   : > { %v8009_v63 = vpop.f32.mrb[240].mxu0  ;;  %v5347_v59 = vpop.f32.mrb[2].mxu1 }
 0x39f   : > { %v5537_v62 = vpop.f32.mrb[241].mxu0  ;;  %v10863_v10 = vadd.f32 %v5522_v53, %v10707_v33  ;;  %v5525_v17 = vadd.f32 %v5524_v15, %v5347_v59  ;;  %v5349_v13 = vpop.f32.mrb[3].mxu1 }
 0x3a0   : > { %v8010_v40 = vpop.f32.mrb[242].mxu0 }
 0x3a1   : > { %v5540_v41 = vpop.f32.mrb[243].mxu0  ;;  %v10866_v45 = vadd.f32 %v5525_v17, %v10710_v36 }
 0x3a4   : > { %v5352_v57 = vpop.f32.mrb[4].mxu1 }
 0x3a5   : > { %v5530_v27 = vadd.f32 %v8005_v8, %v5352_v57  ;;  %v5354_v24 = vpop.f32.mrb[5].mxu1 }
 0x3a6   : > { %v8013_v50 = vpop.f32.mrb[244].mxu0  ;;  %v5355_v32 = vpop.f32.mrb[6].mxu1 }
 0x3a7   : > { %v5553_v60 = vpop.f32.mrb[245].mxu0  ;;  %v10869_v7 = vadd.f32 %v5530_v27, %v10720_v1  ;;  %v5533_v11 = vadd.f32 %v8006_v25, %v5355_v32  ;;  %v5357_v33 = vpop.f32.mrb[7].mxu1 }
 0x3a8   : > { %v8014_v29 = vpop.f32.mrb[246].mxu0 }
 0x3a9   : > { %v5556_v42 = vpop.f32.mrb[247].mxu0  ;;  %v10872_v14 = vadd.f32 %v5533_v11, %v10728_v52 }
 0x3ac   : > { %v5360_v35 = vpop.f32.mrb[8].mxu1 }
 0x3ad   : > { %v5538_v37 = vadd.f32 %v5537_v62, %v5360_v35  ;;  %v5362_v15 = vpop.f32.mrb[9].mxu1 }
 0x3ae   : > { %v8017_v36 = vpop.f32.mrb[248].mxu0  ;;  %v5363_v8 = vpop.f32.mrb[10].mxu1 }
 0x3af   : > { %v5569_v26 = vpop.f32.mrb[249].mxu0  ;;  %v10875_v53 = vadd.f32 %v5538_v37, %v10735_v55  ;;  %v5541_v38 = vadd.f32 %v5540_v41, %v5363_v8  ;;  %v5365_v1 = vpop.f32.mrb[11].mxu1 }
 0x3b0   : > { %v8018_v59 = vpop.f32.mrb[250].mxu0 }
 0x3b1   : > { %v5572_v17 = vpop.f32.mrb[251].mxu0  ;;  %v10878_v25 = vadd.f32 %v5541_v38, %v10737_v2 }
 0x3b4   : > { %v5368_v13 = vpop.f32.mrb[12].mxu1 }
 0x3b5   : > { %v5546_v57 = vadd.f32 %v8009_v63, %v5368_v13  ;;  %v5370_v27 = vpop.f32.mrb[13].mxu1 }
 0x3b6   : > { %v10880_v52 = vpop.f32.mrb[252].mxu0  ;;  %v5371_v24 = vpop.f32.mrb[14].mxu1 }
 0x3b7   : > { %v6516_v62 = vpop.f32.mrb[253].mxu0  ;;  %v10883_v32 = vadd.f32 %v5546_v57, %v10748_v16  ;;  %v5549_v11 = vadd.f32 %v8010_v40, %v5371_v24  ;;  %v5373_v41 = vpop.f32.mrb[15].mxu1 }
 0x3b8   : > { %v10885_v55 = vpop.f32.mrb[254].mxu0 }
 0x3b9   : > { %v6519_v33 = vpop.f32.mrb[255].mxu0  ;;  %v10888_v35 = vadd.f32 %v5549_v11, %v10754_v44 }
 0x3bc   : > { %v5376_v2 = vpop.f32.mrb[16].mxu1 }
 0x3bd   : > { %v5554_v37 = vadd.f32 %v5553_v60, %v5376_v2  ;;  %v5378_v63 = vpop.f32.mrb[17].mxu1 }
 0x3be   : > { %v6522_v15 = vpop.f32.mrb[0].mxu0  ;;  %v5379_v38 = vpop.f32.mrb[18].mxu1 }
 0x3bf   : > { %v6524_v8 = vpop.f32.mrb[1].mxu0  ;;  %v10891_v1 = vadd.f32 %v5554_v37, %v10761_v6  ;;  %v5557_v13 = vadd.f32 %v5556_v42, %v5379_v38  ;;  %v5381_v57 = vpop.f32.mrb[19].mxu1 }
 0x3c0   : > { %v6525_v16 = vpop.f32.mrb[2].mxu0 }
 0x3c1   : > { %v6527_v40 = vpop.f32.mrb[3].mxu0  ;;  %v10894_v27 = vadd.f32 %v5557_v13, %v10767_v9 }
 0x3c4   : > { %v5384_v62 = vpop.f32.mrb[20].mxu1 }
 0x3c5   : > { %v5562_v24 = vadd.f32 %v8013_v50, %v5384_v62  ;;  %v5386_v11 = vpop.f32.mrb[21].mxu1 }
 0x3c6   : > { %v10896_v44 = vpop.f32.mrb[4].mxu0  ;;  %v5387_v41 = vpop.f32.mrb[22].mxu1 }
 0x3c7   : > { %v6532_v60 = vpop.f32.mrb[5].mxu0  ;;  %v10899_v33 = vadd.f32 %v5562_v24, %v10774_v18  ;;  %v5565_v2 = vadd.f32 %v8014_v29, %v5387_v41  ;;  %v5389_v42 = vpop.f32.mrb[23].mxu1 }
 0x3c8   : > { %v10901_v6 = vpop.f32.mrb[6].mxu0 }
 0x3c9   : > { %v6535_v37 = vpop.f32.mrb[7].mxu0  ;;  %v10904_v63 = vadd.f32 %v5565_v2, %v10778_v31 }
 0x3cc   : > { %v5392_v9 = vpop.f32.mrb[24].mxu1 }
 0x3cd   : > { %v5570_v8 = vadd.f32 %v5569_v26, %v5392_v9  ;;  %v5394_v50 = vpop.f32.mrb[25].mxu1 }
 0x3ce   : > { %v6538_v38 = vpop.f32.mrb[8].mxu0  ;;  %v5395_v57 = vpop.f32.mrb[26].mxu1 }
 0x3cf   : > { %v6540_v13 = vpop.f32.mrb[9].mxu0  ;;  %v10907_v40 = vadd.f32 %v5570_v8, %v10784_v51  ;;  %v5573_v62 = vadd.f32 %v5572_v17, %v5395_v57  ;;  %v5397_v24 = vpop.f32.mrb[27].mxu1 }
 0x3d0   : > { %v6541_v18 = vpop.f32.mrb[10].mxu0 }
 0x3d1   : > { %v6543_v29 = vpop.f32.mrb[11].mxu0  ;;  %v10910_v11 = vadd.f32 %v5573_v62, %v10786_v19 }
 0x3d4   : > { %v5400_v60 = vpop.f32.mrb[28].mxu1 }
 0x3d5   : > { %v5578_v41 = vadd.f32 %v8017_v36, %v5400_v60  ;;  %v5402_v2 = vpop.f32.mrb[29].mxu1 }
 0x3d6   : > { %v10912_v31 = vpop.f32.mrb[12].mxu0  ;;  %v5403_v42 = vpop.f32.mrb[30].mxu1 }
 0x3d7   : > { %v6548_v26 = vpop.f32.mrb[13].mxu0  ;;  %v10915_v37 = vadd.f32 %v5578_v41, %v10794_v30  ;;  %v5581_v9 = vadd.f32 %v8018_v59, %v5403_v42  ;;  %v5405_v17 = vpop.f32.mrb[31].mxu1  ;;  %v10927_v30 = vld [vmem:[%s11120_s4] ss:$0 sm:$0xff] }
 0x3d8   : > { %v10917_v51 = vpop.f32.mrb[14].mxu0 }
 0x3d9   : > { %v6551_v8 = vpop.f32.mrb[15].mxu0  ;;  %v10920_v50 = vadd.f32 %v5581_v9, %v10798_v5 }
 0x3dc   : > { %v8037_v19 = vpop.f32.mrb[32].mxu1 }
 0x3dd   : > { %v6700_v36 = vadd.f32 %v8037_v19, %v6522_v15  ;;  %v6691_v57 = vpop.f32.mrb[33].mxu1  ;;  %v7057_v19 = vld [vmem:[%s8328_s20 + $0x13] sm:$0xff] }
 0x3de   : > { %v10922_v13 = vpop.f32.mrb[16].mxu0  ;;  %v6692_v62 = vadd.f32 %v6691_v57, %v10880_v52  ;;  %v8038_v24 = vpop.f32.mrb[34].mxu1  ;;  %v7059_v52 = vld [vmem:[%s8328_s20 + $0x23] sm:$0xff] }
 0x3df   : > { %v6556_v59 = vpop.f32.mrb[17].mxu0  ;;  %v6872_v5 = vadd.f32 %v6700_v36, %v10802_v0  ;;  %v6703_v60 = vadd.f32 %v8038_v24, %v6525_v16  ;;  %v6694_v41 = vpop.f32.mrb[35].mxu1  ;;  %v7058_v24 = vld [vmem:[%s8328_s20 + $0x1b] sm:$0xff] }
 0x3e0   : > { %v10931_v29 = vpop.f32.mrb[18].mxu0  ;;  %v6870_v15 = vadd.f32 %v6692_v62, %v10805_v28  ;;  %v6695_v26 = vadd.f32 %v6694_v41, %v10885_v55  ;;  %v7060_v28 = vld [vmem:[%s8328_s20 + $0x2b] sm:$0xff] }
 0x3e1   : > { %v6559_v2 = vpop.f32.mrb[19].mxu0  ;;  %v6987_v42 = vadd.f32 %v10927_v30, %v6872_v5  ;;  %v6873_v9 = vadd.f32 %v6703_v60, %v10809_v43 }
 0x3e2   : > { %v6985_v17 = vadd.f32 %v10927_v30, %v6870_v15  ;;  %v6871_v0 = vadd.f32 %v6695_v26, %v10812_v54 }
 0x3e3   : > { %v7023_v8 = vmax.f32 %v6987_v42, 0.0  ;;  %v6988_v16 = vadd.f32 %v10927_v30, %v6873_v9 }
 0x3e4   : > { %v7021_v36 = vmax.f32 %v6985_v17, 0.0  ;;  %v6986_v57 = vadd.f32 %v10927_v30, %v6871_v0  ;;  %v8041_v55 = vpop.f32.mrb[36].mxu1 }
 0x3e5   : > { %v7095_v59 = vadd.f32 %v7059_v52, %v7023_v8  ;;  %v7024_v62 = vmax.f32 %v6988_v16, 0.0  ;;  %v6716_v43 = vadd.f32 %v8041_v55, %v6538_v38  ;;  %v6707_v60 = vpop.f32.mrb[37].mxu1  ;;  %v7063_v55 = vld [vmem:[%s8328_s20 + $0x43] sm:$0xff] }
 0x3e6   : > { %v10946_v5 = vpop.f32.mrb[20].mxu0  ;;  %v7093_v54 = vadd.f32 %v7057_v19, %v7021_v36  ;;  %v7022_v41 = vmax.f32 %v6986_v57, 0.0  ;;  %v6708_v2 = vadd.f32 %v6707_v60, %v10896_v44  ;;  %v8042_v26 = vpop.f32.mrb[38].mxu1  ;;  %v7064_v60 = vld [vmem:[%s8328_s20 + $0x4b] sm:$0xff] }
 0x3e7   : > { %v6564_v15 = vpop.f32.mrb[21].mxu0  ;;  %v7131_v42 = vmax.f32 %v7095_v59, 0.0  ;;  %v7096_v9 = vadd.f32 %v7060_v28, %v7024_v62  ;;  %v6876_v52 = vadd.f32 %v6716_v43, %v10815_v58  ;;  %v6719_v17 = vadd.f32 %v8042_v26, %v6541_v18  ;;  %v6710_v0 = vpop.f32.mrb[39].mxu1 }
 0x3e8   : > { %v10955_v38 = vpop.f32.mrb[22].mxu0  ;;  %v7129_v8 = vmax.f32 %v7093_v54, 0.0  ;;  %v7094_v19 = vadd.f32 %v7058_v24, %v7022_v41  ;;  %v6874_v16 = vadd.f32 %v6708_v2, %v10818_v49  ;;  %v6711_v44 = vadd.f32 %v6710_v0, %v10901_v6  ;;  %v7061_v24 = vld [vmem:[%s8328_s20 + $0x33] sm:$0xff]  ;;  %v7062_v2 = vld [vmem:[%s8328_s20 + $0x3b] sm:$0xff] }
 0x3e9   : > { %v6567_v36 = vpop.f32.mrb[23].mxu0  ;;  %7167 = vst [vmem:[%s10951_s13 + $0x10] sm:$0xff] %v7131_v42  ;;  %v7132_v28 = vmax.f32 %v7096_v9, 0.0  ;;  %v6991_v57 = vadd.f32 %v10927_v30, %v6876_v52  ;;  %v6877_v58 = vadd.f32 %v6719_v17, %v10821_v56 }
 0x3ea   : > { %7165 = vst [vmem:[%s10951_s13] sm:$0xff] %v7129_v8  ;;  %v7130_v18 = vmax.f32 %v7094_v19, 0.0  ;;  %v6989_v59 = vadd.f32 %v10927_v30, %v6874_v16  ;;  %v6875_v62 = vadd.f32 %v6711_v44, %v10824_v20 }
 0x3eb   : > { %7168 = vst [vmem:[%s10951_s13 + $0x18] sm:$0xff] %v7132_v28  ;;  %v7027_v49 = vmax.f32 %v6991_v57, 0.0  ;;  %v6992_v6 = vadd.f32 %v10927_v30, %v6877_v58 }
 0x3ec   : > { %7166 = vst [vmem:[%s10951_s13 + $0x8] sm:$0xff] %v7130_v18  ;;  %v7025_v43 = vmax.f32 %v6989_v59, 0.0  ;;  %v6990_v54 = vadd.f32 %v10927_v30, %v6875_v62  ;;  %v8045_v41 = vpop.f32.mrb[40].mxu1 }
 0x3ed   : > { %v7099_v56 = vadd.f32 %v7063_v55, %v7027_v49  ;;  %v7028_v15 = vmax.f32 %v6992_v6, 0.0  ;;  %v6732_v42 = vadd.f32 %v8045_v41, %v10922_v13  ;;  %v6723_v9 = vpop.f32.mrb[41].mxu1  ;;  %v7067_v49 = vld [vmem:[%s8328_s20 + $0x63] sm:$0xff] }
 0x3ee   : > { %v6570_v26 = vpop.f32.mrb[24].mxu0  ;;  %v7097_v52 = vadd.f32 %v7061_v24, %v7025_v43  ;;  %v7026_v20 = vmax.f32 %v6990_v54, 0.0  ;;  %v6724_v0 = vadd.f32 %v6723_v9, %v10912_v31  ;;  %v8046_v8 = vpop.f32.mrb[42].mxu1  ;;  %v7065_v43 = vld [vmem:[%s8328_s20 + $0x53] sm:$0xff]  ;;  %v7068_v54 = vld [vmem:[%s8328_s20 + $0x6b] sm:$0xff] }
 0x3ef   : > { %v6572_v17 = vpop.f32.mrb[25].mxu0  ;;  %v7135_v19 = vmax.f32 %v7099_v56, 0.0  ;;  %v7100_v16 = vadd.f32 %v7064_v60, %v7028_v15  ;;  %v6880_v36 = vadd.f32 %v6732_v42, %v10827_v23  ;;  %v6735_v28 = vadd.f32 %v8046_v8, %v10931_v29  ;;  %v6726_v57 = vpop.f32.mrb[43].mxu1 }
 0x3f0   : > { %v6573_v44 = vpop.f32.mrb[26].mxu0  ;;  %v7133_v13 = vmax.f32 %v7097_v52, 0.0  ;;  %v7098_v58 = vadd.f32 %v7062_v2, %v7026_v20  ;;  %v6878_v18 = vadd.f32 %v6724_v0, %v10830_v34  ;;  %v6727_v31 = vadd.f32 %v6726_v57, %v10917_v51  ;;  %v7066_v2 = vld [vmem:[%s8328_s20 + $0x5b] sm:$0xff] }
 0x3f1   : > { %v6575_v55 = vpop.f32.mrb[27].mxu0  ;;  %7171 = vst [vmem:[%s10951_s13 + $0x30] sm:$0xff] %v7135_v19  ;;  %v7136_v59 = vmax.f32 %v7100_v16, 0.0  ;;  %v6995_v62 = vadd.f32 %v10927_v30, %v6880_v36  ;;  %v6881_v23 = vadd.f32 %v6735_v28, %v10833_v48 }
 0x3f2   : > { %7169 = vst [vmem:[%s10951_s13 + $0x20] sm:$0xff] %v7133_v13  ;;  %v7134_v29 = vmax.f32 %v7098_v58, 0.0  ;;  %v6993_v24 = vadd.f32 %v10927_v30, %v6878_v18  ;;  %v6879_v6 = vadd.f32 %v6727_v31, %v10836_v4 }
 0x3f3   : > { %7172 = vst [vmem:[%s10951_s13 + $0x38] sm:$0xff] %v7136_v59  ;;  %v7031_v34 = vmax.f32 %v6995_v62, 0.0  ;;  %v6996_v51 = vadd.f32 %v10927_v30, %v6881_v23  ;;  %v7071_v62 = vld [vmem:[%s8328_s20 + $0x83] sm:$0xff] }
 0x3f4   : > { %7170 = vst [vmem:[%s10951_s13 + $0x28] sm:$0xff] %v7134_v29  ;;  %v7029_v60 = vmax.f32 %v6993_v24, 0.0  ;;  %v6994_v41 = vadd.f32 %v10927_v30, %v6879_v6  ;;  %v8049_v56 = vpop.f32.mrb[44].mxu1  ;;  %v7072_v6 = vld [vmem:[%s8328_s20 + $0x8b] sm:$0xff] }
 0x3f5   : > { %v7103_v48 = vadd.f32 %v7067_v49, %v7031_v34  ;;  %v7032_v15 = vmax.f32 %v6996_v51, 0.0  ;;  %v6748_v9 = vadd.f32 %v8049_v56, %v6570_v26  ;;  %v6739_v52 = vpop.f32.mrb[45].mxu1  ;;  %v7069_v49 = vld [vmem:[%s8328_s20 + $0x73] sm:$0xff] }
 0x3f6   : > { %v6578_v42 = vpop.f32.mrb[28].mxu0  ;;  %v7101_v20 = vadd.f32 %v7065_v43, %v7029_v60  ;;  %v7030_v4 = vmax.f32 %v6994_v41, 0.0  ;;  %v6740_v0 = vadd.f32 %v6739_v52, %v10946_v5  ;;  %v8050_v8 = vpop.f32.mrb[46].mxu1  ;;  %v7070_v60 = vld [vmem:[%s8328_s20 + $0x7b] sm:$0xff] }
 0x3f7   : > { %v6580_v17 = vpop.f32.mrb[29].mxu0  ;;  %v7139_v19 = vmax.f32 %v7103_v48, 0.0  ;;  %v7104_v16 = vadd.f32 %v7068_v54, %v7032_v15  ;;  %v6884_v36 = vadd.f32 %v6748_v9, %v10839_v39  ;;  %v6751_v57 = vadd.f32 %v8050_v8, %v6573_v44  ;;  %v6742_v13 = vpop.f32.mrb[47].mxu1 }
 0x3f8   : > { %v6581_v28 = vpop.f32.mrb[30].mxu0  ;;  %v7137_v58 = vmax.f32 %v7101_v20, 0.0  ;;  %v7102_v26 = vadd.f32 %v7066_v2, %v7030_v4  ;;  %v6882_v18 = vadd.f32 %v6740_v0, %v10842_v12  ;;  %v6743_v5 = vadd.f32 %v6742_v13, %v10955_v38 }
 0x3f9   : > { %v6583_v55 = vpop.f32.mrb[31].mxu0  ;;  %7175 = vst [vmem:[%s10951_s13 + $0x50] sm:$0xff] %v7139_v19  ;;  %v7140_v31 = vmax.f32 %v7104_v16, 0.0  ;;  %v6999_v59 = vadd.f32 %v10927_v30, %v6884_v36  ;;  %v6885_v39 = vadd.f32 %v6751_v57, %v10845_v3 }
 0x3fa   : > { %7173 = vst [vmem:[%s10951_s13 + $0x40] sm:$0xff] %v7137_v58  ;;  %v7138_v44 = vmax.f32 %v7102_v26, 0.0  ;;  %v6997_v23 = vadd.f32 %v10927_v30, %v6882_v18  ;;  %v6883_v29 = vadd.f32 %v6743_v5, %v10848_v21  ;;  %v7075_v55 = vld [vmem:[%s8328_s20 + $0xa3] sm:$0xff]  ;;  %v7073_v5 = vld [vmem:[%s8328_s20 + $0x93] sm:$0xff] }
 0x3fb   : > { %7176 = vst [vmem:[%s10951_s13 + $0x58] sm:$0xff] %v7140_v31  ;;  %v7035_v12 = vmax.f32 %v6999_v59, 0.0  ;;  %v7000_v38 = vadd.f32 %v10927_v30, %v6885_v39 }
 0x3fc   : > { %7174 = vst [vmem:[%s10951_s13 + $0x48] sm:$0xff] %v7138_v44  ;;  %v7033_v24 = vmax.f32 %v6997_v23, 0.0  ;;  %v6998_v34 = vadd.f32 %v10927_v30, %v6883_v29  ;;  %v8053_v43 = vpop.f32.mrb[48].mxu1 }
 0x3fd   : > { %v7107_v3 = vadd.f32 %v7071_v62, %v7035_v12  ;;  %v7036_v51 = vmax.f32 %v7000_v38, 0.0  ;;  %v6755_v41 = vpop.f32.mrb[49].mxu1  ;;  %v7074_v38 = vld [vmem:[%s8328_s20 + $0x9b] sm:$0xff] }
 0x3fe   : > { %v6586_v54 = vpop.f32.mrb[32].mxu0  ;;  %v7105_v56 = vadd.f32 %v7069_v49, %v7033_v24  ;;  %v7034_v48 = vmax.f32 %v6998_v34, 0.0  ;;  %v6756_v2 = vadd.f32 %v6755_v41, %v6578_v42  ;;  %v8054_v9 = vpop.f32.mrb[50].mxu1  ;;  %v7076_v49 = vld [vmem:[%s8328_s20 + $0xab] sm:$0xff] }
 0x3ff   : > { %v6764_v21 = vadd.f32 %v8053_v43, %v6586_v54  ;;  %v6588_v15 = vpop.f32.mrb[33].mxu0  ;;  %v7143_v52 = vmax.f32 %v7107_v3, 0.0  ;;  %v7108_v20 = vadd.f32 %v7072_v6, %v7036_v51  ;;  %v6758_v17 = vpop.f32.mrb[51].mxu1 }
 0x400   : > { %v6589_v4 = vpop.f32.mrb[34].mxu0  ;;  %v7141_v0 = vmax.f32 %v7105_v56, 0.0  ;;  %v7106_v8 = vadd.f32 %v7070_v60, %v7034_v48  ;;  %v6886_v16 = vadd.f32 %v6756_v2, %v10851_v22  ;;  %v6759_v42 = vadd.f32 %v6758_v17, %v6581_v28 }
 0x401   : > { %v6888_v19 = vadd.f32 %v6764_v21, %v10857_v47  ;;  %v6591_v36 = vpop.f32.mrb[35].mxu0  ;;  %7179 = vst [vmem:[%s10951_s13 + $0x70] sm:$0xff] %v7143_v52  ;;  %v7144_v57 = vmax.f32 %v7108_v20, 0.0  ;;  %v6767_v13 = vadd.f32 %v8054_v9, %v6589_v4  ;;  %v7077_v20 = vld [vmem:[%s8328_s20 + $0xb3] sm:$0xff] }
 0x402   : > { %7177 = vst [vmem:[%s10951_s13 + $0x60] sm:$0xff] %v7141_v0  ;;  %v7142_v58 = vmax.f32 %v7106_v8, 0.0  ;;  %v7001_v18 = vadd.f32 %v10927_v30, %v6886_v16  ;;  %v6887_v22 = vadd.f32 %v6759_v42, %v10854_v46 }
 0x403   : > { %v7003_v26 = vadd.f32 %v10927_v30, %v6888_v19  ;;  %7180 = vst [vmem:[%s10951_s13 + $0x78] sm:$0xff] %v7144_v57  ;;  %v6889_v47 = vadd.f32 %v6767_v13, %v10860_v61 }
 0x404   : > { %7178 = vst [vmem:[%s10951_s13 + $0x68] sm:$0xff] %v7142_v58  ;;  %v7037_v59 = vmax.f32 %v7001_v18, 0.0  ;;  %v8057_v39 = vpop.f32.mrb[52].mxu1  ;;  %v7002_v44 = vadd.f32 %v10927_v30, %v6887_v22 }
 0x405   : > { %v7039_v31 = vmax.f32 %v7003_v26, 0.0  ;;  %v7004_v28 = vadd.f32 %v10927_v30, %v6889_v47  ;;  %v6771_v23 = vpop.f32.mrb[53].mxu1 }
 0x406   : > { %v6594_v62 = vpop.f32.mrb[36].mxu0  ;;  %v7109_v12 = vadd.f32 %v7073_v5, %v7037_v59  ;;  %v8058_v6 = vpop.f32.mrb[54].mxu1  ;;  %v7038_v34 = vmax.f32 %v7002_v44, 0.0 }
 0x407   : > { %v7111_v29 = vadd.f32 %v7075_v55, %v7039_v31  ;;  %v6596_v24 = vpop.f32.mrb[37].mxu0  ;;  %v6772_v61 = vadd.f32 %v6771_v23, %v6594_v62  ;;  %v7040_v46 = vmax.f32 %v7004_v28, 0.0  ;;  %v6774_v3 = vpop.f32.mrb[55].mxu1  ;;  %v7079_v28 = vld [vmem:[%s8328_s20 + $0xc3] sm:$0xff]  ;;  %v7080_v23 = vld [vmem:[%s8328_s20 + $0xcb] sm:$0xff] }
 0x408   : > { %v6597_v43 = vpop.f32.mrb[38].mxu0  ;;  %v7145_v60 = vmax.f32 %v7109_v12, 0.0  ;;  %v7110_v21 = vadd.f32 %v7074_v38, %v7038_v34 }
 0x409   : > { %v7147_v51 = vmax.f32 %v7111_v29, 0.0  ;;  %v6890_v54 = vadd.f32 %v6772_v61, %v10863_v10  ;;  %v6599_v41 = vpop.f32.mrb[39].mxu0  ;;  %v6775_v56 = vadd.f32 %v6774_v3, %v6597_v43  ;;  %v7112_v48 = vadd.f32 %v7076_v49, %v7040_v46  ;;  %v7078_v10 = vld [vmem:[%s8328_s20 + $0xbb] sm:$0xff] }
 0x40a   : > { %7181 = vst [vmem:[%s10951_s13 + $0x80] sm:$0xff] %v7145_v60  ;;  %v7146_v52 = vmax.f32 %v7110_v21, 0.0 }
 0x40b   : > { %7183 = vst [vmem:[%s10951_s13 + $0x90] sm:$0xff] %v7147_v51  ;;  %v7005_v15 = vadd.f32 %v10927_v30, %v6890_v54  ;;  %v6891_v2 = vadd.f32 %v6775_v56, %v10866_v45  ;;  %v7148_v9 = vmax.f32 %v7112_v48, 0.0  ;;  %v7081_v56 = vld [vmem:[%s8328_s20 + $0xd3] sm:$0xff] }
 0x40c   : > { %v8061_v0 = vpop.f32.mrb[56].mxu1  ;;  %7182 = vst [vmem:[%s10951_s13 + $0x88] sm:$0xff] %v7146_v52 }
 0x40d   : > { %v7041_v4 = vmax.f32 %v7005_v15, 0.0  ;;  %v7006_v17 = vadd.f32 %v10927_v30, %v6891_v2  ;;  %7184 = vst [vmem:[%s10951_s13 + $0x98] sm:$0xff] %v7148_v9  ;;  %v6787_v19 = vpop.f32.mrb[57].mxu1  ;;  %v7082_v2 = vld [vmem:[%s8328_s20 + $0xdb] sm:$0xff] }
 0x40e   : > { %v6602_v8 = vpop.f32.mrb[40].mxu0  ;;  %v8062_v45 = vpop.f32.mrb[58].mxu1 }
 0x40f   : > { %v7113_v16 = vadd.f32 %v7077_v20, %v7041_v4  ;;  %v7042_v36 = vmax.f32 %v7006_v17, 0.0  ;;  %v6780_v57 = vadd.f32 %v8057_v39, %v6602_v8  ;;  %v6604_v13 = vpop.f32.mrb[41].mxu0  ;;  %v6790_v58 = vpop.f32.mrb[59].mxu1 }
 0x410   : > { %v6605_v42 = vpop.f32.mrb[42].mxu0 }
 0x411   : > { %v7149_v26 = vmax.f32 %v7113_v16, 0.0  ;;  %v7114_v18 = vadd.f32 %v7078_v10, %v7042_v36  ;;  %v6892_v55 = vadd.f32 %v6780_v57, %v10869_v7  ;;  %v6783_v5 = vadd.f32 %v8058_v6, %v6605_v42  ;;  %v6607_v47 = vpop.f32.mrb[43].mxu0 }
 0x413   : > { %7185 = vst [vmem:[%s10951_s13 + $0xa0] sm:$0xff] %v7149_v26  ;;  %v7150_v22 = vmax.f32 %v7114_v18, 0.0  ;;  %v7007_v31 = vadd.f32 %v10927_v30, %v6892_v55  ;;  %v6893_v59 = vadd.f32 %v6783_v5, %v10872_v14  ;;  %v7084_v5 = vld [vmem:[%s8328_s20 + $0xeb] sm:$0xff] }
 0x414   : > { %v11044_v62 = vpop.f32.mrb[60].mxu1 }
 0x415   : > { %7186 = vst [vmem:[%s10951_s13 + $0xa8] sm:$0xff] %v7150_v22  ;;  %v7043_v39 = vmax.f32 %v7007_v31, 0.0  ;;  %v7008_v44 = vadd.f32 %v10927_v30, %v6893_v59  ;;  %v6803_v12 = vpop.f32.mrb[61].mxu1 }
 0x416   : > { %v6610_v29 = vpop.f32.mrb[44].mxu0  ;;  %v11047_v61 = vpop.f32.mrb[62].mxu1 }
 0x417   : > { %v7115_v7 = vadd.f32 %v7079_v28, %v7043_v39  ;;  %v7044_v49 = vmax.f32 %v7008_v44, 0.0  ;;  %v6788_v38 = vadd.f32 %v6787_v19, %v6610_v29  ;;  %v6612_v24 = vpop.f32.mrb[45].mxu0  ;;  %v6806_v6 = vpop.f32.mrb[63].mxu1 }
 0x418   : > { %v6613_v14 = vpop.f32.mrb[46].mxu0 }
 0x419   : > { %v7151_v46 = vmax.f32 %v7115_v7, 0.0  ;;  %v7116_v34 = vadd.f32 %v7080_v23, %v7044_v49  ;;  %v6894_v43 = vadd.f32 %v6788_v38, %v10875_v53  ;;  %v6791_v3 = vadd.f32 %v6790_v58, %v6613_v14  ;;  %v6615_v51 = vpop.f32.mrb[47].mxu0  ;;  %v7085_v38 = vld [vmem:[%s8328_s20 + $0xf3] sm:$0xff]  ;;  %v7086_v14 = vld [vmem:[%s8328_s20 + $0xfb] sm:$0xff] }
 0x41b   : > { %7187 = vst [vmem:[%s10951_s13 + $0xb0] sm:$0xff] %v7151_v46  ;;  %v7152_v60 = vmax.f32 %v7116_v34, 0.0  ;;  %v7009_v54 = vadd.f32 %v10927_v30, %v6894_v43  ;;  %v6895_v41 = vadd.f32 %v6791_v3, %v10878_v25 }
 0x41c   : > { %v11056_v15 = vpop.f32.mrb[64].mxu1 }
 0x41d   : > { %7188 = vst [vmem:[%s10951_s13 + $0xb8] sm:$0xff] %v7152_v60  ;;  %v7045_v48 = vmax.f32 %v7009_v54, 0.0  ;;  %v7010_v21 = vadd.f32 %v10927_v30, %v6895_v41  ;;  %v11059_v52 = vpop.f32.mrb[65].mxu1 }
 0x41e   : > { %v6618_v9 = vpop.f32.mrb[48].mxu0  ;;  %v11061_v10 = vpop.f32.mrb[66].mxu1 }
 0x41f   : > { %v7117_v53 = vadd.f32 %v7081_v56, %v7045_v48  ;;  %v7046_v20 = vmax.f32 %v7010_v21, 0.0  ;;  %v6796_v4 = vadd.f32 %v8061_v0, %v6618_v9  ;;  %v6620_v17 = vpop.f32.mrb[49].mxu0  ;;  %v11063_v8 = vpop.f32.mrb[67].mxu1  ;;  %v7083_v0 = vld [vmem:[%s8328_s20 + $0xe3] sm:$0xff] }
 0x420   : > { %v6621_v25 = vpop.f32.mrb[50].mxu0 }
 0x421   : > { %v7153_v19 = vmax.f32 %v7117_v53, 0.0  ;;  %v7118_v16 = vadd.f32 %v7082_v2, %v7046_v20  ;;  %v6896_v36 = vadd.f32 %v6796_v4, %v10883_v32  ;;  %v6799_v57 = vadd.f32 %v8062_v45, %v6621_v25  ;;  %v6623_v13 = vpop.f32.mrb[51].mxu0  ;;  %v7087_v2 = vld [vmem:[%s8328_s20 + $0x103] sm:$0xff]  ;;  %v7088_v53 = vld [vmem:[%s8328_s20 + $0x10b] sm:$0xff] }
 0x423   : > { %7189 = vst [vmem:[%s10951_s13 + $0xc0] sm:$0xff] %v7153_v19  ;;  %v7154_v42 = vmax.f32 %v7118_v16, 0.0  ;;  %v7011_v58 = vadd.f32 %v10927_v30, %v6896_v36  ;;  %v6897_v26 = vadd.f32 %v6799_v57, %v10888_v35 }
 0x425   : > { %7190 = vst [vmem:[%s10951_s13 + $0xc8] sm:$0xff] %v7154_v42  ;;  %v7047_v18 = vmax.f32 %v7011_v58, 0.0  ;;  %v7012_v55 = vadd.f32 %v10927_v30, %v6897_v26  ;;  %v7089_v26 = vld [vmem:[%s8328_s20 + $0x113] sm:$0xff] }
 0x426   : > { %v6626_v47 = vpop.f32.mrb[52].mxu0 }
 0x427   : > { %v7119_v22 = vadd.f32 %v7083_v0, %v7047_v18  ;;  %v7048_v32 = vmax.f32 %v7012_v55, 0.0  ;;  %v6804_v45 = vadd.f32 %v6803_v12, %v6626_v47  ;;  %v6628_v31 = vpop.f32.mrb[53].mxu0  ;;  %v7090_v18 = vld [vmem:[%s8328_s20 + $0x11b] sm:$0xff] }
 0x428   : > { %v6629_v59 = vpop.f32.mrb[54].mxu0 }
 0x429   : > { %v7155_v28 = vmax.f32 %v7119_v22, 0.0  ;;  %v7120_v39 = vadd.f32 %v7084_v5, %v7048_v32  ;;  %v6898_v35 = vadd.f32 %v6804_v45, %v10891_v1  ;;  %v6807_v44 = vadd.f32 %v6806_v6, %v6629_v59  ;;  %v6631_v23 = vpop.f32.mrb[55].mxu0 }
 0x42b   : > { %7191 = vst [vmem:[%s10951_s13 + $0xd0] sm:$0xff] %v7155_v28  ;;  %v7156_v29 = vmax.f32 %v7120_v39, 0.0  ;;  %v7013_v7 = vadd.f32 %v10927_v30, %v6898_v35  ;;  %v6899_v49 = vadd.f32 %v6807_v44, %v10894_v27  ;;  %v7091_v44 = vld [vmem:[%s8328_s20 + $0x123] sm:$0xff] }
 0x42d   : > { %7192 = vst [vmem:[%s10951_s13 + $0xd8] sm:$0xff] %v7156_v29  ;;  %v7049_v24 = vmax.f32 %v7013_v7, 0.0  ;;  %v7014_v12 = vadd.f32 %v10927_v30, %v6899_v49  ;;  %v7092_v29 = vld [vmem:[%s8328_s20 + $0x12b] sm:$0xff] }
 0x42e   : > { %v6634_v46 = vpop.f32.mrb[56].mxu0 }
 0x42f   : > { %v7121_v34 = vadd.f32 %v7085_v38, %v7049_v24  ;;  %v7050_v1 = vmax.f32 %v7014_v12, 0.0  ;;  %v6812_v6 = vadd.f32 %v11044_v62, %v6634_v46  ;;  %v6636_v43 = vpop.f32.mrb[57].mxu0 }
 0x430   : > { %v6637_v3 = vpop.f32.mrb[58].mxu0 }
 0x431   : > { %v7157_v51 = vmax.f32 %v7121_v34, 0.0  ;;  %v7122_v60 = vadd.f32 %v7086_v14, %v7050_v1  ;;  %v6900_v27 = vadd.f32 %v6812_v6, %v10899_v33  ;;  %v6815_v54 = vadd.f32 %v11047_v61, %v6637_v3  ;;  %v6639_v41 = vpop.f32.mrb[59].mxu0 }
 0x433   : > { %7193 = vst [vmem:[%s10951_s13 + $0xe0] sm:$0xff] %v7157_v51  ;;  %v7158_v56 = vmax.f32 %v7122_v60, 0.0  ;;  %v7015_v48 = vadd.f32 %v10927_v30, %v6900_v27  ;;  %v6901_v21 = vadd.f32 %v6815_v54, %v10904_v63 }
 0x435   : > { %7194 = vst [vmem:[%s10951_s13 + $0xe8] sm:$0xff] %v7158_v56  ;;  %v7051_v62 = vmax.f32 %v7015_v48, 0.0  ;;  %v7016_v9 = vadd.f32 %v10927_v30, %v6901_v21 }
 0x436   : > { %v6642_v20 = vpop.f32.mrb[60].mxu0 }
 0x437   : > { %v7123_v33 = vadd.f32 %v7087_v2, %v7051_v62  ;;  %v7052_v4 = vmax.f32 %v7016_v9, 0.0  ;;  %v6820_v61 = vadd.f32 %v11059_v52, %v6642_v20  ;;  %v6644_v17 = vpop.f32.mrb[61].mxu0 }
 0x438   : > { %v6645_v25 = vpop.f32.mrb[62].mxu0 }
 0x439   : > { %v7159_v19 = vmax.f32 %v7123_v33, 0.0  ;;  %v7124_v16 = vadd.f32 %v7088_v53, %v7052_v4  ;;  %v6902_v63 = vadd.f32 %v6820_v61, %v10907_v40  ;;  %v6823_v36 = vadd.f32 %v11063_v8, %v6645_v25  ;;  %v6647_v57 = vpop.f32.mrb[63].mxu0 }
 0x43b   : > { %7195 = vst [vmem:[%s10951_s13 + $0xf0] sm:$0xff] %v7159_v19  ;;  %v7160_v13 = vmax.f32 %v7124_v16, 0.0  ;;  %v7017_v42 = vadd.f32 %v10927_v30, %v6902_v63  ;;  %v6903_v58 = vadd.f32 %v6823_v36, %v10910_v11 }
 0x43d   : > { %7196 = vst [vmem:[%s10951_s13 + $0xf8] sm:$0xff] %v7160_v13  ;;  %v7053_v52 = vmax.f32 %v7017_v42, 0.0  ;;  %v7018_v0 = vadd.f32 %v10927_v30, %v6903_v58 }
 0x43e   : > { %v6650_v55 = vpop.f32.mrb[64].mxu0 }
 0x43f   : > { %v7125_v40 = vadd.f32 %v7089_v26, %v7053_v52  ;;  %v7054_v5 = vmax.f32 %v7018_v0, 0.0  ;;  %v6828_v8 = vadd.f32 %v11056_v15, %v6650_v55  ;;  %v6652_v47 = vpop.f32.mrb[65].mxu0 }
 0x440   : > { %v6653_v22 = vpop.f32.mrb[66].mxu0 }
 0x441   : > { %v7161_v32 = vmax.f32 %v7125_v40, 0.0  ;;  %v7126_v45 = vadd.f32 %v7090_v18, %v7054_v5  ;;  %v6904_v11 = vadd.f32 %v6828_v8, %v10915_v37  ;;  %v6831_v31 = vadd.f32 %v11061_v10, %v6653_v22  ;;  %v6655_v59 = vpop.f32.mrb[67].mxu0 }
 0x443   : > { %7197 = vst [vmem:[%s10951_s13 + $0x100] sm:$0xff] %v7161_v32  ;;  %v7162_v28 = vmax.f32 %v7126_v45, 0.0  ;;  %v7019_v39 = vadd.f32 %v10927_v30, %v6904_v11  ;;  %v6905_v35 = vadd.f32 %v6831_v31, %v10920_v50 }
 0x445   : > { %7198 = vst [vmem:[%s10951_s13 + $0x108] sm:$0xff] %v7162_v28  ;;  %v7055_v15 = vmax.f32 %v7019_v39, 0.0  ;;  %v7020_v23 = vadd.f32 %v10927_v30, %v6905_v35 }
 0x447   : > { %v7127_v7 = vadd.f32 %v7091_v44, %v7055_v15  ;;  %v7056_v49 = vmax.f32 %v7020_v23, 0.0 }
 0x449   : > { %v7163_v37 = vmax.f32 %v7127_v7, 0.0  ;;  %v7128_v38 = vadd.f32 %v7092_v29, %v7056_v49 }
 0x44b   : > { %7199 = vst [vmem:[%s10951_s13 + $0x110] sm:$0xff] %v7163_v37  ;;  %v7164_v10 = vmax.f32 %v7128_v38, 0.0 }
 0x44d   : > { %7200 = vst [vmem:[%s10951_s13 + $0x118] sm:$0xff] %v7164_v10 }
 0x44e PF: > { %s16_s21 = sadd.s32 1, %s8239_s21  }
 0x44f   : > { %p13_p4 = scmp.ge.s32.totalorder %s16_s21, 4  }
 0x451   :  { %15 = sbr.rel (!%p13_p4) target bundleno = 1 (0x1), region = 78 }

</bundles_post_ra>
